<compile_context>
chip_gen: v7x
topology: tpu7x:2x2x1
jax: 0.10.0
libtpu: 0.0.40
codegen_flags: <defaults>
</compile_context>

<pallas_src>
import functools

import jax
import jax.numpy as jnp
from jax.experimental import pallas as pl
from jax.experimental.pallas import tpu as pltpu


# ---------------------------------------------------------------------------
# Fused kernel: one grid step per batch sample.
# ---------------------------------------------------------------------------
def _down_kernel(x_ref,
                 w1a_ref, g1a_ref, b1a_ref,
                 w1b_ref, g1b_ref, b1b_ref,
                 w2a_ref, g2a_ref, b2a_ref,
                 w2b_ref, g2b_ref, b2b_ref,
                 o_ref,
                 pad_ref, patch_ref,
                 *, H, W, Cin, Cmid):
    Ho, Wo = H // 2, W // 2
    P = Ho * Wo

    # Zero the padded-image scratch once; every conv only rewrites the interior,
    # so the 1-pixel halo stays zero ("same" padding, no jnp.pad / HBM copies).
    pad_ref[...] = jnp.zeros_like(pad_ref)

    # ---- 2x2 max pool (stride 2), fully in-register --------------------------
    # The wrapper pre-paired the W axis (free HBM reshape), so the block is
    # (H, Wo, 2*Cin): pooling is one lane-slice max + one row-pair max.
    xv = x_ref[0].astype(jnp.float32)                        # (H, Wo, 2*Cin)
    pw = jnp.maximum(xv[:, :, :Cin], xv[:, :, Cin:2 * Cin])  # (H, Wo, Cin)
    pooled = jnp.max(pw.reshape(Ho, 2, Wo, Cin), axis=1)     # (Ho, Wo, Cin)

    # ---- conv3x3 (no bias) + GroupNorm(1, cout): one im2col MXU matmul -------
    # TODO(synk): at tiny channel counts (Cin=4) a pure-VPU broadcast-MAC path
    # would beat the MXU; the im2col matmul is kept as the scalable path.
    def conv_gn(act_hwc, w_ref, g_ref, b_ref, cin):
        # 1) activation into the interior of the zero-padded scratch
        pad_ref[1:Ho + 1, 1:Wo + 1, :cin] = act_hwc
        # 2) im2col: gather 9 shifted slabs into one (P, 9*cin) patch matrix
        for t, (kh, kw) in enumerate(
                (kh, kw) for kh in range(3) for kw in range(3)):
            patch_ref[:, :, t * cin:(t + 1) * cin] = \
                pad_ref[kh:kh + Ho, kw:kw + Wo, :cin]
        patches = patch_ref[:, :, :9 * cin].reshape(P, 9 * cin)
        # 3) single MXU matmul: bf16 inputs, f32 accumulation
        y = jnp.dot(patches.astype(jnp.bfloat16), w_ref[...],
                    preferred_element_type=jnp.float32)       # (P, cout)
        cout = y.shape[-1]
        # 4) GroupNorm(num_groups=1): single-pass sum / sum-of-squares stats
        inv_n = 1.0 / float(P * cout)
        mean = jnp.sum(y) * inv_n
        var = jnp.sum(y * y) * inv_n - mean * mean
        y = (y - mean) * jax.lax.rsqrt(var + 1e-5)
        return y * g_ref[...].astype(jnp.float32) + b_ref[...].astype(jnp.float32)

    # TODO(synk): PyTorch nn.GELU defaults to the exact erf form; the tanh
    # approximation is used for guaranteed Mosaic (EUP) lowering (~1e-3 diff).
    gelu = lambda v: jax.nn.gelu(v, approximate=True)

    pooled_flat = pooled.reshape(P, Cin)

    # DoubleConv(in, in, residual=True): gelu(x + GN(conv(gelu(GN(conv(x))))))
    h = gelu(conv_gn(pooled, w1a_ref, g1a_ref, b1a_ref, Cin))             # (P, Cin)
    h = conv_gn(h.reshape(Ho, Wo, Cin), w1b_ref, g1b_ref, b1b_ref, Cin)   # (P, Cin)
    h = gelu(pooled_flat + h)

    # DoubleConv(in, out): GN(conv(gelu(GN(conv(h)))))
    h = gelu(conv_gn(h.reshape(Ho, Wo, Cin), w2a_ref, g2a_ref, b2a_ref, Cin))  # (P, Cmid)
    h = conv_gn(h.reshape(Ho, Wo, Cmid), w2b_ref, g2b_ref, b2b_ref, Cmid)      # (P, Cout)

    # Store transposed: output is already NCHW-flat (Cout, Ho*Wo).
    o_ref[0] = h.T.astype(o_ref.dtype)


# ---------------------------------------------------------------------------
# Parameters (PyTorch-equivalent, conv weights pre-reshaped to im2col layout).
# ---------------------------------------------------------------------------
def init_down_params(key, in_channels, out_channels):
    mid = out_channels  # DoubleConv(in, out): mid_channels defaults to out

    def conv_w(k, cin, cout):
        # PyTorch Conv2d weight (Cout, Cin, 3, 3) -> im2col layout (9*Cin, Cout)
        # with row index = kh*3*Cin + kw*Cin + ci.
        std = (2.0 / (cin * 9)) ** 0.5
        w = jax.random.normal(k, (cout, cin, 3, 3), jnp.float32) * std
        return jnp.transpose(w, (2, 3, 1, 0)).reshape(9 * cin, cout)

    ks = jax.random.split(key, 4)
    return {
        # DoubleConv #1: in -> in, residual=True (mid = in)
        "w1a": conv_w(ks[0], in_channels, in_channels),
        "g1a": jnp.ones((1, in_channels), jnp.float32),
        "b1a": jnp.zeros((1, in_channels), jnp.float32),
        "w1b": conv_w(ks[1], in_channels, in_channels),
        "g1b": jnp.ones((1, in_channels), jnp.float32),
        "b1b": jnp.zeros((1, in_channels), jnp.float32),
        # DoubleConv #2: in -> out (mid = out)
        "w2a": conv_w(ks[2], in_channels, mid),
        "g2a": jnp.ones((1, mid), jnp.float32),
        "b2a": jnp.zeros((1, mid), jnp.float32),
        "w2b": conv_w(ks[3], mid, out_channels),
        "g2b": jnp.ones((1, out_channels), jnp.float32),
        "b2b": jnp.zeros((1, out_channels), jnp.float32),
    }


# ---------------------------------------------------------------------------
# Public forward pass (NCHW in, NCHW out — matches PyTorch Down.forward).
# ---------------------------------------------------------------------------
@jax.jit
def down_forward(x_nchw, params):
    N, Cin, H, W = x_nchw.shape
    assert H % 2 == 0 and W % 2 == 0, "MaxPool2d(2) floor-truncates odd H/W"
    assert params["w1a"].shape[0] == 9 * Cin
    Ho, Wo = H // 2, W // 2
    Cmid = params["w2a"].shape[1]
    Cout = params["w2b"].shape[1]
    Cpad = max(Cin, Cmid)  # largest channel count fed into any conv

    # NCHW -> NHWC, then pre-pair the W axis (free reshape) so the in-kernel
    # 2x2 pool needs no relayout: x block is (H, Wo, 2*Cin).
    x = jnp.transpose(x_nchw, (0, 2, 3, 1)).astype(jnp.float32)
    x = x.reshape(N, H, Wo, 2 * Cin)

    # bf16 weights feed the MXU directly; accumulation stays f32 in-kernel.
    w1a = params["w1a"].astype(jnp.bfloat16)
    w1b = params["w1b"].astype(jnp.bfloat16)
    w2a = params["w2a"].astype(jnp.bfloat16)
    w2b = params["w2b"].astype(jnp.bfloat16)

    def whole(a):  # replicated whole-array (rank-2) block: weights / GN affine
        return pl.BlockSpec(a.shape, lambda n: (0, 0))

    kernel = functools.partial(_down_kernel, H=H, W=W, Cin=Cin, Cmid=Cmid)

    out = pl.pallas_call(
        kernel,
        out_shape=jax.ShapeDtypeStruct((N, Cout, Ho * Wo), jnp.float32),
        grid=(N,),
        in_specs=[pl.BlockSpec((1, H, Wo, 2 * Cin), lambda n: (n, 0, 0, 0)),
                  whole(w1a), whole(params["g1a"]), whole(params["b1a"]),
                  whole(w1b), whole(params["g1b"]), whole(params["b1b"]),
                  whole(w2a), whole(params["g2a"]), whole(params["b2a"]),
                  whole(w2b), whole(params["g2b"]), whole(params["b2b"])],
        out_specs=pl.BlockSpec((1, Cout, Ho * Wo), lambda n: (n, 0, 0)),
        scratch_shapes=[pltpu.VMEM((Ho + 2, Wo + 2, Cpad), jnp.float32),   # padded image
                        pltpu.VMEM((Ho, Wo, 9 * Cpad), jnp.float32)],      # im2col patches
        compiler_params=pltpu.CompilerParams(dimension_semantics=("parallel",)),
    )(x, w1a, params["g1a"], params["b1a"],
      w1b, params["g1b"], params["b1b"],
      w2a, params["g2a"], params["b2a"],
      w2b, params["g2b"], params["b2b"])

    # Free reshape: (N, Cout, Ho*Wo) is already NCHW order.
    return out.reshape(N, Cout, Ho, Wo)


# ---------------------------------------------------------------------------
# Pure-JAX (XLA) reference of the same forward pass, for self-validation.
# ---------------------------------------------------------------------------
def _reference_down(x_nchw, params):
    x = jnp.transpose(x_nchw, (0, 2, 3, 1)).astype(jnp.float32)  # NHWC
    N, H, W, C = x.shape
    xp = x.reshape(N, H // 2, 2, W // 2, 2, C).max(axis=(2, 4))

    def conv_gn(h, w_flat, g, b):
        cin, cout = h.shape[-1], w_flat.shape[-1]
        w = w_flat.reshape(3, 3, cin, cout)  # HWIO
        y = jax.lax.conv_general_dilated(
            h, w, window_strides=(1, 1), padding="SAME",
            dimension_numbers=("NHWC", "HWIO", "NHWC"),
            precision=jax.lax.Precision.HIGHEST)
        mean = jnp.mean(y, axis=(1, 2, 3), keepdims=True)
        var = jnp.var(y, axis=(1, 2, 3), keepdims=True)
        y = (y - mean) * jax.lax.rsqrt(var + 1e-5)
        return y * g.reshape(1, 1, 1, -1) + b.reshape(1, 1, 1, -1)

    gelu = lambda v: jax.nn.gelu(v, approximate=True)
    h = gelu(conv_gn(xp, params["w1a"], params["g1a"], params["b1a"]))
    h = conv_gn(h, params["w1b"], params["g1b"], params["b1b"])
    h = gelu(xp + h)
    h = gelu(conv_gn(h, params["w2a"], params["g2a"], params["b2a"]))
    h = conv_gn(h, params["w2b"], params["g2b"], params["b2b"])
    return jnp.transpose(h, (0, 3, 1, 2))


if __name__ == "__main__":
    key = jax.random.PRNGKey(0)
    k_x, k_p = jax.random.split(key)

    N, C_in, C_out, H, W = 2, 4, 8, 16, 16
    x = jax.random.normal(k_x, (N, C_in, H, W), jnp.float32)
    params = init_down_params(k_p, C_in, C_out)

    out = jax.block_until_ready(down_forward(x, params))
    assert out.shape == (N, C_out, H // 2, W // 2), out.shape
    assert out.dtype == jnp.float32

    # Numerical self-check against the pure-JAX reference (bf16 MXU inputs give
    # ~1e-2 deviations; any structural bug would give O(1) errors).
    ref = jax.block_until_ready(_reference_down(x, params))
    err = float(jnp.max(jnp.abs(out - ref)))
    assert err < 1e-1, f"max abs error vs reference: {err}"

    print("KERNEL_OK")
</pallas_src>

<mosaic_0001>
module attributes {stable_mosaic.version = 11 : i64} {
  func.func @_down_kernel(%arg0: i32, %arg1: memref<1x16x8x8xf32, #tpu.memory_space<vmem>>, %arg2: memref<36x4xbf16, #tpu.memory_space<vmem>>, %arg3: memref<1x4xf32, #tpu.memory_space<vmem>>, %arg4: memref<1x4xf32, #tpu.memory_space<vmem>>, %arg5: memref<36x4xbf16, #tpu.memory_space<vmem>>, %arg6: memref<1x4xf32, #tpu.memory_space<vmem>>, %arg7: memref<1x4xf32, #tpu.memory_space<vmem>>, %arg8: memref<36x8xbf16, #tpu.memory_space<vmem>>, %arg9: memref<1x8xf32, #tpu.memory_space<vmem>>, %arg10: memref<1x8xf32, #tpu.memory_space<vmem>>, %arg11: memref<72x8xbf16, #tpu.memory_space<vmem>>, %arg12: memref<1x8xf32, #tpu.memory_space<vmem>>, %arg13: memref<1x8xf32, #tpu.memory_space<vmem>>, %arg14: memref<1x8x64xf32, #tpu.memory_space<vmem>>, %arg15: memref<10x10x8xf32, #tpu.memory_space<vmem>>, %arg16: memref<8x8x72xf32, #tpu.memory_space<vmem>>) attributes {dimension_semantics = [#tpu.dimension_semantics<parallel>], iteration_bounds = array<i64: 2>, scalar_prefetch = 0 : i64, scratch_operands = 2 : i64, tpu.core_type = #tpu.core_type<tc>, window_params = [{transform_indices = @transform_0, window_bounds = array<i64: 1, 16, 8, 8>}, {pipeline_mode = #tpu.pipeline_mode<synchronous>, transform_indices = @transform_1, window_bounds = array<i64: 36, 4>}, {pipeline_mode = #tpu.pipeline_mode<synchronous>, transform_indices = @transform_2, window_bounds = array<i64: 1, 4>}, {pipeline_mode = #tpu.pipeline_mode<synchronous>, transform_indices = @transform_3, window_bounds = array<i64: 1, 4>}, {pipeline_mode = #tpu.pipeline_mode<synchronous>, transform_indices = @transform_4, window_bounds = array<i64: 36, 4>}, {pipeline_mode = #tpu.pipeline_mode<synchronous>, transform_indices = @transform_5, window_bounds = array<i64: 1, 4>}, {pipeline_mode = #tpu.pipeline_mode<synchronous>, transform_indices = @transform_6, window_bounds = array<i64: 1, 4>}, {pipeline_mode = #tpu.pipeline_mode<synchronous>, transform_indices = @transform_7, window_bounds = array<i64: 36, 8>}, {pipeline_mode = #tpu.pipeline_mode<synchronous>, transform_indices = @transform_8, window_bounds = array<i64: 1, 8>}, {pipeline_mode = #tpu.pipeline_mode<synchronous>, transform_indices = @transform_9, window_bounds = array<i64: 1, 8>}, {pipeline_mode = #tpu.pipeline_mode<synchronous>, transform_indices = @transform_10, window_bounds = array<i64: 72, 8>}, {pipeline_mode = #tpu.pipeline_mode<synchronous>, transform_indices = @transform_11, window_bounds = array<i64: 1, 8>}, {pipeline_mode = #tpu.pipeline_mode<synchronous>, transform_indices = @transform_12, window_bounds = array<i64: 1, 8>}, {transform_indices = @transform_13, window_bounds = array<i64: 1, 8, 64>}]} {
    %cst = arith.constant 0.000000e+00 : f32
    %0 = vector.broadcast %cst : f32 to vector<10x10x8xf32>
    %c0 = arith.constant 0 : index
    %c0_0 = arith.constant 0 : index
    %c0_1 = arith.constant 0 : index
    %1 = vector.load %arg15[%c0, %c0_0, %c0_1] : memref<10x10x8xf32, #tpu.memory_space<vmem>>, vector<10x10x8xf32>
    tpu.vector_store %arg15[%c0, %c0_0, %c0_1], %0 {strides = array<i32>} : memref<10x10x8xf32, #tpu.memory_space<vmem>>, vector<10x10x8xf32>,
    %c0_2 = arith.constant 0 : index
    %c0_3 = arith.constant 0 : index
    %c0_4 = arith.constant 0 : index
    %c0_5 = arith.constant 0 : index
    %2 = vector.load %arg1[%c0_2, %c0_3, %c0_4, %c0_5] : memref<1x16x8x8xf32, #tpu.memory_space<vmem>>, vector<1x16x8x8xf32>
    %3 = vector.shape_cast %2 : vector<1x16x8x8xf32> to vector<16x8x8xf32>
    %4 = vector.extract_strided_slice %3 {offsets = [0, 0, 0], sizes = [16, 8, 4], strides = [1, 1, 1]} : vector<16x8x8xf32> to vector<16x8x4xf32>
    %5 = vector.extract_strided_slice %3 {offsets = [0, 0, 4], sizes = [16, 8, 4], strides = [1, 1, 1]} : vector<16x8x8xf32> to vector<16x8x4xf32>
    %6 = arith.maximumf %4, %5 : vector<16x8x4xf32>
    %7 = vector.shape_cast %6 : vector<16x8x4xf32> to vector<8x2x8x4xf32>
    %cst_6 = arith.constant dense<0xFF800000> : vector<8x8x4xf32>
    %8 = vector.multi_reduction <maximumf>, %7, %cst_6 [1] : vector<8x2x8x4xf32> to vector<8x8x4xf32>
    %9 = vector.shape_cast %8 : vector<8x8x4xf32> to vector<64x4xf32>
    %c1 = arith.constant 1 : index
    %c1_7 = arith.constant 1 : index
    %c0_8 = arith.constant 0 : index
    %10 = vector.load %arg15[%c1, %c1_7, %c0_8] : memref<10x10x8xf32, #tpu.memory_space<vmem>>, vector<8x8x4xf32>
    tpu.vector_store %arg15[%c1, %c1_7, %c0_8], %8 {strides = array<i32>} : memref<10x10x8xf32, #tpu.memory_space<vmem>>, vector<8x8x4xf32>,
    %c0_9 = arith.constant 0 : index
    %c0_10 = arith.constant 0 : index
    %c0_11 = arith.constant 0 : index
    %11 = vector.load %arg15[%c0_9, %c0_10, %c0_11] : memref<10x10x8xf32, #tpu.memory_space<vmem>>, vector<8x8x4xf32>
    %c0_12 = arith.constant 0 : index
    %c0_13 = arith.constant 0 : index
    %c0_14 = arith.constant 0 : index
    %12 = vector.load %arg16[%c0_12, %c0_13, %c0_14] : memref<8x8x72xf32, #tpu.memory_space<vmem>>, vector<8x8x4xf32>
    tpu.vector_store %arg16[%c0_12, %c0_13, %c0_14], %11 {strides = array<i32>} : memref<8x8x72xf32, #tpu.memory_space<vmem>>, vector<8x8x4xf32>,
    %c0_15 = arith.constant 0 : index
    %c1_16 = arith.constant 1 : index
    %c0_17 = arith.constant 0 : index
    %13 = vector.load %arg15[%c0_15, %c1_16, %c0_17] : memref<10x10x8xf32, #tpu.memory_space<vmem>>, vector<8x8x4xf32>
    %c0_18 = arith.constant 0 : index
    %c0_19 = arith.constant 0 : index
    %c4 = arith.constant 4 : index
    %14 = vector.load %arg16[%c0_18, %c0_19, %c4] : memref<8x8x72xf32, #tpu.memory_space<vmem>>, vector<8x8x4xf32>
    tpu.vector_store %arg16[%c0_18, %c0_19, %c4], %13 {strides = array<i32>} : memref<8x8x72xf32, #tpu.memory_space<vmem>>, vector<8x8x4xf32>,
    %c0_20 = arith.constant 0 : index
    %c2 = arith.constant 2 : index
    %c0_21 = arith.constant 0 : index
    %15 = vector.load %arg15[%c0_20, %c2, %c0_21] : memref<10x10x8xf32, #tpu.memory_space<vmem>>, vector<8x8x4xf32>
    %c0_22 = arith.constant 0 : index
    %c0_23 = arith.constant 0 : index
    %c8 = arith.constant 8 : index
    %16 = vector.load %arg16[%c0_22, %c0_23, %c8] : memref<8x8x72xf32, #tpu.memory_space<vmem>>, vector<8x8x4xf32>
    tpu.vector_store %arg16[%c0_22, %c0_23, %c8], %15 {strides = array<i32>} : memref<8x8x72xf32, #tpu.memory_space<vmem>>, vector<8x8x4xf32>,
    %c1_24 = arith.constant 1 : index
    %c0_25 = arith.constant 0 : index
    %c0_26 = arith.constant 0 : index
    %17 = vector.load %arg15[%c1_24, %c0_25, %c0_26] : memref<10x10x8xf32, #tpu.memory_space<vmem>>, vector<8x8x4xf32>
    %c0_27 = arith.constant 0 : index
    %c0_28 = arith.constant 0 : index
    %c12 = arith.constant 12 : index
    %18 = vector.load %arg16[%c0_27, %c0_28, %c12] : memref<8x8x72xf32, #tpu.memory_space<vmem>>, vector<8x8x4xf32>
    tpu.vector_store %arg16[%c0_27, %c0_28, %c12], %17 {strides = array<i32>} : memref<8x8x72xf32, #tpu.memory_space<vmem>>, vector<8x8x4xf32>,
    %c1_29 = arith.constant 1 : index
    %c1_30 = arith.constant 1 : index
    %c0_31 = arith.constant 0 : index
    %19 = vector.load %arg15[%c1_29, %c1_30, %c0_31] : memref<10x10x8xf32, #tpu.memory_space<vmem>>, vector<8x8x4xf32>
    %c0_32 = arith.constant 0 : index
    %c0_33 = arith.constant 0 : index
    %c16 = arith.constant 16 : index
    %20 = vector.load %arg16[%c0_32, %c0_33, %c16] : memref<8x8x72xf32, #tpu.memory_space<vmem>>, vector<8x8x4xf32>
    tpu.vector_store %arg16[%c0_32, %c0_33, %c16], %19 {strides = array<i32>} : memref<8x8x72xf32, #tpu.memory_space<vmem>>, vector<8x8x4xf32>,
    %c1_34 = arith.constant 1 : index
    %c2_35 = arith.constant 2 : index
    %c0_36 = arith.constant 0 : index
    %21 = vector.load %arg15[%c1_34, %c2_35, %c0_36] : memref<10x10x8xf32, #tpu.memory_space<vmem>>, vector<8x8x4xf32>
    %c0_37 = arith.constant 0 : index
    %c0_38 = arith.constant 0 : index
    %c20 = arith.constant 20 : index
    %22 = vector.load %arg16[%c0_37, %c0_38, %c20] : memref<8x8x72xf32, #tpu.memory_space<vmem>>, vector<8x8x4xf32>
    tpu.vector_store %arg16[%c0_37, %c0_38, %c20], %21 {strides = array<i32>} : memref<8x8x72xf32, #tpu.memory_space<vmem>>, vector<8x8x4xf32>,
    %c2_39 = arith.constant 2 : index
    %c0_40 = arith.constant 0 : index
    %c0_41 = arith.constant 0 : index
    %23 = vector.load %arg15[%c2_39, %c0_40, %c0_41] : memref<10x10x8xf32, #tpu.memory_space<vmem>>, vector<8x8x4xf32>
    %c0_42 = arith.constant 0 : index
    %c0_43 = arith.constant 0 : index
    %c24 = arith.constant 24 : index
    %24 = vector.load %arg16[%c0_42, %c0_43, %c24] : memref<8x8x72xf32, #tpu.memory_space<vmem>>, vector<8x8x4xf32>
    tpu.vector_store %arg16[%c0_42, %c0_43, %c24], %23 {strides = array<i32>} : memref<8x8x72xf32, #tpu.memory_space<vmem>>, vector<8x8x4xf32>,
    %c2_44 = arith.constant 2 : index
    %c1_45 = arith.constant 1 : index
    %c0_46 = arith.constant 0 : index
    %25 = vector.load %arg15[%c2_44, %c1_45, %c0_46] : memref<10x10x8xf32, #tpu.memory_space<vmem>>, vector<8x8x4xf32>
    %c0_47 = arith.constant 0 : index
    %c0_48 = arith.constant 0 : index
    %c28 = arith.constant 28 : index
    %26 = vector.load %arg16[%c0_47, %c0_48, %c28] : memref<8x8x72xf32, #tpu.memory_space<vmem>>, vector<8x8x4xf32>
    tpu.vector_store %arg16[%c0_47, %c0_48, %c28], %25 {strides = array<i32>} : memref<8x8x72xf32, #tpu.memory_space<vmem>>, vector<8x8x4xf32>,
    %c2_49 = arith.constant 2 : index
    %c2_50 = arith.constant 2 : index
    %c0_51 = arith.constant 0 : index
    %27 = vector.load %arg15[%c2_49, %c2_50, %c0_51] : memref<10x10x8xf32, #tpu.memory_space<vmem>>, vector<8x8x4xf32>
    %c0_52 = arith.constant 0 : index
    %c0_53 = arith.constant 0 : index
    %c32 = arith.constant 32 : index
    %28 = vector.load %arg16[%c0_52, %c0_53, %c32] : memref<8x8x72xf32, #tpu.memory_space<vmem>>, vector<8x8x4xf32>
    tpu.vector_store %arg16[%c0_52, %c0_53, %c32], %27 {strides = array<i32>} : memref<8x8x72xf32, #tpu.memory_space<vmem>>, vector<8x8x4xf32>,
    %c0_54 = arith.constant 0 : index
    %c0_55 = arith.constant 0 : index
    %c0_56 = arith.constant 0 : index
    %29 = vector.load %arg16[%c0_54, %c0_55, %c0_56] : memref<8x8x72xf32, #tpu.memory_space<vmem>>, vector<8x8x36xf32>
    %30 = vector.shape_cast %29 : vector<8x8x36xf32> to vector<64x36xf32>
    %31 = arith.truncf %30 : vector<64x36xf32> to vector<64x36xbf16>
    %c0_57 = arith.constant 0 : index
    %c0_58 = arith.constant 0 : index
    %32 = vector.load %arg2[%c0_57, %c0_58] : memref<36x4xbf16, #tpu.memory_space<vmem>>, vector<36x4xbf16>
    %cst_59 = arith.constant dense<0.000000e+00> : vector<64x4xf32>
    %33 = tpu.matmul %31, %32, %cst_59 {dimension_numbers = #tpu.dot_dimension_numbers<[1], [0], [0], [1], [0, 0, 1, 1], [], []>} : vector<64x36xbf16>, vector<36x4xbf16>, vector<64x4xf32> -> vector<64x4xf32>
    %34 = vector.shape_cast %33 : vector<64x4xf32> to vector<1x64x4xf32>
    %cst_60 = arith.constant dense<0.000000e+00> : vector<1xf32>
    %35 = vector.multi_reduction <add>, %34, %cst_60 [1, 2] : vector<1x64x4xf32> to vector<1xf32>
    %36 = vector.shape_cast %35 : vector<1xf32> to vector<1x1x1xf32>
    %37 = vector.extract %36[0, 0, 0] : f32 from vector<1x1x1xf32>
    %cst_61 = arith.constant 3.906250e-03 : f32
    %38 = arith.mulf %37, %cst_61 : f32
    %39 = arith.mulf %33, %33 : vector<64x4xf32>
    %40 = vector.shape_cast %39 : vector<64x4xf32> to vector<1x64x4xf32>
    %cst_62 = arith.constant dense<0.000000e+00> : vector<1xf32>
    %41 = vector.multi_reduction <add>, %40, %cst_62 [1, 2] : vector<1x64x4xf32> to vector<1xf32>
    %42 = vector.shape_cast %41 : vector<1xf32> to vector<1x1x1xf32>
    %43 = vector.extract %42[0, 0, 0] : f32 from vector<1x1x1xf32>
    %cst_63 = arith.constant 3.906250e-03 : f32
    %44 = arith.mulf %43, %cst_63 : f32
    %45 = arith.mulf %38, %38 : f32
    %46 = arith.subf %44, %45 : f32
    %47 = vector.broadcast %38 : f32 to vector<64x4xf32>
    %48 = arith.subf %33, %47 : vector<64x4xf32>
    %cst_64 = arith.constant 9.99999974E-6 : f32
    %49 = arith.addf %46, %cst_64 : f32
    %50 = math.rsqrt %49 : f32
    %51 = vector.broadcast %50 : f32 to vector<64x4xf32>
    %52 = arith.mulf %48, %51 : vector<64x4xf32>
    %c0_65 = arith.constant 0 : index
    %c0_66 = arith.constant 0 : index
    %53 = vector.load %arg3[%c0_65, %c0_66] : memref<1x4xf32, #tpu.memory_space<vmem>>, vector<1x4xf32>
    %54 = vector.broadcast %53 : vector<1x4xf32> to vector<64x4xf32>
    %55 = arith.mulf %52, %54 : vector<64x4xf32>
    %c0_67 = arith.constant 0 : index
    %c0_68 = arith.constant 0 : index
    %56 = vector.load %arg4[%c0_67, %c0_68] : memref<1x4xf32, #tpu.memory_space<vmem>>, vector<1x4xf32>
    %57 = vector.broadcast %56 : vector<1x4xf32> to vector<64x4xf32>
    %58 = arith.addf %55, %57 : vector<64x4xf32>
    %59 = arith.mulf %58, %58 : vector<64x4xf32>
    %60 = arith.mulf %58, %59 : vector<64x4xf32>
    %cst_69 = arith.constant 4.471500e-02 : f32
    %61 = vector.broadcast %cst_69 : f32 to vector<64x4xf32>
    %62 = arith.mulf %61, %60 : vector<64x4xf32>
    %63 = arith.addf %58, %62 : vector<64x4xf32>
    %cst_70 = arith.constant 0.797884583 : f32
    %64 = vector.broadcast %cst_70 : f32 to vector<64x4xf32>
    %65 = arith.mulf %64, %63 : vector<64x4xf32>
    %66 = math.tanh %65 : vector<64x4xf32>
    %cst_71 = arith.constant 1.000000e+00 : f32
    %67 = vector.broadcast %cst_71 : f32 to vector<64x4xf32>
    %68 = arith.addf %67, %66 : vector<64x4xf32>
    %cst_72 = arith.constant 5.000000e-01 : f32
    %69 = vector.broadcast %cst_72 : f32 to vector<64x4xf32>
    %70 = arith.mulf %69, %68 : vector<64x4xf32>
    %71 = arith.mulf %58, %70 : vector<64x4xf32>
    %72 = vector.shape_cast %71 : vector<64x4xf32> to vector<8x8x4xf32>
    %c1_73 = arith.constant 1 : index
    %c1_74 = arith.constant 1 : index
    %c0_75 = arith.constant 0 : index
    %73 = vector.load %arg15[%c1_73, %c1_74, %c0_75] : memref<10x10x8xf32, #tpu.memory_space<vmem>>, vector<8x8x4xf32>
    tpu.vector_store %arg15[%c1_73, %c1_74, %c0_75], %72 {strides = array<i32>} : memref<10x10x8xf32, #tpu.memory_space<vmem>>, vector<8x8x4xf32>,
    %c0_76 = arith.constant 0 : index
    %c0_77 = arith.constant 0 : index
    %c0_78 = arith.constant 0 : index
    %74 = vector.load %arg15[%c0_76, %c0_77, %c0_78] : memref<10x10x8xf32, #tpu.memory_space<vmem>>, vector<8x8x4xf32>
    %c0_79 = arith.constant 0 : index
    %c0_80 = arith.constant 0 : index
    %c0_81 = arith.constant 0 : index
    %75 = vector.load %arg16[%c0_79, %c0_80, %c0_81] : memref<8x8x72xf32, #tpu.memory_space<vmem>>, vector<8x8x4xf32>
    tpu.vector_store %arg16[%c0_79, %c0_80, %c0_81], %74 {strides = array<i32>} : memref<8x8x72xf32, #tpu.memory_space<vmem>>, vector<8x8x4xf32>,
    %c0_82 = arith.constant 0 : index
    %c1_83 = arith.constant 1 : index
    %c0_84 = arith.constant 0 : index
    %76 = vector.load %arg15[%c0_82, %c1_83, %c0_84] : memref<10x10x8xf32, #tpu.memory_space<vmem>>, vector<8x8x4xf32>
    %c0_85 = arith.constant 0 : index
    %c0_86 = arith.constant 0 : index
    %c4_87 = arith.constant 4 : index
    %77 = vector.load %arg16[%c0_85, %c0_86, %c4_87] : memref<8x8x72xf32, #tpu.memory_space<vmem>>, vector<8x8x4xf32>
    tpu.vector_store %arg16[%c0_85, %c0_86, %c4_87], %76 {strides = array<i32>} : memref<8x8x72xf32, #tpu.memory_space<vmem>>, vector<8x8x4xf32>,
    %c0_88 = arith.constant 0 : index
    %c2_89 = arith.constant 2 : index
    %c0_90 = arith.constant 0 : index
    %78 = vector.load %arg15[%c0_88, %c2_89, %c0_90] : memref<10x10x8xf32, #tpu.memory_space<vmem>>, vector<8x8x4xf32>
    %c0_91 = arith.constant 0 : index
    %c0_92 = arith.constant 0 : index
    %c8_93 = arith.constant 8 : index
    %79 = vector.load %arg16[%c0_91, %c0_92, %c8_93] : memref<8x8x72xf32, #tpu.memory_space<vmem>>, vector<8x8x4xf32>
    tpu.vector_store %arg16[%c0_91, %c0_92, %c8_93], %78 {strides = array<i32>} : memref<8x8x72xf32, #tpu.memory_space<vmem>>, vector<8x8x4xf32>,
    %c1_94 = arith.constant 1 : index
    %c0_95 = arith.constant 0 : index
    %c0_96 = arith.constant 0 : index
    %80 = vector.load %arg15[%c1_94, %c0_95, %c0_96] : memref<10x10x8xf32, #tpu.memory_space<vmem>>, vector<8x8x4xf32>
    %c0_97 = arith.constant 0 : index
    %c0_98 = arith.constant 0 : index
    %c12_99 = arith.constant 12 : index
    %81 = vector.load %arg16[%c0_97, %c0_98, %c12_99] : memref<8x8x72xf32, #tpu.memory_space<vmem>>, vector<8x8x4xf32>
    tpu.vector_store %arg16[%c0_97, %c0_98, %c12_99], %80 {strides = array<i32>} : memref<8x8x72xf32, #tpu.memory_space<vmem>>, vector<8x8x4xf32>,
    %c1_100 = arith.constant 1 : index
    %c1_101 = arith.constant 1 : index
    %c0_102 = arith.constant 0 : index
    %82 = vector.load %arg15[%c1_100, %c1_101, %c0_102] : memref<10x10x8xf32, #tpu.memory_space<vmem>>, vector<8x8x4xf32>
    %c0_103 = arith.constant 0 : index
    %c0_104 = arith.constant 0 : index
    %c16_105 = arith.constant 16 : index
    %83 = vector.load %arg16[%c0_103, %c0_104, %c16_105] : memref<8x8x72xf32, #tpu.memory_space<vmem>>, vector<8x8x4xf32>
    tpu.vector_store %arg16[%c0_103, %c0_104, %c16_105], %82 {strides = array<i32>} : memref<8x8x72xf32, #tpu.memory_space<vmem>>, vector<8x8x4xf32>,
    %c1_106 = arith.constant 1 : index
    %c2_107 = arith.constant 2 : index
    %c0_108 = arith.constant 0 : index
    %84 = vector.load %arg15[%c1_106, %c2_107, %c0_108] : memref<10x10x8xf32, #tpu.memory_space<vmem>>, vector<8x8x4xf32>
    %c0_109 = arith.constant 0 : index
    %c0_110 = arith.constant 0 : index
    %c20_111 = arith.constant 20 : index
    %85 = vector.load %arg16[%c0_109, %c0_110, %c20_111] : memref<8x8x72xf32, #tpu.memory_space<vmem>>, vector<8x8x4xf32>
    tpu.vector_store %arg16[%c0_109, %c0_110, %c20_111], %84 {strides = array<i32>} : memref<8x8x72xf32, #tpu.memory_space<vmem>>, vector<8x8x4xf32>,
    %c2_112 = arith.constant 2 : index
    %c0_113 = arith.constant 0 : index
    %c0_114 = arith.constant 0 : index
    %86 = vector.load %arg15[%c2_112, %c0_113, %c0_114] : memref<10x10x8xf32, #tpu.memory_space<vmem>>, vector<8x8x4xf32>
    %c0_115 = arith.constant 0 : index
    %c0_116 = arith.constant 0 : index
    %c24_117 = arith.constant 24 : index
    %87 = vector.load %arg16[%c0_115, %c0_116, %c24_117] : memref<8x8x72xf32, #tpu.memory_space<vmem>>, vector<8x8x4xf32>
    tpu.vector_store %arg16[%c0_115, %c0_116, %c24_117], %86 {strides = array<i32>} : memref<8x8x72xf32, #tpu.memory_space<vmem>>, vector<8x8x4xf32>,
    %c2_118 = arith.constant 2 : index
    %c1_119 = arith.constant 1 : index
    %c0_120 = arith.constant 0 : index
    %88 = vector.load %arg15[%c2_118, %c1_119, %c0_120] : memref<10x10x8xf32, #tpu.memory_space<vmem>>, vector<8x8x4xf32>
    %c0_121 = arith.constant 0 : index
    %c0_122 = arith.constant 0 : index
    %c28_123 = arith.constant 28 : index
    %89 = vector.load %arg16[%c0_121, %c0_122, %c28_123] : memref<8x8x72xf32, #tpu.memory_space<vmem>>, vector<8x8x4xf32>
    tpu.vector_store %arg16[%c0_121, %c0_122, %c28_123], %88 {strides = array<i32>} : memref<8x8x72xf32, #tpu.memory_space<vmem>>, vector<8x8x4xf32>,
    %c2_124 = arith.constant 2 : index
    %c2_125 = arith.constant 2 : index
    %c0_126 = arith.constant 0 : index
    %90 = vector.load %arg15[%c2_124, %c2_125, %c0_126] : memref<10x10x8xf32, #tpu.memory_space<vmem>>, vector<8x8x4xf32>
    %c0_127 = arith.constant 0 : index
    %c0_128 = arith.constant 0 : index
    %c32_129 = arith.constant 32 : index
    %91 = vector.load %arg16[%c0_127, %c0_128, %c32_129] : memref<8x8x72xf32, #tpu.memory_space<vmem>>, vector<8x8x4xf32>
    tpu.vector_store %arg16[%c0_127, %c0_128, %c32_129], %90 {strides = array<i32>} : memref<8x8x72xf32, #tpu.memory_space<vmem>>, vector<8x8x4xf32>,
    %c0_130 = arith.constant 0 : index
    %c0_131 = arith.constant 0 : index
    %c0_132 = arith.constant 0 : index
    %92 = vector.load %arg16[%c0_130, %c0_131, %c0_132] : memref<8x8x72xf32, #tpu.memory_space<vmem>>, vector<8x8x36xf32>
    %93 = vector.shape_cast %92 : vector<8x8x36xf32> to vector<64x36xf32>
    %94 = arith.truncf %93 : vector<64x36xf32> to vector<64x36xbf16>
    %c0_133 = arith.constant 0 : index
    %c0_134 = arith.constant 0 : index
    %95 = vector.load %arg5[%c0_133, %c0_134] : memref<36x4xbf16, #tpu.memory_space<vmem>>, vector<36x4xbf16>
    %cst_135 = arith.constant dense<0.000000e+00> : vector<64x4xf32>
    %96 = tpu.matmul %94, %95, %cst_135 {dimension_numbers = #tpu.dot_dimension_numbers<[1], [0], [0], [1], [0, 0, 1, 1], [], []>} : vector<64x36xbf16>, vector<36x4xbf16>, vector<64x4xf32> -> vector<64x4xf32>
    %97 = vector.shape_cast %96 : vector<64x4xf32> to vector<1x64x4xf32>
    %cst_136 = arith.constant dense<0.000000e+00> : vector<1xf32>
    %98 = vector.multi_reduction <add>, %97, %cst_136 [1, 2] : vector<1x64x4xf32> to vector<1xf32>
    %99 = vector.shape_cast %98 : vector<1xf32> to vector<1x1x1xf32>
    %100 = vector.extract %99[0, 0, 0] : f32 from vector<1x1x1xf32>
    %cst_137 = arith.constant 3.906250e-03 : f32
    %101 = arith.mulf %100, %cst_137 : f32
    %102 = arith.mulf %96, %96 : vector<64x4xf32>
    %103 = vector.shape_cast %102 : vector<64x4xf32> to vector<1x64x4xf32>
    %cst_138 = arith.constant dense<0.000000e+00> : vector<1xf32>
    %104 = vector.multi_reduction <add>, %103, %cst_138 [1, 2] : vector<1x64x4xf32> to vector<1xf32>
    %105 = vector.shape_cast %104 : vector<1xf32> to vector<1x1x1xf32>
    %106 = vector.extract %105[0, 0, 0] : f32 from vector<1x1x1xf32>
    %cst_139 = arith.constant 3.906250e-03 : f32
    %107 = arith.mulf %106, %cst_139 : f32
    %108 = arith.mulf %101, %101 : f32
    %109 = arith.subf %107, %108 : f32
    %110 = vector.broadcast %101 : f32 to vector<64x4xf32>
    %111 = arith.subf %96, %110 : vector<64x4xf32>
    %cst_140 = arith.constant 9.99999974E-6 : f32
    %112 = arith.addf %109, %cst_140 : f32
    %113 = math.rsqrt %112 : f32
    %114 = vector.broadcast %113 : f32 to vector<64x4xf32>
    %115 = arith.mulf %111, %114 : vector<64x4xf32>
    %c0_141 = arith.constant 0 : index
    %c0_142 = arith.constant 0 : index
    %116 = vector.load %arg6[%c0_141, %c0_142] : memref<1x4xf32, #tpu.memory_space<vmem>>, vector<1x4xf32>
    %117 = vector.broadcast %116 : vector<1x4xf32> to vector<64x4xf32>
    %118 = arith.mulf %115, %117 : vector<64x4xf32>
    %c0_143 = arith.constant 0 : index
    %c0_144 = arith.constant 0 : index
    %119 = vector.load %arg7[%c0_143, %c0_144] : memref<1x4xf32, #tpu.memory_space<vmem>>, vector<1x4xf32>
    %120 = vector.broadcast %119 : vector<1x4xf32> to vector<64x4xf32>
    %121 = arith.addf %118, %120 : vector<64x4xf32>
    %122 = arith.addf %9, %121 : vector<64x4xf32>
    %123 = arith.mulf %122, %122 : vector<64x4xf32>
    %124 = arith.mulf %122, %123 : vector<64x4xf32>
    %cst_145 = arith.constant 4.471500e-02 : f32
    %125 = vector.broadcast %cst_145 : f32 to vector<64x4xf32>
    %126 = arith.mulf %125, %124 : vector<64x4xf32>
    %127 = arith.addf %122, %126 : vector<64x4xf32>
    %cst_146 = arith.constant 0.797884583 : f32
    %128 = vector.broadcast %cst_146 : f32 to vector<64x4xf32>
    %129 = arith.mulf %128, %127 : vector<64x4xf32>
    %130 = math.tanh %129 : vector<64x4xf32>
    %cst_147 = arith.constant 1.000000e+00 : f32
    %131 = vector.broadcast %cst_147 : f32 to vector<64x4xf32>
    %132 = arith.addf %131, %130 : vector<64x4xf32>
    %cst_148 = arith.constant 5.000000e-01 : f32
    %133 = vector.broadcast %cst_148 : f32 to vector<64x4xf32>
    %134 = arith.mulf %133, %132 : vector<64x4xf32>
    %135 = arith.mulf %122, %134 : vector<64x4xf32>
    %136 = vector.shape_cast %135 : vector<64x4xf32> to vector<8x8x4xf32>
    %c1_149 = arith.constant 1 : index
    %c1_150 = arith.constant 1 : index
    %c0_151 = arith.constant 0 : index
    %137 = vector.load %arg15[%c1_149, %c1_150, %c0_151] : memref<10x10x8xf32, #tpu.memory_space<vmem>>, vector<8x8x4xf32>
    tpu.vector_store %arg15[%c1_149, %c1_150, %c0_151], %136 {strides = array<i32>} : memref<10x10x8xf32, #tpu.memory_space<vmem>>, vector<8x8x4xf32>,
    %c0_152 = arith.constant 0 : index
    %c0_153 = arith.constant 0 : index
    %c0_154 = arith.constant 0 : index
    %138 = vector.load %arg15[%c0_152, %c0_153, %c0_154] : memref<10x10x8xf32, #tpu.memory_space<vmem>>, vector<8x8x4xf32>
    %c0_155 = arith.constant 0 : index
    %c0_156 = arith.constant 0 : index
    %c0_157 = arith.constant 0 : index
    %139 = vector.load %arg16[%c0_155, %c0_156, %c0_157] : memref<8x8x72xf32, #tpu.memory_space<vmem>>, vector<8x8x4xf32>
    tpu.vector_store %arg16[%c0_155, %c0_156, %c0_157], %138 {strides = array<i32>} : memref<8x8x72xf32, #tpu.memory_space<vmem>>, vector<8x8x4xf32>,
    %c0_158 = arith.constant 0 : index
    %c1_159 = arith.constant 1 : index
    %c0_160 = arith.constant 0 : index
    %140 = vector.load %arg15[%c0_158, %c1_159, %c0_160] : memref<10x10x8xf32, #tpu.memory_space<vmem>>, vector<8x8x4xf32>
    %c0_161 = arith.constant 0 : index
    %c0_162 = arith.constant 0 : index
    %c4_163 = arith.constant 4 : index
    %141 = vector.load %arg16[%c0_161, %c0_162, %c4_163] : memref<8x8x72xf32, #tpu.memory_space<vmem>>, vector<8x8x4xf32>
    tpu.vector_store %arg16[%c0_161, %c0_162, %c4_163], %140 {strides = array<i32>} : memref<8x8x72xf32, #tpu.memory_space<vmem>>, vector<8x8x4xf32>,
    %c0_164 = arith.constant 0 : index
    %c2_165 = arith.constant 2 : index
    %c0_166 = arith.constant 0 : index
    %142 = vector.load %arg15[%c0_164, %c2_165, %c0_166] : memref<10x10x8xf32, #tpu.memory_space<vmem>>, vector<8x8x4xf32>
    %c0_167 = arith.constant 0 : index
    %c0_168 = arith.constant 0 : index
    %c8_169 = arith.constant 8 : index
    %143 = vector.load %arg16[%c0_167, %c0_168, %c8_169] : memref<8x8x72xf32, #tpu.memory_space<vmem>>, vector<8x8x4xf32>
    tpu.vector_store %arg16[%c0_167, %c0_168, %c8_169], %142 {strides = array<i32>} : memref<8x8x72xf32, #tpu.memory_space<vmem>>, vector<8x8x4xf32>,
    %c1_170 = arith.constant 1 : index
    %c0_171 = arith.constant 0 : index
    %c0_172 = arith.constant 0 : index
    %144 = vector.load %arg15[%c1_170, %c0_171, %c0_172] : memref<10x10x8xf32, #tpu.memory_space<vmem>>, vector<8x8x4xf32>
    %c0_173 = arith.constant 0 : index
    %c0_174 = arith.constant 0 : index
    %c12_175 = arith.constant 12 : index
    %145 = vector.load %arg16[%c0_173, %c0_174, %c12_175] : memref<8x8x72xf32, #tpu.memory_space<vmem>>, vector<8x8x4xf32>
    tpu.vector_store %arg16[%c0_173, %c0_174, %c12_175], %144 {strides = array<i32>} : memref<8x8x72xf32, #tpu.memory_space<vmem>>, vector<8x8x4xf32>,
    %c1_176 = arith.constant 1 : index
    %c1_177 = arith.constant 1 : index
    %c0_178 = arith.constant 0 : index
    %146 = vector.load %arg15[%c1_176, %c1_177, %c0_178] : memref<10x10x8xf32, #tpu.memory_space<vmem>>, vector<8x8x4xf32>
    %c0_179 = arith.constant 0 : index
    %c0_180 = arith.constant 0 : index
    %c16_181 = arith.constant 16 : index
    %147 = vector.load %arg16[%c0_179, %c0_180, %c16_181] : memref<8x8x72xf32, #tpu.memory_space<vmem>>, vector<8x8x4xf32>
    tpu.vector_store %arg16[%c0_179, %c0_180, %c16_181], %146 {strides = array<i32>} : memref<8x8x72xf32, #tpu.memory_space<vmem>>, vector<8x8x4xf32>,
    %c1_182 = arith.constant 1 : index
    %c2_183 = arith.constant 2 : index
    %c0_184 = arith.constant 0 : index
    %148 = vector.load %arg15[%c1_182, %c2_183, %c0_184] : memref<10x10x8xf32, #tpu.memory_space<vmem>>, vector<8x8x4xf32>
    %c0_185 = arith.constant 0 : index
    %c0_186 = arith.constant 0 : index
    %c20_187 = arith.constant 20 : index
    %149 = vector.load %arg16[%c0_185, %c0_186, %c20_187] : memref<8x8x72xf32, #tpu.memory_space<vmem>>, vector<8x8x4xf32>
    tpu.vector_store %arg16[%c0_185, %c0_186, %c20_187], %148 {strides = array<i32>} : memref<8x8x72xf32, #tpu.memory_space<vmem>>, vector<8x8x4xf32>,
    %c2_188 = arith.constant 2 : index
    %c0_189 = arith.constant 0 : index
    %c0_190 = arith.constant 0 : index
    %150 = vector.load %arg15[%c2_188, %c0_189, %c0_190] : memref<10x10x8xf32, #tpu.memory_space<vmem>>, vector<8x8x4xf32>
    %c0_191 = arith.constant 0 : index
    %c0_192 = arith.constant 0 : index
    %c24_193 = arith.constant 24 : index
    %151 = vector.load %arg16[%c0_191, %c0_192, %c24_193] : memref<8x8x72xf32, #tpu.memory_space<vmem>>, vector<8x8x4xf32>
    tpu.vector_store %arg16[%c0_191, %c0_192, %c24_193], %150 {strides = array<i32>} : memref<8x8x72xf32, #tpu.memory_space<vmem>>, vector<8x8x4xf32>,
    %c2_194 = arith.constant 2 : index
    %c1_195 = arith.constant 1 : index
    %c0_196 = arith.constant 0 : index
    %152 = vector.load %arg15[%c2_194, %c1_195, %c0_196] : memref<10x10x8xf32, #tpu.memory_space<vmem>>, vector<8x8x4xf32>
    %c0_197 = arith.constant 0 : index
    %c0_198 = arith.constant 0 : index
    %c28_199 = arith.constant 28 : index
    %153 = vector.load %arg16[%c0_197, %c0_198, %c28_199] : memref<8x8x72xf32, #tpu.memory_space<vmem>>, vector<8x8x4xf32>
    tpu.vector_store %arg16[%c0_197, %c0_198, %c28_199], %152 {strides = array<i32>} : memref<8x8x72xf32, #tpu.memory_space<vmem>>, vector<8x8x4xf32>,
    %c2_200 = arith.constant 2 : index
    %c2_201 = arith.constant 2 : index
    %c0_202 = arith.constant 0 : index
    %154 = vector.load %arg15[%c2_200, %c2_201, %c0_202] : memref<10x10x8xf32, #tpu.memory_space<vmem>>, vector<8x8x4xf32>
    %c0_203 = arith.constant 0 : index
    %c0_204 = arith.constant 0 : index
    %c32_205 = arith.constant 32 : index
    %155 = vector.load %arg16[%c0_203, %c0_204, %c32_205] : memref<8x8x72xf32, #tpu.memory_space<vmem>>, vector<8x8x4xf32>
    tpu.vector_store %arg16[%c0_203, %c0_204, %c32_205], %154 {strides = array<i32>} : memref<8x8x72xf32, #tpu.memory_space<vmem>>, vector<8x8x4xf32>,
    %c0_206 = arith.constant 0 : index
    %c0_207 = arith.constant 0 : index
    %c0_208 = arith.constant 0 : index
    %156 = vector.load %arg16[%c0_206, %c0_207, %c0_208] : memref<8x8x72xf32, #tpu.memory_space<vmem>>, vector<8x8x36xf32>
    %157 = vector.shape_cast %156 : vector<8x8x36xf32> to vector<64x36xf32>
    %158 = arith.truncf %157 : vector<64x36xf32> to vector<64x36xbf16>
    %c0_209 = arith.constant 0 : index
    %c0_210 = arith.constant 0 : index
    %159 = vector.load %arg8[%c0_209, %c0_210] : memref<36x8xbf16, #tpu.memory_space<vmem>>, vector<36x8xbf16>
    %cst_211 = arith.constant dense<0.000000e+00> : vector<64x8xf32>
    %160 = tpu.matmul %158, %159, %cst_211 {dimension_numbers = #tpu.dot_dimension_numbers<[1], [0], [0], [1], [0, 0, 1, 1], [], []>} : vector<64x36xbf16>, vector<36x8xbf16>, vector<64x8xf32> -> vector<64x8xf32>
    %161 = vector.shape_cast %160 : vector<64x8xf32> to vector<1x64x8xf32>
    %cst_212 = arith.constant dense<0.000000e+00> : vector<1xf32>
    %162 = vector.multi_reduction <add>, %161, %cst_212 [1, 2] : vector<1x64x8xf32> to vector<1xf32>
    %163 = vector.shape_cast %162 : vector<1xf32> to vector<1x1x1xf32>
    %164 = vector.extract %163[0, 0, 0] : f32 from vector<1x1x1xf32>
    %cst_213 = arith.constant 0.001953125 : f32
    %165 = arith.mulf %164, %cst_213 : f32
    %166 = arith.mulf %160, %160 : vector<64x8xf32>
    %167 = vector.shape_cast %166 : vector<64x8xf32> to vector<1x64x8xf32>
    %cst_214 = arith.constant dense<0.000000e+00> : vector<1xf32>
    %168 = vector.multi_reduction <add>, %167, %cst_214 [1, 2] : vector<1x64x8xf32> to vector<1xf32>
    %169 = vector.shape_cast %168 : vector<1xf32> to vector<1x1x1xf32>
    %170 = vector.extract %169[0, 0, 0] : f32 from vector<1x1x1xf32>
    %cst_215 = arith.constant 0.001953125 : f32
    %171 = arith.mulf %170, %cst_215 : f32
    %172 = arith.mulf %165, %165 : f32
    %173 = arith.subf %171, %172 : f32
    %174 = vector.broadcast %165 : f32 to vector<64x8xf32>
    %175 = arith.subf %160, %174 : vector<64x8xf32>
    %cst_216 = arith.constant 9.99999974E-6 : f32
    %176 = arith.addf %173, %cst_216 : f32
    %177 = math.rsqrt %176 : f32
    %178 = vector.broadcast %177 : f32 to vector<64x8xf32>
    %179 = arith.mulf %175, %178 : vector<64x8xf32>
    %c0_217 = arith.constant 0 : index
    %c0_218 = arith.constant 0 : index
    %180 = vector.load %arg9[%c0_217, %c0_218] : memref<1x8xf32, #tpu.memory_space<vmem>>, vector<1x8xf32>
    %181 = vector.broadcast %180 : vector<1x8xf32> to vector<64x8xf32>
    %182 = arith.mulf %179, %181 : vector<64x8xf32>
    %c0_219 = arith.constant 0 : index
    %c0_220 = arith.constant 0 : index
    %183 = vector.load %arg10[%c0_219, %c0_220] : memref<1x8xf32, #tpu.memory_space<vmem>>, vector<1x8xf32>
    %184 = vector.broadcast %183 : vector<1x8xf32> to vector<64x8xf32>
    %185 = arith.addf %182, %184 : vector<64x8xf32>
    %186 = arith.mulf %185, %185 : vector<64x8xf32>
    %187 = arith.mulf %185, %186 : vector<64x8xf32>
    %cst_221 = arith.constant 4.471500e-02 : f32
    %188 = vector.broadcast %cst_221 : f32 to vector<64x8xf32>
    %189 = arith.mulf %188, %187 : vector<64x8xf32>
    %190 = arith.addf %185, %189 : vector<64x8xf32>
    %cst_222 = arith.constant 0.797884583 : f32
    %191 = vector.broadcast %cst_222 : f32 to vector<64x8xf32>
    %192 = arith.mulf %191, %190 : vector<64x8xf32>
    %193 = math.tanh %192 : vector<64x8xf32>
    %cst_223 = arith.constant 1.000000e+00 : f32
    %194 = vector.broadcast %cst_223 : f32 to vector<64x8xf32>
    %195 = arith.addf %194, %193 : vector<64x8xf32>
    %cst_224 = arith.constant 5.000000e-01 : f32
    %196 = vector.broadcast %cst_224 : f32 to vector<64x8xf32>
    %197 = arith.mulf %196, %195 : vector<64x8xf32>
    %198 = arith.mulf %185, %197 : vector<64x8xf32>
    %199 = vector.shape_cast %198 : vector<64x8xf32> to vector<8x8x8xf32>
    %c1_225 = arith.constant 1 : index
    %c1_226 = arith.constant 1 : index
    %c0_227 = arith.constant 0 : index
    %200 = vector.load %arg15[%c1_225, %c1_226, %c0_227] : memref<10x10x8xf32, #tpu.memory_space<vmem>>, vector<8x8x8xf32>
    tpu.vector_store %arg15[%c1_225, %c1_226, %c0_227], %199 {strides = array<i32>} : memref<10x10x8xf32, #tpu.memory_space<vmem>>, vector<8x8x8xf32>,
    %c0_228 = arith.constant 0 : index
    %c0_229 = arith.constant 0 : index
    %c0_230 = arith.constant 0 : index
    %201 = vector.load %arg15[%c0_228, %c0_229, %c0_230] : memref<10x10x8xf32, #tpu.memory_space<vmem>>, vector<8x8x8xf32>
    %c0_231 = arith.constant 0 : index
    %c0_232 = arith.constant 0 : index
    %c0_233 = arith.constant 0 : index
    %202 = vector.load %arg16[%c0_231, %c0_232, %c0_233] : memref<8x8x72xf32, #tpu.memory_space<vmem>>, vector<8x8x8xf32>
    tpu.vector_store %arg16[%c0_231, %c0_232, %c0_233], %201 {strides = array<i32>} : memref<8x8x72xf32, #tpu.memory_space<vmem>>, vector<8x8x8xf32>,
    %c0_234 = arith.constant 0 : index
    %c1_235 = arith.constant 1 : index
    %c0_236 = arith.constant 0 : index
    %203 = vector.load %arg15[%c0_234, %c1_235, %c0_236] : memref<10x10x8xf32, #tpu.memory_space<vmem>>, vector<8x8x8xf32>
    %c0_237 = arith.constant 0 : index
    %c0_238 = arith.constant 0 : index
    %c8_239 = arith.constant 8 : index
    %204 = vector.load %arg16[%c0_237, %c0_238, %c8_239] : memref<8x8x72xf32, #tpu.memory_space<vmem>>, vector<8x8x8xf32>
    tpu.vector_store %arg16[%c0_237, %c0_238, %c8_239], %203 {strides = array<i32>} : memref<8x8x72xf32, #tpu.memory_space<vmem>>, vector<8x8x8xf32>,
    %c0_240 = arith.constant 0 : index
    %c2_241 = arith.constant 2 : index
    %c0_242 = arith.constant 0 : index
    %205 = vector.load %arg15[%c0_240, %c2_241, %c0_242] : memref<10x10x8xf32, #tpu.memory_space<vmem>>, vector<8x8x8xf32>
    %c0_243 = arith.constant 0 : index
    %c0_244 = arith.constant 0 : index
    %c16_245 = arith.constant 16 : index
    %206 = vector.load %arg16[%c0_243, %c0_244, %c16_245] : memref<8x8x72xf32, #tpu.memory_space<vmem>>, vector<8x8x8xf32>
    tpu.vector_store %arg16[%c0_243, %c0_244, %c16_245], %205 {strides = array<i32>} : memref<8x8x72xf32, #tpu.memory_space<vmem>>, vector<8x8x8xf32>,
    %c1_246 = arith.constant 1 : index
    %c0_247 = arith.constant 0 : index
    %c0_248 = arith.constant 0 : index
    %207 = vector.load %arg15[%c1_246, %c0_247, %c0_248] : memref<10x10x8xf32, #tpu.memory_space<vmem>>, vector<8x8x8xf32>
    %c0_249 = arith.constant 0 : index
    %c0_250 = arith.constant 0 : index
    %c24_251 = arith.constant 24 : index
    %208 = vector.load %arg16[%c0_249, %c0_250, %c24_251] : memref<8x8x72xf32, #tpu.memory_space<vmem>>, vector<8x8x8xf32>
    tpu.vector_store %arg16[%c0_249, %c0_250, %c24_251], %207 {strides = array<i32>} : memref<8x8x72xf32, #tpu.memory_space<vmem>>, vector<8x8x8xf32>,
    %c1_252 = arith.constant 1 : index
    %c1_253 = arith.constant 1 : index
    %c0_254 = arith.constant 0 : index
    %209 = vector.load %arg15[%c1_252, %c1_253, %c0_254] : memref<10x10x8xf32, #tpu.memory_space<vmem>>, vector<8x8x8xf32>
    %c0_255 = arith.constant 0 : index
    %c0_256 = arith.constant 0 : index
    %c32_257 = arith.constant 32 : index
    %210 = vector.load %arg16[%c0_255, %c0_256, %c32_257] : memref<8x8x72xf32, #tpu.memory_space<vmem>>, vector<8x8x8xf32>
    tpu.vector_store %arg16[%c0_255, %c0_256, %c32_257], %209 {strides = array<i32>} : memref<8x8x72xf32, #tpu.memory_space<vmem>>, vector<8x8x8xf32>,
    %c1_258 = arith.constant 1 : index
    %c2_259 = arith.constant 2 : index
    %c0_260 = arith.constant 0 : index
    %211 = vector.load %arg15[%c1_258, %c2_259, %c0_260] : memref<10x10x8xf32, #tpu.memory_space<vmem>>, vector<8x8x8xf32>
    %c0_261 = arith.constant 0 : index
    %c0_262 = arith.constant 0 : index
    %c40 = arith.constant 40 : index
    %212 = vector.load %arg16[%c0_261, %c0_262, %c40] : memref<8x8x72xf32, #tpu.memory_space<vmem>>, vector<8x8x8xf32>
    tpu.vector_store %arg16[%c0_261, %c0_262, %c40], %211 {strides = array<i32>} : memref<8x8x72xf32, #tpu.memory_space<vmem>>, vector<8x8x8xf32>,
    %c2_263 = arith.constant 2 : index
    %c0_264 = arith.constant 0 : index
    %c0_265 = arith.constant 0 : index
    %213 = vector.load %arg15[%c2_263, %c0_264, %c0_265] : memref<10x10x8xf32, #tpu.memory_space<vmem>>, vector<8x8x8xf32>
    %c0_266 = arith.constant 0 : index
    %c0_267 = arith.constant 0 : index
    %c48 = arith.constant 48 : index
    %214 = vector.load %arg16[%c0_266, %c0_267, %c48] : memref<8x8x72xf32, #tpu.memory_space<vmem>>, vector<8x8x8xf32>
    tpu.vector_store %arg16[%c0_266, %c0_267, %c48], %213 {strides = array<i32>} : memref<8x8x72xf32, #tpu.memory_space<vmem>>, vector<8x8x8xf32>,
    %c2_268 = arith.constant 2 : index
    %c1_269 = arith.constant 1 : index
    %c0_270 = arith.constant 0 : index
    %215 = vector.load %arg15[%c2_268, %c1_269, %c0_270] : memref<10x10x8xf32, #tpu.memory_space<vmem>>, vector<8x8x8xf32>
    %c0_271 = arith.constant 0 : index
    %c0_272 = arith.constant 0 : index
    %c56 = arith.constant 56 : index
    %216 = vector.load %arg16[%c0_271, %c0_272, %c56] : memref<8x8x72xf32, #tpu.memory_space<vmem>>, vector<8x8x8xf32>
    tpu.vector_store %arg16[%c0_271, %c0_272, %c56], %215 {strides = array<i32>} : memref<8x8x72xf32, #tpu.memory_space<vmem>>, vector<8x8x8xf32>,
    %c2_273 = arith.constant 2 : index
    %c2_274 = arith.constant 2 : index
    %c0_275 = arith.constant 0 : index
    %217 = vector.load %arg15[%c2_273, %c2_274, %c0_275] : memref<10x10x8xf32, #tpu.memory_space<vmem>>, vector<8x8x8xf32>
    %c0_276 = arith.constant 0 : index
    %c0_277 = arith.constant 0 : index
    %c64 = arith.constant 64 : index
    %218 = vector.load %arg16[%c0_276, %c0_277, %c64] : memref<8x8x72xf32, #tpu.memory_space<vmem>>, vector<8x8x8xf32>
    tpu.vector_store %arg16[%c0_276, %c0_277, %c64], %217 {strides = array<i32>} : memref<8x8x72xf32, #tpu.memory_space<vmem>>, vector<8x8x8xf32>,
    %c0_278 = arith.constant 0 : index
    %c0_279 = arith.constant 0 : index
    %c0_280 = arith.constant 0 : index
    %219 = vector.load %arg16[%c0_278, %c0_279, %c0_280] : memref<8x8x72xf32, #tpu.memory_space<vmem>>, vector<8x8x72xf32>
    %220 = vector.shape_cast %219 : vector<8x8x72xf32> to vector<64x72xf32>
    %221 = arith.truncf %220 : vector<64x72xf32> to vector<64x72xbf16>
    %c0_281 = arith.constant 0 : index
    %c0_282 = arith.constant 0 : index
    %222 = vector.load %arg11[%c0_281, %c0_282] : memref<72x8xbf16, #tpu.memory_space<vmem>>, vector<72x8xbf16>
    %cst_283 = arith.constant dense<0.000000e+00> : vector<64x8xf32>
    %223 = tpu.matmul %221, %222, %cst_283 {dimension_numbers = #tpu.dot_dimension_numbers<[1], [0], [0], [1], [0, 0, 1, 1], [], []>} : vector<64x72xbf16>, vector<72x8xbf16>, vector<64x8xf32> -> vector<64x8xf32>
    %224 = vector.shape_cast %223 : vector<64x8xf32> to vector<1x64x8xf32>
    %cst_284 = arith.constant dense<0.000000e+00> : vector<1xf32>
    %225 = vector.multi_reduction <add>, %224, %cst_284 [1, 2] : vector<1x64x8xf32> to vector<1xf32>
    %226 = vector.shape_cast %225 : vector<1xf32> to vector<1x1x1xf32>
    %227 = vector.extract %226[0, 0, 0] : f32 from vector<1x1x1xf32>
    %cst_285 = arith.constant 0.001953125 : f32
    %228 = arith.mulf %227, %cst_285 : f32
    %229 = arith.mulf %223, %223 : vector<64x8xf32>
    %230 = vector.shape_cast %229 : vector<64x8xf32> to vector<1x64x8xf32>
    %cst_286 = arith.constant dense<0.000000e+00> : vector<1xf32>
    %231 = vector.multi_reduction <add>, %230, %cst_286 [1, 2] : vector<1x64x8xf32> to vector<1xf32>
    %232 = vector.shape_cast %231 : vector<1xf32> to vector<1x1x1xf32>
    %233 = vector.extract %232[0, 0, 0] : f32 from vector<1x1x1xf32>
    %cst_287 = arith.constant 0.001953125 : f32
    %234 = arith.mulf %233, %cst_287 : f32
    %235 = arith.mulf %228, %228 : f32
    %236 = arith.subf %234, %235 : f32
    %237 = vector.broadcast %228 : f32 to vector<64x8xf32>
    %238 = arith.subf %223, %237 : vector<64x8xf32>
    %cst_288 = arith.constant 9.99999974E-6 : f32
    %239 = arith.addf %236, %cst_288 : f32
    %240 = math.rsqrt %239 : f32
    %241 = vector.broadcast %240 : f32 to vector<64x8xf32>
    %242 = arith.mulf %238, %241 : vector<64x8xf32>
    %c0_289 = arith.constant 0 : index
    %c0_290 = arith.constant 0 : index
    %243 = vector.load %arg12[%c0_289, %c0_290] : memref<1x8xf32, #tpu.memory_space<vmem>>, vector<1x8xf32>
    %244 = vector.broadcast %243 : vector<1x8xf32> to vector<64x8xf32>
    %245 = arith.mulf %242, %244 : vector<64x8xf32>
    %c0_291 = arith.constant 0 : index
    %c0_292 = arith.constant 0 : index
    %246 = vector.load %arg13[%c0_291, %c0_292] : memref<1x8xf32, #tpu.memory_space<vmem>>, vector<1x8xf32>
    %247 = vector.broadcast %246 : vector<1x8xf32> to vector<64x8xf32>
    %248 = arith.addf %245, %247 : vector<64x8xf32>
    %249 = tpu.transpose %248, [1, 0] : vector<64x8xf32> -> vector<8x64xf32>
    %c0_293 = arith.constant 0 : index
    %c0_294 = arith.constant 0 : index
    %c0_295 = arith.constant 0 : index
    %250 = vector.load %arg14[%c0_293, %c0_294, %c0_295] : memref<1x8x64xf32, #tpu.memory_space<vmem>>, vector<1x8x64xf32>
    %251 = vector.shape_cast %250 : vector<1x8x64xf32> to vector<8x64xf32>
    %252 = vector.shape_cast %249 : vector<8x64xf32> to vector<1x8x64xf32>
    tpu.vector_store %arg14[%c0_293, %c0_294, %c0_295], %252 {strides = array<i32>} : memref<1x8x64xf32, #tpu.memory_space<vmem>>, vector<1x8x64xf32>,
    return
  }
  func.func @transform_0(%arg0: i32) -> (i32, i32, i32, i32) {
    %c0_i32 = arith.constant 0 : i32
    %c0_i32_0 = arith.constant 0 : i32
    %c0_i32_1 = arith.constant 0 : i32
    %c0_i32_2 = arith.constant 0 : i32
    return %arg0, %c0_i32, %c0_i32_0, %c0_i32_1 : i32, i32, i32, i32
  }
  func.func @transform_1(%arg0: i32) -> (i32, i32) {
    %c0_i32 = arith.constant 0 : i32
    %c0_i32_0 = arith.constant 0 : i32
    %c0_i32_1 = arith.constant 0 : i32
    return %c0_i32, %c0_i32_0 : i32, i32
  }
  func.func @transform_2(%arg0: i32) -> (i32, i32) {
    %c0_i32 = arith.constant 0 : i32
    %c0_i32_0 = arith.constant 0 : i32
    %c0_i32_1 = arith.constant 0 : i32
    return %c0_i32, %c0_i32_0 : i32, i32
  }
  func.func @transform_3(%arg0: i32) -> (i32, i32) {
    %c0_i32 = arith.constant 0 : i32
    %c0_i32_0 = arith.constant 0 : i32
    %c0_i32_1 = arith.constant 0 : i32
    return %c0_i32, %c0_i32_0 : i32, i32
  }
  func.func @transform_4(%arg0: i32) -> (i32, i32) {
    %c0_i32 = arith.constant 0 : i32
    %c0_i32_0 = arith.constant 0 : i32
    %c0_i32_1 = arith.constant 0 : i32
    return %c0_i32, %c0_i32_0 : i32, i32
  }
  func.func @transform_5(%arg0: i32) -> (i32, i32) {
    %c0_i32 = arith.constant 0 : i32
    %c0_i32_0 = arith.constant 0 : i32
    %c0_i32_1 = arith.constant 0 : i32
    return %c0_i32, %c0_i32_0 : i32, i32
  }
  func.func @transform_6(%arg0: i32) -> (i32, i32) {
    %c0_i32 = arith.constant 0 : i32
    %c0_i32_0 = arith.constant 0 : i32
    %c0_i32_1 = arith.constant 0 : i32
    return %c0_i32, %c0_i32_0 : i32, i32
  }
  func.func @transform_7(%arg0: i32) -> (i32, i32) {
    %c0_i32 = arith.constant 0 : i32
    %c0_i32_0 = arith.constant 0 : i32
    %c0_i32_1 = arith.constant 0 : i32
    return %c0_i32, %c0_i32_0 : i32, i32
  }
  func.func @transform_8(%arg0: i32) -> (i32, i32) {
    %c0_i32 = arith.constant 0 : i32
    %c0_i32_0 = arith.constant 0 : i32
    %c0_i32_1 = arith.constant 0 : i32
    return %c0_i32, %c0_i32_0 : i32, i32
  }
  func.func @transform_9(%arg0: i32) -> (i32, i32) {
    %c0_i32 = arith.constant 0 : i32
    %c0_i32_0 = arith.constant 0 : i32
    %c0_i32_1 = arith.constant 0 : i32
    return %c0_i32, %c0_i32_0 : i32, i32
  }
  func.func @transform_10(%arg0: i32) -> (i32, i32) {
    %c0_i32 = arith.constant 0 : i32
    %c0_i32_0 = arith.constant 0 : i32
    %c0_i32_1 = arith.constant 0 : i32
    return %c0_i32, %c0_i32_0 : i32, i32
  }
  func.func @transform_11(%arg0: i32) -> (i32, i32) {
    %c0_i32 = arith.constant 0 : i32
    %c0_i32_0 = arith.constant 0 : i32
    %c0_i32_1 = arith.constant 0 : i32
    return %c0_i32, %c0_i32_0 : i32, i32
  }
  func.func @transform_12(%arg0: i32) -> (i32, i32) {
    %c0_i32 = arith.constant 0 : i32
    %c0_i32_0 = arith.constant 0 : i32
    %c0_i32_1 = arith.constant 0 : i32
    return %c0_i32, %c0_i32_0 : i32, i32
  }
  func.func @transform_13(%arg0: i32) -> (i32, i32, i32) {
    %c0_i32 = arith.constant 0 : i32
    %c0_i32_0 = arith.constant 0 : i32
    %c0_i32_1 = arith.constant 0 : i32
    return %arg0, %c0_i32, %c0_i32_0 : i32, i32, i32
  }
}

</mosaic_0001>

<bundles_post_ra>
// kernel: down_forward.1
= control target key start
LH: loop header
LB: loop body
LE: loop exit
PB: predicated region body
PF: predicated region fallthrough
CT: control target
= control target key end

     0   :  { %s3811_s25 = smov 0   ;;  %s5177_s0 = inlined_call_operand.vmem [shape: f32[2,16,8,8], index: 0, kind: input, shape index: {}]   ;;  %s5178_s1 = inlined_call_operand.vmem [shape: bf16[36,4], index: 1, kind: input, shape index: {}]   ;;  %s5179_s2 = inlined_call_operand.vmem [shape: f32[1,4], index: 2, kind: input, shape index: {}]   ;;  %s5180_s3 = inlined_call_operand.vmem [shape: f32[1,4], index: 3, kind: input, shape index: {}]   ;;  %s5181_s4 = inlined_call_operand.vmem [shape: bf16[36,4], index: 4, kind: input, shape index: {}]   ;;  %s5182_s5 = inlined_call_operand.vmem [shape: f32[1,4], index: 5, kind: input, shape index: {}]   ;;  %s5183_s6 = inlined_call_operand.vmem [shape: f32[1,4], index: 6, kind: input, shape index: {}]   ;;  %s5184_s7 = inlined_call_operand.vmem [shape: bf16[36,8], index: 7, kind: input, shape index: {}]   ;;  %s5185_s8 = inlined_call_operand.vmem [shape: f32[1,8], index: 8, kind: input, shape index: {}]   ;;  %s5186_s9 = inlined_call_operand.vmem [shape: f32[1,8], index: 9, kind: input, shape index: {}]   ;;  %s5187_s10 = inlined_call_operand.vmem [shape: bf16[72,8], index: 10, kind: input, shape index: {}]   ;;  %s5188_s11 = inlined_call_operand.vmem [shape: f32[1,8], index: 11, kind: input, shape index: {}]   ;;  %s5189_s12 = inlined_call_operand.vmem [shape: f32[1,8], index: 12, kind: input, shape index: {}]   ;;  %s5190_s13 = inlined_call_operand.vmem [shape: f32[2,8,64], index: 13, kind: output, shape index: {}]  }
   0x1 LB: > { %s3460_s26 = sadd.s32 4294967295, %s3725_s25   ;;  %p3464_p0 = scmp.ge.s32.totalorder %s3725_s25, 1  ;;  %s3725_s25 = sphi %s3811_s25, %s23_s25  }
   0x2   : > { %p387_p1 = scmp.lt.s32.totalorder %s3725_s25, 3 }
   0x4   : > { %p388_p2 = pnand %p3464_p0, %p387_p1 }
   0x5   : > { %p3819_p3 = scmp.lt.s32.totalorder (!%p388_p2), %s3460_s26, 1  ;;  %vm440_vm0 = vcmask (!%p388_p2), 64512   ;;  %vm442_vm1 = vcmask (!%p388_p2), 58368   ;;  %v3727_v0 = vmov (!%p388_p2), 0.0   ;;  %s3728_s15 = smov (!%p388_p2), 124   ;;  %vm558_vm2 = vcmask (!%p388_p2), 31744  }
   0x6   : > { %391 = sbr.rel (%p388_p2) target bundleno = 3377 (0xd31), region = 72  ;;  %446 = vst.msk [vmem:[#allocation2 + $0x20] sm:$0xff] (!%p388_p2), %vm440_vm0, %v3727_v0  ;;  %441 = vst.msk [vmem:[#allocation2] sm:$0xff] (!%p388_p2), %vm440_vm0, %v3727_v0  ;;  %s3729_s16 = smov (!%p388_p2), 4   ;;  %vm648_vm3 = vcmask (!%p388_p2), 64544   ;;  %vm697_vm4 = vcmask (!%p388_p2), 97344  }
   0x7   : > { %447 = vst.msk [vmem:[#allocation2 + $0x28] sm:$0x3] (!%p388_p2), %vm442_vm1, %v3727_v0  ;;  %443 = vst.msk [vmem:[#allocation2 + $0x8] sm:$0x3] (!%p388_p2), %vm442_vm1, %v3727_v0  ;;  %s3730_s17 = smov (!%p388_p2), 8   ;;  %s3731_s18 = smov (!%p388_p2), 12  }
   0x8   : > { %444 = vst.msk [vmem:[#allocation2 + $0x10] sm:$0xff] (!%p388_p2), %vm440_vm0, %v3727_v0  ;;  %448 = vst.msk [vmem:[#allocation2 + $0x30] sm:$0xff] (!%p388_p2), %vm440_vm0, %v3727_v0  ;;  %s3732_s19 = smov (!%p388_p2), 16   ;;  %s3733_s20 = smov (!%p388_p2), 20   ;;  %vm1046_vm5 = vcmask (!%p388_p2), 1041408   ;;  %vm746_vm6 = vcmask (!%p388_p2), 130144  }
   0x9   : > { %445 = vst.msk [vmem:[#allocation2 + $0x18] sm:$0x3] (!%p388_p2), %vm442_vm1, %v3727_v0  ;;  %449 = vst.msk [vmem:[#allocation2 + $0x38] sm:$0x3] (!%p388_p2), %vm442_vm1, %v3727_v0  ;;  %s3734_s21 = smov (!%p388_p2), 24   ;;  %s3735_s22 = smov (!%p388_p2), 28  }
   0xa   : > { %450 = vst.msk [vmem:[#allocation2 + $0x40] sm:$0xff] (!%p388_p2), %vm440_vm0, %v3727_v0  ;;  %452 = vst.msk [vmem:[#allocation2 + $0x50] sm:$0xff] (!%p388_p2), %vm440_vm0, %v3727_v0  ;;  %s3736_s27 = smov (!%p388_p2), 32   ;;  %vm795_vm7 = vcmask (!%p388_p2), 162944   ;;  %vm844_vm8 = vcmask (!%p388_p2), 195744   ;;  %vm894_vm9 = vcmask (!%p388_p2), 228544  }
   0xb   : > { %451 = vst.msk [vmem:[#allocation2 + $0x48] sm:$0x3] (!%p388_p2), %vm442_vm1, %v3727_v0  ;;  %453 = vst.msk [vmem:[#allocation2 + $0x58] sm:$0x3] (!%p388_p2), %vm442_vm1, %v3727_v0  ;;  %vm943_vm10 = vcmask (!%p388_p2), 261344   ;;  %vm992_vm11 = vcmask (!%p388_p2), 294144  }
   0xc   : > { %454 = vst.msk [vmem:[#allocation2 + $0x60] sm:$0xff] (!%p388_p2), %vm440_vm0, %v3727_v0  ;;  %456 = vst.msk [vmem:[#allocation2 + $0x70] sm:$0xff] (!%p388_p2), %vm440_vm0, %v3727_v0  ;;  %vm1033_vm12 = vcmask (!%p388_p2), 293888   ;;  %vm2779_vm13 = vcmask (!%p388_p2), 130112   ;;  %vm2828_vm14 = vcmask (!%p388_p2), 195712   ;;  %vm3192_vm15 = vcmask (!%p388_p2), 1043456  }
   0xd   : > { %455 = vst.msk [vmem:[#allocation2 + $0x68] sm:$0x3] %vm442_vm1, %v3727_v0  ;;  %457 = vst.msk [vmem:[#allocation2 + $0x78] sm:$0x3] %vm442_vm1, %v3727_v0  ;;  %s5193_s26 = smov (!%p3819_p3, %s3460_s26), 1  ;;  %v3895_v19 = vld [vmem:[#allocation2] sm:$0xff] }
   0xe   : > { %458 = vst.msk [vmem:[#allocation2 + $0x80] sm:$0xff] %vm440_vm0, %v3727_v0  ;;  %460 = vst.msk [vmem:[#allocation2 + $0x90] sm:$0xff] %vm440_vm0, %v3727_v0  ;;  %s3508_s28 = sshll.u32 %s5193_s26, 7  ;;  %v608_v17 = vld [vmem:[#allocation2 + $0x1] sm:$0xff] }
   0xf   : > { %459 = vst.msk [vmem:[#allocation2 + $0x88] sm:$0x3] %vm442_vm1, %v3727_v0  ;;  %461 = vst.msk [vmem:[#allocation2 + $0x98] sm:$0x3] %vm442_vm1, %v3727_v0  ;;  %s3851_s14 = scalar_lea.vmem %s5177_s0, %s3508_s28  ;;  %v657_v18 = vld [vmem:[#allocation2 + $0x2] sm:$0xff]  ;;  %vm2877_vm1 = vcmask 261312  }
  0x10   : > { %v464_v1 = vld [vmem:[%s3851_s14 + $0x10] sm:$0xff]  ;;  %v462_v2 = vld [vmem:[%s3851_s14] sm:$0xff]  ;;  %v465_v3 = vld [vmem:[%s3851_s14 + $0x18] sm:$0xff]  ;;  %600 = vst.msk [vmem:[#allocation3] sm:$0xff] %vm558_vm2, %v3895_v19 }
  0x11   : > { %498 = vrot.lane.b32.xlu1 %v464_v1, %s3728_s15  ;;  %494 = vrot.lane.b32.xlu0 %v462_v2, %s3728_s15  ;;  %v463_v4 = vld [vmem:[%s3851_s14 + $0x8] sm:$0xff]  ;;  %v466_v6 = vld [vmem:[%s3851_s14 + $0x20] sm:$0xff] }
  0x12   : > { %v467_v5 = vld [vmem:[%s3851_s14 + $0x28] sm:$0xff]  ;;  %v469_v7 = vld [vmem:[%s3851_s14 + $0x38] sm:$0xff]  ;;  %v468_v8 = vld [vmem:[%s3851_s14 + $0x30] sm:$0xff] }
  0x13   : > { %v3862_v9 = vld [vmem:[%s3851_s14 + $0x48] sm:$0xff]  ;;  %v3865_v10 = vld [vmem:[%s3851_s14 + $0x40] sm:$0xff]  ;;  %v3870_v11 = vld [vmem:[%s3851_s14 + $0x58] sm:$0xff] }
  0x14   : > { %v3873_v12 = vld [vmem:[%s3851_s14 + $0x50] sm:$0xff]  ;;  %v3878_v13 = vld [vmem:[%s3851_s14 + $0x68] sm:$0xff]  ;;  %v3881_v14 = vld [vmem:[%s3851_s14 + $0x60] sm:$0xff] }
  0x15   : > { %500 = vrot.lane.b32.xlu1 %v465_v3, %s3728_s15  ;;  %496 = vrot.lane.b32.xlu0 %v463_v4, %s3728_s15  ;;  %v3886_v15 = vld [vmem:[%s3851_s14 + $0x78] sm:$0xff]  ;;  %v3889_v16 = vld [vmem:[%s3851_s14 + $0x70] sm:$0xff] }
  0x19   : > { %504 = vrot.lane.b32.xlu1 %v467_v5, %s3728_s15  ;;  %502 = vrot.lane.b32.xlu0 %v466_v6, %s3728_s15 }
  0x1d   : > { %508 = vrot.lane.b32.xlu1 %v469_v7, %s3728_s15  ;;  %506 = vrot.lane.b32.xlu0 %v468_v8, %s3728_s15 }
  0x21   : > { %512 = vrot.lane.b32.xlu1 %v3862_v9, %s3728_s15  ;;  %510 = vrot.lane.b32.xlu0 %v3865_v10, %s3728_s15 }
  0x25   : > { %516 = vrot.lane.b32.xlu1 %v3870_v11, %s3728_s15  ;;  %514 = vrot.lane.b32.xlu0 %v3873_v12, %s3728_s15 }
  0x29   : > { %520 = vrot.lane.b32.xlu1 %v3878_v13, %s3728_s15  ;;  %518 = vrot.lane.b32.xlu0 %v3881_v14, %s3728_s15 }
  0x2d   : > { %524 = vrot.lane.b32.xlu1 %v3886_v15, %s3728_s15  ;;  %522 = vrot.lane.b32.xlu0 %v3889_v16, %s3728_s15 }
  0x31   : > { %624 = vrot.lane.b32.xlu0 %v608_v17, %s3729_s16 }
  0x35   : > { %673 = vrot.lane.b32.xlu0 %v657_v18, %s3730_s17 }
  0x83   : > { %v499_v20 = vpop.permute.xlu1 %498  ;;  %v495_v21 = vpop.permute.xlu0 %494 }
  0x84   : > { %v544_v22 = vmax.f32 %v464_v1, %v499_v20  ;;  %v542_v23 = vmax.f32 %v462_v2, %v495_v21 }
  0x86   : > { %v562_v28 = vsel %vm558_vm2, %v544_v22, -inf  ;;  %v559_v29 = vsel %vm558_vm2, %v542_v23, -inf }
  0x87   : > { %v501_v24 = vpop.permute.xlu1 %500  ;;  %v497_v25 = vpop.permute.xlu0 %496 }
  0x88   : > { %v545_v26 = vmax.f32 %v465_v3, %v501_v24  ;;  %v543_v27 = vmax.f32 %v463_v4, %v497_v25 }
  0x8a   : > { %v563_v30 = vsel %vm558_vm2, %v545_v26, -inf  ;;  %v560_v31 = vsel %vm558_vm2, %v543_v27, -inf }
  0x8b   : > { %v3903_v32 = vmax.f32 %v562_v28, %v563_v30  ;;  %v3905_v33 = vmax.f32 %v559_v29, %v560_v31  ;;  %v505_v34 = vpop.permute.xlu1 %504  ;;  %v503_v35 = vpop.permute.xlu0 %502  ;;  %v3649_v30 = vld [vmem:[%s5178_s1] sm:$0xff]  }
  0x8c   : > { %v547_v36 = vmax.f32 %v467_v5, %v505_v34  ;;  %v546_v37 = vmax.f32 %v466_v6, %v503_v35  ;;  %3539 = vmatprep.subr.bf16.mxu0 %v3649_v30  ;;  %v3650_v34 = vld [vmem:[%s5178_s1 + $0x8] sm:$0xff]   ;;  %v3651_v35 = vld [vmem:[%s5178_s1 + $0x10] ss:$0 sps:$4 sm:$0x33]  }
  0x8d   : > { %585 = vst.msk [vmem:[#allocation2 + $0x21] sm:$0xff] %vm558_vm2, %v3903_v32  ;;  %584 = vst.msk [vmem:[#allocation2 + $0x11] sm:$0xff] %vm558_vm2, %v3905_v33  ;;  %3540 = vmatpush3.bf16.msra.mxu0 %v3649_v30 }
  0x8e   : > { %v566_v38 = vsel %vm558_vm2, %v547_v36, -inf  ;;  %v565_v39 = vsel %vm558_vm2, %v546_v37, -inf  ;;  %3541 = vmatprep.subr.bf16.mxu0 %v3650_v34  ;;  %v1048_v37 = vsel %vm1046_vm5, %v3651_v35, 0 }
  0x8f   : > { %v3913_v40 = vmax.f32 %v565_v39, %v566_v38  ;;  %v509_v41 = vpop.permute.xlu1 %508  ;;  %v507_v42 = vpop.permute.xlu0 %506 }
  0x90   : > { %v549_v43 = vmax.f32 %v469_v7, %v509_v41  ;;  %v548_v44 = vmax.f32 %v468_v8, %v507_v42 }
  0x91   : > { %586 = vst.msk [vmem:[#allocation2 + $0x31] sm:$0xff] %vm558_vm2, %v3913_v40  ;;  %3542 = vmatpush3.bf16.msra.mxu0 %v3650_v34 }
  0x92   : > { %v569_v45 = vsel %vm558_vm2, %v549_v43, -inf  ;;  %v568_v46 = vsel %vm558_vm2, %v548_v44, -inf  ;;  %3599 = vmatprep.subr.msk.bf16.mxu0 %vm1046_vm5, %v3651_v35 }
  0x93   : > { %v3919_v47 = vmax.f32 %v568_v46, %v569_v45  ;;  %v513_v48 = vpop.permute.xlu1 %512  ;;  %v511_v49 = vpop.permute.xlu0 %510  ;;  %v4069_v46 = vld [vmem:[#allocation2 + $0x90] sm:$0xff] }
  0x94   : > { %v3921_v50 = vld [vmem:[#allocation2 + $0x21] sm:$0xff]  ;;  %v609_v51 = vld [vmem:[#allocation2 + $0x11] sm:$0xff]  ;;  %v551_v52 = vmax.f32 %v3862_v9, %v513_v48  ;;  %v550_v53 = vmax.f32 %v3865_v10, %v511_v49 }
  0x95   : > { %628 = vrot.lane.b32.xlu0 %v3921_v50, %s3729_s16  ;;  %626 = vrot.lane.b32.xlu1 %v609_v51, %s3729_s16  ;;  %587 = vst.msk [vmem:[#allocation2 + $0x41] sm:$0xff] %vm558_vm2, %v3919_v47  ;;  %v706_v54 = vld [vmem:[#allocation2 + $0x10] sm:$0xff]  ;;  %v3930_v55 = vld [vmem:[#allocation2 + $0x20] sm:$0xff] }
  0x96   : > { %v572_v56 = vsel %vm558_vm2, %v551_v52, -inf  ;;  %v571_v57 = vsel %vm558_vm2, %v550_v53, -inf  ;;  %601 = vst.msk [vmem:[#allocation3 + $0x8] sm:$0xff] %vm558_vm2, %v706_v54  ;;  %602 = vst.msk [vmem:[#allocation3 + $0x10] sm:$0xff] %vm558_vm2, %v3930_v55  ;;  %v3939_v61 = vld [vmem:[#allocation2 + $0x22] sm:$0xff]  ;;  %v658_v7 = vld [vmem:[#allocation2 + $0x12] sm:$0xff]  ;;  %3544 = vmatpush3.bf16.msra.mxu0 %v1048_v37 }
  0x97   : > { %v3937_v58 = vmax.f32 %v571_v57, %v572_v56  ;;  %v517_v59 = vpop.permute.xlu1 %516  ;;  %v515_v60 = vpop.permute.xlu0 %514  ;;  %v4076_v48 = vld [vmem:[#allocation2 + $0x91] sm:$0xff] }
  0x98   : > { %v3941_v62 = vld [vmem:[#allocation2 + $0x31] sm:$0xff]  ;;  %v553_v0 = vmax.f32 %v3870_v11, %v517_v59  ;;  %v552_v1 = vmax.f32 %v3873_v12, %v515_v60 }
  0x99   : > { %v3943_v63 = vld [vmem:[#allocation2 + $0x30] sm:$0xff]  ;;  %677 = vrot.lane.b32.xlu0 %v3939_v61, %s3730_s17  ;;  %630 = vrot.lane.b32.xlu1 %v3941_v62, %s3729_s16  ;;  %588 = vst.msk [vmem:[#allocation2 + $0x51] sm:$0xff] %vm558_vm2, %v3937_v58 }
  0x9a   : > { %603 = vst.msk [vmem:[#allocation3 + $0x18] sm:$0xff] %vm558_vm2, %v3943_v63  ;;  %v575_v2 = vsel %vm558_vm2, %v553_v0, -inf  ;;  %v574_v3 = vsel %vm558_vm2, %v552_v1, -inf  ;;  %v660_v20 = vld [vmem:[#allocation2 + $0x32] sm:$0xff] }
  0x9b   : > { %v3957_v4 = vmax.f32 %v574_v3, %v575_v2  ;;  %v521_v5 = vpop.permute.xlu1 %520  ;;  %v519_v6 = vpop.permute.xlu0 %518  ;;  %v4086_v53 = vld [vmem:[#allocation2 + $0x92] sm:$0xff] }
  0x9c   : > { %v709_v8 = vld [vmem:[#allocation2 + $0x40] sm:$0xff]  ;;  %v555_v9 = vmax.f32 %v3878_v13, %v521_v5  ;;  %v554_v10 = vmax.f32 %v3881_v14, %v519_v6 }
  0x9d   : > { %722 = vrot.lane.b32.xlu0 %v706_v54, %s3731_s18  ;;  %675 = vrot.lane.b32.xlu1 %v658_v7, %s3730_s17  ;;  %589 = vst.msk [vmem:[#allocation2 + $0x61] sm:$0xff] %vm558_vm2, %v3957_v4  ;;  %604 = vst.msk [vmem:[#allocation3 + $0x20] sm:$0xff] %vm558_vm2, %v709_v8  ;;  %v758_v28 = vld [vmem:[#allocation2 + $0x41] sm:$0xff] }
  0x9e   : > { %v578_v11 = vsel %vm558_vm2, %v555_v9, -inf  ;;  %v577_v12 = vsel %vm558_vm2, %v554_v10, -inf  ;;  %v807_v29 = vld [vmem:[#allocation2 + $0x42] sm:$0xff] }
  0x9f   : > { %v3968_v17 = vmax.f32 %v577_v12, %v578_v11  ;;  %v525_v18 = vpop.permute.xlu1 %524  ;;  %v523_v13 = vpop.permute.xlu0 %522 }
  0xa0   : > { %v3970_v14 = vld [vmem:[#allocation2 + $0x50] sm:$0xff]  ;;  %v557_v21 = vmax.f32 %v3886_v15, %v525_v18  ;;  %v556_v22 = vmax.f32 %v3889_v16, %v523_v13 }
  0xa1   : > { %726 = vrot.lane.b32.xlu0 %v3943_v63, %s3731_s18  ;;  %679 = vrot.lane.b32.xlu1 %v660_v20, %s3730_s17  ;;  %590 = vst.msk [vmem:[#allocation2 + $0x71] sm:$0xff] %vm558_vm2, %v3968_v17  ;;  %605 = vst.msk [vmem:[#allocation3 + $0x28] sm:$0xff] %vm558_vm2, %v3970_v14  ;;  %v906_v31 = vld [vmem:[#allocation2 + $0x51] sm:$0xff] }
  0xa2   : > { %v581_v23 = vsel %vm558_vm2, %v557_v21, -inf  ;;  %v580_v24 = vsel %vm558_vm2, %v556_v22, -inf  ;;  %v955_v38 = vld [vmem:[#allocation2 + $0x52] sm:$0xff] }
  0xa3   : > { %v3983_v25 = vmax.f32 %v580_v24, %v581_v23  ;;  %v625_v15 = vpop.permute.xlu0 %624 }
  0xa4   : > { %v3985_v16 = vld [vmem:[#allocation2 + $0x60] sm:$0xff]  ;;  %649 = vst.msk [vmem:[#allocation3] sm:$0xff] %vm648_vm3, %v625_v15 }
  0xa5   : > { %771 = vrot.lane.b32.xlu0 %v609_v51, %s3732_s19  ;;  %724 = vrot.lane.b32.xlu1 %v3930_v55, %s3731_s18  ;;  %591 = vst.msk [vmem:[#allocation2 + $0x81] sm:$0xff] %vm558_vm2, %v3983_v25  ;;  %606 = vst.msk [vmem:[#allocation3 + $0x30] sm:$0xff] %vm558_vm2, %v3985_v16  ;;  %v614_v36 = vld [vmem:[#allocation2 + $0x61] sm:$0xff] }
  0xa6   : > { %v663_v41 = vld [vmem:[#allocation2 + $0x62] sm:$0xff] }
  0xa7   : > { %v674_v26 = vpop.permute.xlu0 %673 }
  0xa8   : > { %v3995_v27 = vld [vmem:[#allocation2 + $0x70] sm:$0xff]  ;;  %698 = vst.msk [vmem:[#allocation3] sm:$0xff] %vm697_vm4, %v674_v26 }
  0xa9   : > { %775 = vrot.lane.b32.xlu0 %v3941_v62, %s3732_s19  ;;  %728 = vrot.lane.b32.xlu1 %v709_v8, %s3731_s18  ;;  %607 = vst.msk [vmem:[#allocation3 + $0x38] sm:$0xff] %vm558_vm2, %v3995_v27  ;;  %v615_v39 = vld [vmem:[#allocation2 + $0x71] sm:$0xff] }
  0xaa   : > { %v664_v42 = vld [vmem:[#allocation2 + $0x72] sm:$0xff] }
  0xac   : > { %v713_v43 = vld [vmem:[#allocation2 + $0x80] sm:$0xff] }
  0xad   : > { %820 = vrot.lane.b32.xlu0 %v658_v7, %s3733_s20  ;;  %773 = vrot.lane.b32.xlu1 %v3921_v50, %s3732_s19  ;;  %v762_v44 = vld [vmem:[#allocation2 + $0x81] sm:$0xff] }
  0xae   : > { %v811_v45 = vld [vmem:[#allocation2 + $0x82] sm:$0xff] }
  0xb1   : > { %824 = vrot.lane.b32.xlu0 %v660_v20, %s3733_s20  ;;  %777 = vrot.lane.b32.xlu1 %v758_v28, %s3732_s19 }
  0xb5   : > { %870 = vrot.lane.b32.xlu0 %v3930_v55, %s3734_s21  ;;  %822 = vrot.lane.b32.xlu1 %v3939_v61, %s3733_s20 }
  0xb9   : > { %874 = vrot.lane.b32.xlu0 %v709_v8, %s3734_s21  ;;  %826 = vrot.lane.b32.xlu1 %v807_v29, %s3733_s20 }
  0xbd   : > { %919 = vrot.lane.b32.xlu0 %v3921_v50, %s3735_s22  ;;  %872 = vrot.lane.b32.xlu1 %v3943_v63, %s3734_s21 }
  0xc1   : > { %923 = vrot.lane.b32.xlu0 %v758_v28, %s3735_s22  ;;  %876 = vrot.lane.b32.xlu1 %v3970_v14, %s3734_s21 }
  0xc5   : > { %968 = vrot.lane.b32.xlu0 %v3939_v61, %s3736_s27  ;;  %921 = vrot.lane.b32.xlu1 %v3941_v62, %s3735_s22 }
  0xc9   : > { %632 = vrot.lane.b32.xlu0 %v758_v28, %s3729_s16  ;;  %925 = vrot.lane.b32.xlu1 %v906_v31, %s3735_s22 }
  0xcd   : > { %972 = vrot.lane.b32.xlu0 %v807_v29, %s3736_s27  ;;  %970 = vrot.lane.b32.xlu1 %v660_v20, %s3736_s27 }
  0xd1   : > { %634 = vrot.lane.b32.xlu1 %v906_v31, %s3729_s16  ;;  %636 = vrot.lane.b32.xlu0 %v614_v36, %s3729_s16 }
  0xd5   : > { %974 = vrot.lane.b32.xlu1 %v955_v38, %s3736_s27  ;;  %681 = vrot.lane.b32.xlu0 %v807_v29, %s3730_s17 }
  0xd9   : > { %685 = vrot.lane.b32.xlu0 %v663_v41, %s3730_s17  ;;  %638 = vrot.lane.b32.xlu1 %v615_v39, %s3729_s16 }
  0xdd   : > { %730 = vrot.lane.b32.xlu0 %v3970_v14, %s3731_s18  ;;  %683 = vrot.lane.b32.xlu1 %v955_v38, %s3730_s17 }
  0xe1   : > { %734 = vrot.lane.b32.xlu0 %v3995_v27, %s3731_s18  ;;  %687 = vrot.lane.b32.xlu1 %v664_v42, %s3730_s17 }
  0xe5   : > { %779 = vrot.lane.b32.xlu0 %v906_v31, %s3732_s19  ;;  %732 = vrot.lane.b32.xlu1 %v3985_v16, %s3731_s18 }
  0xe9   : > { %783 = vrot.lane.b32.xlu0 %v615_v39, %s3732_s19  ;;  %736 = vrot.lane.b32.xlu1 %v713_v43, %s3731_s18 }
  0xed   : > { %828 = vrot.lane.b32.xlu0 %v955_v38, %s3733_s20  ;;  %781 = vrot.lane.b32.xlu1 %v614_v36, %s3732_s19 }
  0xf1   : > { %832 = vrot.lane.b32.xlu0 %v664_v42, %s3733_s20  ;;  %785 = vrot.lane.b32.xlu1 %v762_v44, %s3732_s19 }
  0xf5   : > { %878 = vrot.lane.b32.xlu0 %v3985_v16, %s3734_s21  ;;  %830 = vrot.lane.b32.xlu1 %v663_v41, %s3733_s20 }
  0xf9   : > { %882 = vrot.lane.b32.xlu0 %v713_v43, %s3734_s21  ;;  %834 = vrot.lane.b32.xlu1 %v811_v45, %s3733_s20 }
  0xfd   : > { %927 = vrot.lane.b32.xlu0 %v614_v36, %s3735_s22  ;;  %880 = vrot.lane.b32.xlu1 %v3995_v27, %s3734_s21 }
 0x101   : > { %931 = vrot.lane.b32.xlu0 %v762_v44, %s3735_s22  ;;  %884 = vrot.lane.b32.xlu1 %v4069_v46, %s3734_s21 }
 0x105   : > { %976 = vrot.lane.b32.xlu0 %v663_v41, %s3736_s27  ;;  %929 = vrot.lane.b32.xlu1 %v615_v39, %s3735_s22 }
 0x107   : > { %v627_v49 = vpop.permute.xlu1 %626  ;;  %v629_v50 = vpop.permute.xlu0 %628 }
 0x108   : > { %650 = vst.msk [vmem:[#allocation3 + $0x8] sm:$0xff] %vm648_vm3, %v627_v49  ;;  %651 = vst.msk [vmem:[#allocation3 + $0x10] sm:$0xff] %vm648_vm3, %v629_v50 }
 0x109   : > { %980 = vrot.lane.b32.xlu0 %v811_v45, %s3736_s27  ;;  %933 = vrot.lane.b32.xlu1 %v4076_v48, %s3735_s22 }
 0x10b   : > { %v631_v51 = vpop.permute.xlu1 %630  ;;  %v678_v52 = vpop.permute.xlu0 %677 }
 0x10c   : > { %652 = vst.msk [vmem:[#allocation3 + $0x18] sm:$0xff] %vm648_vm3, %v631_v51 }
 0x10d   : > { %700 = vst.msk [vmem:[#allocation3 + $0x10] sm:$0xff] %vm697_vm4, %v678_v52  ;;  %978 = vrot.lane.b32.xlu1 %v664_v42, %s3736_s27 }
 0x10f   : > { %v676_v54 = vpop.permute.xlu1 %675  ;;  %v723_v55 = vpop.permute.xlu0 %722 }
 0x110   : > { %699 = vst.msk [vmem:[#allocation3 + $0x8] sm:$0xff] %vm697_vm4, %v676_v54 }
 0x111   : > { %747 = vst.msk [vmem:[#allocation3] sm:$0xff] %vm746_vm6, %v723_v55  ;;  %982 = vrot.lane.b32.xlu1 %v4086_v53, %s3736_s27 }
 0x113   : > { %v680_v56 = vpop.permute.xlu1 %679  ;;  %v727_v57 = vpop.permute.xlu0 %726 }
 0x114   : > { %701 = vst.msk [vmem:[#allocation3 + $0x18] sm:$0xff] %vm697_vm4, %v680_v56 }
 0x115   : > { %749 = vst.msk [vmem:[#allocation3 + $0x10] sm:$0xff] %vm746_vm6, %v727_v57 }
 0x117   : > { %v725_v59 = vpop.permute.xlu1 %724  ;;  %v772_v60 = vpop.permute.xlu0 %771 }
 0x118   : > { %748 = vst.msk [vmem:[#allocation3 + $0x8] sm:$0xff] %vm746_vm6, %v725_v59 }
 0x119   : > { %796 = vst.msk [vmem:[#allocation3] sm:$0xff] %vm795_vm7, %v772_v60 }
 0x11b   : > { %v729_v61 = vpop.permute.xlu1 %728  ;;  %v776_v62 = vpop.permute.xlu0 %775 }
 0x11c   : > { %750 = vst.msk [vmem:[#allocation3 + $0x18] sm:$0xff] %vm746_vm6, %v729_v61 }
 0x11d   : > { %798 = vst.msk [vmem:[#allocation3 + $0x10] sm:$0xff] %vm795_vm7, %v776_v62 }
 0x11f   : > { %v774_v63 = vpop.permute.xlu1 %773  ;;  %v821_v0 = vpop.permute.xlu0 %820 }
 0x120   : > { %797 = vst.msk [vmem:[#allocation3 + $0x8] sm:$0xff] %vm795_vm7, %v774_v63 }
 0x121   : > { %845 = vst.msk [vmem:[#allocation3] sm:$0xff] %vm844_vm8, %v821_v0 }
 0x123   : > { %v778_v1 = vpop.permute.xlu1 %777  ;;  %v825_v2 = vpop.permute.xlu0 %824 }
 0x124   : > { %799 = vst.msk [vmem:[#allocation3 + $0x18] sm:$0xff] %vm795_vm7, %v778_v1 }
 0x125   : > { %847 = vst.msk [vmem:[#allocation3 + $0x10] sm:$0xff] %vm844_vm8, %v825_v2 }
 0x127   : > { %v823_v3 = vpop.permute.xlu1 %822  ;;  %v871_v5 = vpop.permute.xlu0 %870 }
 0x128   : > { %846 = vst.msk [vmem:[#allocation3 + $0x8] sm:$0xff] %vm844_vm8, %v823_v3 }
 0x129   : > { %895 = vst.msk [vmem:[#allocation3] sm:$0xff] %vm894_vm9, %v871_v5 }
 0x12b   : > { %v827_v6 = vpop.permute.xlu1 %826  ;;  %v875_v7 = vpop.permute.xlu0 %874 }
 0x12c   : > { %848 = vst.msk [vmem:[#allocation3 + $0x18] sm:$0xff] %vm844_vm8, %v827_v6 }
 0x12d   : > { %897 = vst.msk [vmem:[#allocation3 + $0x10] sm:$0xff] %vm894_vm9, %v875_v7 }
 0x12f   : > { %v873_v8 = vpop.permute.xlu1 %872  ;;  %v920_v9 = vpop.permute.xlu0 %919 }
 0x130   : > { %896 = vst.msk [vmem:[#allocation3 + $0x8] sm:$0xff] %vm894_vm9, %v873_v8 }
 0x131   : > { %944 = vst.msk [vmem:[#allocation3] sm:$0xff] %vm943_vm10, %v920_v9 }
 0x133   : > { %v877_v10 = vpop.permute.xlu1 %876  ;;  %v924_v11 = vpop.permute.xlu0 %923 }
 0x134   : > { %898 = vst.msk [vmem:[#allocation3 + $0x18] sm:$0xff] %vm894_vm9, %v877_v10 }
 0x135   : > { %946 = vst.msk [vmem:[#allocation3 + $0x10] sm:$0xff] %vm943_vm10, %v924_v11 }
 0x137   : > { %v922_v12 = vpop.permute.xlu1 %921  ;;  %v969_v18 = vpop.permute.xlu0 %968 }
 0x138   : > { %945 = vst.msk [vmem:[#allocation3 + $0x8] sm:$0xff] %vm943_vm10, %v922_v12 }
 0x139   : > { %993 = vst.msk [vmem:[#allocation3] sm:$0xff] %vm992_vm11, %v969_v18 }
 0x13b   : > { %v926_v13 = vpop.permute.xlu1 %925  ;;  %v633_v20 = vpop.permute.xlu0 %632 }
 0x13c   : > { %947 = vst.msk [vmem:[#allocation3 + $0x18] sm:$0xff] %vm943_vm10, %v926_v13 }
 0x13d   : > { %653 = vst.msk [vmem:[#allocation3 + $0x20] sm:$0xff] %vm648_vm3, %v633_v20 }
 0x13f   : > { %v971_v14 = vpop.permute.xlu1 %970  ;;  %v973_v21 = vpop.permute.xlu0 %972 }
 0x140   : > { %v1001_v22 = vld [vmem:[#allocation3] sm:$0xff]  ;;  %994 = vst.msk [vmem:[#allocation3 + $0x8] sm:$0xff] %vm992_vm11, %v971_v14  ;;  %995 = vst.msk [vmem:[#allocation3 + $0x10] sm:$0xff] %vm992_vm11, %v973_v21 }
 0x141   : > { %1315 = vst.msk [vmem:[#allocation3] sm:$0xff] %vm558_vm2, %v3895_v19 }
 0x143   : > { %v635_v23 = vpop.permute.xlu1 %634  ;;  %v637_v24 = vpop.permute.xlu0 %636 }
 0x144   : > { %654 = vst.msk [vmem:[#allocation3 + $0x28] sm:$0xff] %vm648_vm3, %v635_v23  ;;  %655 = vst.msk [vmem:[#allocation3 + $0x30] sm:$0xff] %vm648_vm3, %v637_v24 }
 0x147   : > { %v975_v15 = vpop.permute.xlu1 %974  ;;  %v682_v16 = vpop.permute.xlu0 %681  ;;  %v1002_v26 = vld [vmem:[#allocation3 + $0x8] sm:$0xff]  ;;  %v1003_v31 = vld [vmem:[#allocation3 + $0x10] sm:$0xff] }
 0x148   : > { %996 = vst.msk [vmem:[#allocation3 + $0x18] sm:$0xff] %vm992_vm11, %v975_v15  ;;  %v1009_v27 = vpack.c.bf16 %v1002_v26, %v1001_v22 }
 0x149   : > { %702 = vst.msk [vmem:[#allocation3 + $0x20] sm:$0xff] %vm697_vm4, %v682_v16 }
 0x14a   : > { %3545 = vmatprep.mubr.msk.bf16.mxu0 %vm1033_vm12, %v1009_v27 }
 0x14b   : > { %v639_v28 = vpop.permute.xlu1 %638  ;;  %v686_v29 = vpop.permute.xlu0 %685 }
 0x14c   : > { %656 = vst.msk [vmem:[#allocation3 + $0x38] sm:$0xff] %vm648_vm3, %v639_v28 }
 0x14d   : > { %704 = vst.msk [vmem:[#allocation3 + $0x30] sm:$0xff] %vm697_vm4, %v686_v29 }
 0x14f   : > { %v684_v19 = vpop.permute.xlu1 %683  ;;  %v731_v30 = vpop.permute.xlu0 %730  ;;  %v1004_v34 = vld [vmem:[#allocation3 + $0x18] sm:$0xff] }
 0x150   : > { %703 = vst.msk [vmem:[#allocation3 + $0x28] sm:$0xff] %vm697_vm4, %v684_v19  ;;  %v1010_v35 = vpack.c.bf16 %v1004_v34, %v1003_v31 }
 0x151   : > { %751 = vst.msk [vmem:[#allocation3 + $0x20] sm:$0xff] %vm746_vm6, %v731_v30 }
 0x152   : > { %3546 = vmatmul.mubr.msk.bf16.vlgmr.msra.gmra.mrb[0].mxu0 %vm1033_vm12, %v1010_v35 }
 0x153   : > { %v688_v36 = vpop.permute.xlu1 %687  ;;  %v735_v37 = vpop.permute.xlu0 %734 }
 0x154   : > { %705 = vst.msk [vmem:[#allocation3 + $0x38] sm:$0xff] %vm697_vm4, %v688_v36 }
 0x155   : > { %753 = vst.msk [vmem:[#allocation3 + $0x30] sm:$0xff] %vm746_vm6, %v735_v37 }
 0x157   : > { %v733_v38 = vpop.permute.xlu1 %732  ;;  %v780_v39 = vpop.permute.xlu0 %779 }
 0x158   : > { %752 = vst.msk [vmem:[#allocation3 + $0x28] sm:$0xff] %vm746_vm6, %v733_v38 }
 0x159   : > { %800 = vst.msk [vmem:[#allocation3 + $0x20] sm:$0xff] %vm795_vm7, %v780_v39 }
 0x15b   : > { %v737_v41 = vpop.permute.xlu1 %736  ;;  %v784_v42 = vpop.permute.xlu0 %783 }
 0x15c   : > { %754 = vst.msk [vmem:[#allocation3 + $0x38] sm:$0xff] %vm746_vm6, %v737_v41 }
 0x15d   : > { %802 = vst.msk [vmem:[#allocation3 + $0x30] sm:$0xff] %vm795_vm7, %v784_v42 }
 0x15f   : > { %v782_v43 = vpop.permute.xlu1 %781  ;;  %v829_v44 = vpop.permute.xlu0 %828 }
 0x160   : > { %801 = vst.msk [vmem:[#allocation3 + $0x28] sm:$0xff] %vm795_vm7, %v782_v43 }
 0x161   : > { %849 = vst.msk [vmem:[#allocation3 + $0x20] sm:$0xff] %vm844_vm8, %v829_v44 }
 0x163   : > { %v786_v45 = vpop.permute.xlu1 %785  ;;  %v833_v49 = vpop.permute.xlu0 %832 }
 0x164   : > { %803 = vst.msk [vmem:[#allocation3 + $0x38] sm:$0xff] %vm795_vm7, %v786_v45 }
 0x165   : > { %851 = vst.msk [vmem:[#allocation3 + $0x30] sm:$0xff] %vm844_vm8, %v833_v49 }
 0x167   : > { %v831_v50 = vpop.permute.xlu1 %830  ;;  %v879_v51 = vpop.permute.xlu0 %878 }
 0x168   : > { %850 = vst.msk [vmem:[#allocation3 + $0x28] sm:$0xff] %vm844_vm8, %v831_v50 }
 0x169   : > { %899 = vst.msk [vmem:[#allocation3 + $0x20] sm:$0xff] %vm894_vm9, %v879_v51 }
 0x16b   : > { %v835_v52 = vpop.permute.xlu1 %834  ;;  %v883_v54 = vpop.permute.xlu0 %882 }
 0x16c   : > { %852 = vst.msk [vmem:[#allocation3 + $0x38] sm:$0xff] %vm844_vm8, %v835_v52 }
 0x16d   : > { %901 = vst.msk [vmem:[#allocation3 + $0x30] sm:$0xff] %vm894_vm9, %v883_v54 }
 0x16f   : > { %v881_v55 = vpop.permute.xlu1 %880  ;;  %v928_v56 = vpop.permute.xlu0 %927 }
 0x170   : > { %900 = vst.msk [vmem:[#allocation3 + $0x28] sm:$0xff] %vm894_vm9, %v881_v55 }
 0x171   : > { %948 = vst.msk [vmem:[#allocation3 + $0x20] sm:$0xff] %vm943_vm10, %v928_v56 }
 0x173   : > { %v885_v57 = vpop.permute.xlu1 %884  ;;  %v932_v59 = vpop.permute.xlu0 %931 }
 0x174   : > { %902 = vst.msk [vmem:[#allocation3 + $0x38] sm:$0xff] %vm894_vm9, %v885_v57 }
 0x175   : > { %950 = vst.msk [vmem:[#allocation3 + $0x30] sm:$0xff] %vm943_vm10, %v932_v59 }
 0x177   : > { %v930_v60 = vpop.permute.xlu1 %929  ;;  %v977_v61 = vpop.permute.xlu0 %976 }
 0x178   : > { %949 = vst.msk [vmem:[#allocation3 + $0x28] sm:$0xff] %vm943_vm10, %v930_v60 }
 0x179   : > { %997 = vst.msk [vmem:[#allocation3 + $0x20] sm:$0xff] %vm992_vm11, %v977_v61 }
 0x17b   : > { %v934_v62 = vpop.permute.xlu1 %933  ;;  %v981_v63 = vpop.permute.xlu0 %980 }
 0x17c   : > { %951 = vst.msk [vmem:[#allocation3 + $0x38] sm:$0xff] %vm943_vm10, %v934_v62 }
 0x17d   : > { %999 = vst.msk [vmem:[#allocation3 + $0x30] sm:$0xff] %vm992_vm11, %v981_v63 }
 0x17f   : > { %v979_v0 = vpop.permute.xlu1 %978 }
 0x180   : > { %998 = vst.msk [vmem:[#allocation3 + $0x28] sm:$0xff] %vm992_vm11, %v979_v0  ;;  %v1005_v2 = vld [vmem:[#allocation3 + $0x20] sm:$0xff] }
 0x183   : > { %v983_v1 = vpop.permute.xlu1 %982 }
 0x184   : > { %1000 = vst.msk [vmem:[#allocation3 + $0x38] sm:$0xff] %vm992_vm11, %v983_v1  ;;  %v1007_v6 = vld [vmem:[#allocation3 + $0x30] sm:$0xff] }
 0x187   : > { %v1006_v3 = vld [vmem:[#allocation3 + $0x28] sm:$0xff] }
 0x188   : > { %v1011_v5 = vpack.c.bf16 %v1006_v3, %v1005_v2 }
 0x18a   : > { %3549 = vmatprep.mubr.msk.bf16.mxu0 %vm1033_vm12, %v1011_v5 }
 0x18b   : > { %v1008_v7 = vld [vmem:[#allocation3 + $0x38] sm:$0xff] }
 0x18c   : > { %v1012_v8 = vpack.c.bf16 %v1008_v7, %v1007_v6 }
 0x18e   : > { %3550 = vmatmul.mubr.msk.bf16.gmra.mrb[4].mxu0 %vm1033_vm12, %v1012_v8 }
 0x225   : > { %v4154_v9 = vpop.f32.mrb[0].mxu0 }
 0x226   : > { %v4156_v10 = vpop.f32.mrb[1].mxu0  ;;  %v1142_v13 = vmul.f32 %v4154_v9, %v4154_v9  ;;  %v1118_v23 = vsel %vm558_vm2, %v4154_v9, 0.0 }
 0x227   : > { %v1140_v11 = vmul.f32 %v4156_v10, %v4156_v10  ;;  %v4160_v12 = vpop.f32.mrb[2].mxu0  ;;  %v1115_v20 = vsel %vm558_vm2, %v4156_v10, 0.0 }
 0x228   : > { %v4162_v18 = vpop.f32.mrb[3].mxu0  ;;  %v1143_v15 = vmul.f32 %v4160_v12, %v4160_v12  ;;  %v1151_v28 = vsel %vm558_vm2, %v1142_v13, 0.0  ;;  %v1120_v29 = vsel %vm558_vm2, %v4160_v12, 0.0 }
 0x229   : > { %v1116_v14 = vsel %vm558_vm2, %v4162_v18, 0.0  ;;  %v1141_v21 = vmul.f32 %v4162_v18, %v4162_v18  ;;  %v1148_v24 = vsel %vm558_vm2, %v1140_v11, 0.0 }
 0x22a   : > { %v1117_v22 = vadd.f32 %v1116_v14, %v1115_v20  ;;  %v1153_v31 = vsel %vm558_vm2, %v1143_v15, 0.0 }
 0x22b   : > { %v1149_v16 = vsel %vm558_vm2, %v1141_v21, 0.0 }
 0x22c   : > { %v1119_v26 = vadd.f32 %v1118_v23, %v1117_v22  ;;  %v1150_v27 = vadd.f32 %v1149_v16, %v1148_v24 }
 0x22e   : > { %v1152_v19 = vadd.f32 %v1151_v28, %v1150_v27  ;;  %v1121_v30 = vadd.f32 %v1120_v29, %v1119_v26 }
 0x230   : > { %v1154_v34 = vadd.f32 %v1153_v31, %v1152_v19 }
 0x261   : > { %v4182_v35 = vpop.f32.mrb[4].mxu0 }
 0x262   : > { %v4184_v36 = vpop.f32.mrb[5].mxu0  ;;  %v1146_v43 = vmul.f32 %v4182_v35, %v4182_v35  ;;  %v1126_v52 = vsel %vm558_vm2, %v4182_v35, 0.0 }
 0x263   : > { %v1122_v37 = vsel %vm558_vm2, %v4184_v36, 0.0  ;;  %v1144_v38 = vmul.f32 %v4184_v36, %v4184_v36  ;;  %v4190_v39 = vpop.f32.mrb[6].mxu0 }
 0x264   : > { %v1123_v41 = vadd.f32 %v1122_v37, %v1121_v30  ;;  %v4192_v42 = vpop.f32.mrb[7].mxu0  ;;  %v1147_v54 = vmul.f32 %v4190_v39, %v4190_v39  ;;  %v1128_v59 = vsel %vm558_vm2, %v4190_v39, 0.0  ;;  %v1159_v60 = vsel %vm558_vm2, %v1146_v43, 0.0 }
 0x265   : > { %v1155_v44 = vsel %vm558_vm2, %v1144_v38, 0.0  ;;  %v1124_v45 = vsel %vm558_vm2, %v4192_v42, 0.0  ;;  %v1145_v49 = vmul.f32 %v4192_v42, %v4192_v42 }
 0x266   : > { %v1156_v50 = vadd.f32 %v1155_v44, %v1154_v34  ;;  %v1125_v51 = vadd.f32 %v1124_v45, %v1123_v41  ;;  %v1161_v63 = vsel %vm558_vm2, %v1147_v54, 0.0 }
 0x267   : > { %v1157_v55 = vsel %vm558_vm2, %v1145_v49, 0.0 }
 0x268   : > { %v1127_v56 = vadd.f32 %v1126_v52, %v1125_v51  ;;  %v1158_v57 = vadd.f32 %v1157_v55, %v1156_v50 }
 0x26a   : > { %v1129_v61 = vadd.f32 %v1128_v59, %v1127_v56  ;;  %v1160_v62 = vadd.f32 %v1159_v60, %v1158_v57 }
 0x26c   : > { %1130 = vadd.xlane.f32.xlu0 %v1129_v61  ;;  %v1162_v0 = vadd.f32 %v1161_v63, %v1160_v62 }
 0x26e   : > { %1163 = vadd.xlane.f32.xlu1 %v1162_v0 }
 0x27f   : > { %1593 = vrot.lane.b32.xlu1 %v4069_v46, %s3734_s21  ;;  %v4214_v46 = vld [vmem:[#allocation2 + $0x1] sm:$0xff] }
 0x282   : > { %1339 = vrot.lane.b32.xlu0 %v4214_v46, %s3729_s16 }
 0x283   : > { %1641 = vrot.lane.b32.xlu1 %v4076_v48, %s3735_s22  ;;  %v4218_v48 = vld [vmem:[#allocation2 + $0x2] sm:$0xff] }
 0x286   : > { %1387 = vrot.lane.b32.xlu0 %v4218_v48, %s3730_s17 }
 0x2f9   : > { %v1131_v1 = vpop.xlane.xlu0 %1130 }
 0x2fa   : > { %v1132_v2 = vrot.slane %v1131_v1, 4 }
 0x2fb   : > { %v1164_v3 = vpop.xlane.xlu1 %1163 }
 0x2fc   : > { %v1133_v5 = vadd.f32 %v1132_v2, %v1131_v1  ;;  %v1165_v6 = vrot.slane %v1164_v3, 4 }
 0x2fe   : > { %v1166_v7 = vadd.f32 %v1165_v6, %v1164_v3  ;;  %v1134_v8 = vrot.slane %v1133_v5, 2 }
 0x300   : > { %v1135_v11 = vadd.f32 %v1134_v8, %v1133_v5  ;;  %v1167_v13 = vrot.slane %v1166_v7, 2 }
 0x302   : > { %v1136_v20 = vrot.slane %v1135_v11, 1  ;;  %v1168_v14 = vadd.f32 %v1167_v13, %v1166_v7 }
 0x304   : > { %v1137_v21 = vadd.f32 %v1136_v20, %v1135_v11  ;;  %v1169_v22 = vrot.slane %v1168_v14, 1 }
 0x306   : > { %3603 = vpush %v1137_v21  ;;  %v1170_v23 = vadd.f32 %v1169_v22, %v1168_v14 }
 0x308   : > { %3605 = vpush %v1170_v23 }
 0x337   : > { %s3604_s15 = spop %3603 }
 0x338   : > { %s1139_s23 = smul.f32 0.00390625, %s3604_s15 }
 0x339   : > { %s3606_s24 = spop %3605 }
 0x33a   : > { %s1173_s28 = smul.f32 %s1139_s23, %s1139_s23  ;;  %v1175_v24 = vstv %s1139_s23 }
 0x33b   : > { %s1172_s29 = smul.f32 0.00390625, %s3606_s24  ;;  %v1176_v15 = vsub.f32 %v4156_v10, %v1175_v24  ;;  %v1177_v16 = vsub.f32 %v4162_v18, %v1175_v24  ;;  %v1178_v26 = vsub.f32 %v4154_v9, %v1175_v24  ;;  %v1179_v27 = vsub.f32 %v4160_v12, %v1175_v24  ;;  %v3475_v9 = vld [vmem:[%s5179_s2] ss:$0 sm:$0xff] }
 0x33c   : > { %v1180_v28 = vsub.f32 %v4184_v36, %v1175_v24  ;;  %v1181_v29 = vsub.f32 %v4192_v42, %v1175_v24  ;;  %v1182_v19 = vsub.f32 %v4182_v35, %v1175_v24  ;;  %v1183_v30 = vsub.f32 %v4190_v39, %v1175_v24  ;;  %v3476_v42 = vld [vmem:[%s5180_s3] ss:$0 sm:$0xff] }
 0x33d   : > { %s1174_s30 = ssub.f32 %s1172_s29, %s1173_s28 }
 0x33f   : > { %s1184_s14 = sadd.f32 1e-05, %s1174_s30 }
 0x341   : > { %v1185_v31 = vstv %s1184_s14 }
 0x342   : > { %3663 = vrsqrt.f32 %v1185_v31 }
 0x34c   : > { %v3664_v34 = vpop.eup %3663 }
 0x34d   : > { %3607 = vpush %v3664_v34 }
 0x37e   : > { %s3608_s15 = spop %3607 }
 0x37f   : > { %v1188_v10 = vstv %s3608_s15 }
 0x380   : > { %v1189_v12 = vmul.f32 %v1188_v10, %v1176_v15  ;;  %v1190_v18 = vmul.f32 %v1188_v10, %v1177_v16  ;;  %v1191_v36 = vmul.f32 %v1188_v10, %v1178_v26  ;;  %v1192_v37 = vmul.f32 %v1188_v10, %v1179_v27 }
 0x381   : > { %v1193_v38 = vmul.f32 %v1188_v10, %v1180_v28  ;;  %v1194_v35 = vmul.f32 %v1188_v10, %v1181_v29  ;;  %v1195_v41 = vmul.f32 %v1188_v10, %v1182_v19  ;;  %v1196_v39 = vmul.f32 %v1188_v10, %v1183_v30 }
 0x382   : > { %v1204_v43 = vmul.f32 %v3475_v9, %v1189_v12  ;;  %v1205_v44 = vmul.f32 %v3475_v9, %v1190_v18  ;;  %v1206_v45 = vmul.f32 %v3475_v9, %v1191_v36  ;;  %v1207_v49 = vmul.f32 %v3475_v9, %v1192_v37 }
 0x383   : > { %v1208_v50 = vmul.f32 %v3475_v9, %v1193_v38  ;;  %v1209_v51 = vmul.f32 %v3475_v9, %v1194_v35  ;;  %v1210_v52 = vmul.f32 %v3475_v9, %v1195_v41  ;;  %v1211_v54 = vmul.f32 %v3475_v9, %v1196_v39 }
 0x384   : > { %v4236_v55 = vadd.f32 %v3476_v42, %v1204_v43  ;;  %v4238_v56 = vadd.f32 %v3476_v42, %v1205_v44  ;;  %v4240_v57 = vadd.f32 %v3476_v42, %v1206_v45  ;;  %v4242_v59 = vadd.f32 %v3476_v42, %v1207_v49 }
 0x385   : > { %v4244_v60 = vadd.f32 %v3476_v42, %v1208_v50  ;;  %v4246_v61 = vadd.f32 %v3476_v42, %v1209_v51  ;;  %v4248_v62 = vadd.f32 %v3476_v42, %v1210_v52  ;;  %v4250_v63 = vadd.f32 %v3476_v42, %v1211_v54  ;;  %v1340_v50 = vpop.permute.xlu0 %1339 }
 0x386   : > { %v1227_v0 = vmul.f32 %v4236_v55, %v4236_v55  ;;  %v1228_v1 = vmul.f32 %v4238_v56, %v4238_v56  ;;  %v1229_v2 = vmul.f32 %v4240_v57, %v4240_v57  ;;  %v1230_v3 = vmul.f32 %v4242_v59, %v4242_v59  ;;  %1363 = vst.msk [vmem:[#allocation3] sm:$0xff] %vm648_vm3, %v1340_v50 }
 0x387   : > { %v1231_v5 = vmul.f32 %v4244_v60, %v4244_v60  ;;  %v1232_v6 = vmul.f32 %v4246_v61, %v4246_v61  ;;  %v1233_v7 = vmul.f32 %v4248_v62, %v4248_v62  ;;  %v1234_v8 = vmul.f32 %v4250_v63, %v4250_v63 }
 0x388   : > { %v1235_v11 = vmul.f32 %v1227_v0, %v4236_v55  ;;  %v1236_v13 = vmul.f32 %v1228_v1, %v4238_v56  ;;  %v1237_v20 = vmul.f32 %v1229_v2, %v4240_v57  ;;  %v1238_v14 = vmul.f32 %v1230_v3, %v4242_v59 }
 0x389   : > { %v1239_v21 = vmul.f32 %v1231_v5, %v4244_v60  ;;  %v1240_v22 = vmul.f32 %v1232_v6, %v4246_v61  ;;  %v1241_v23 = vmul.f32 %v1233_v7, %v4248_v62  ;;  %v1242_v24 = vmul.f32 %v1234_v8, %v4250_v63  ;;  %v1388_v8 = vpop.permute.xlu0 %1387 }
 0x38a   : > { %v1243_v15 = vmul.f32 0.044715, %v1235_v11  ;;  %v1244_v16 = vmul.f32 0.044715, %v1236_v13  ;;  %v1245_v26 = vmul.f32 0.044715, %v1237_v20 }
 0x38b   : > { %v1246_v27 = vmul.f32 0.044715, %v1238_v14  ;;  %v1247_v28 = vmul.f32 0.044715, %v1239_v21  ;;  %v1248_v29 = vmul.f32 0.044715, %v1240_v22 }
 0x38c   : > { %v1249_v19 = vmul.f32 0.044715, %v1241_v23  ;;  %v1250_v30 = vmul.f32 0.044715, %v1242_v24  ;;  %v1251_v31 = vadd.f32 %v1243_v15, %v4236_v55  ;;  %v1252_v34 = vadd.f32 %v1244_v16, %v4238_v56  ;;  %1411 = vst.msk [vmem:[#allocation3] sm:$0xff] %vm697_vm4, %v1388_v8 }
 0x38d   : > { %v1253_v10 = vadd.f32 %v1245_v26, %v4240_v57  ;;  %v1254_v9 = vadd.f32 %v1246_v27, %v4242_v59  ;;  %v1255_v12 = vadd.f32 %v1247_v28, %v4244_v60  ;;  %v1256_v18 = vadd.f32 %v1248_v29, %v4246_v61 }
 0x38e   : > { %v1257_v36 = vadd.f32 %v1249_v19, %v4248_v62  ;;  %v1259_v37 = vmul.f32 0.7978846, %v1251_v31  ;;  %v1260_v38 = vmul.f32 0.7978846, %v1252_v34  ;;  %v1258_v35 = vadd.f32 %v1250_v30, %v4250_v63 }
 0x38f   : > { %v1261_v41 = vmul.f32 0.7978846, %v1253_v10  ;;  %v1262_v39 = vmul.f32 0.7978846, %v1254_v9  ;;  %v1263_v42 = vmul.f32 0.7978846, %v1255_v12 }
 0x390   : > { %3665 = vtanh.f32 %v1259_v37  ;;  %v1264_v43 = vmul.f32 0.7978846, %v1256_v18  ;;  %v1265_v44 = vmul.f32 0.7978846, %v1257_v36  ;;  %v1266_v45 = vmul.f32 0.7978846, %v1258_v35 }
 0x391   : > { %3667 = vtanh.f32 %v1260_v38 }
 0x392   : > { %3669 = vtanh.f32 %v1261_v41 }
 0x393   : > { %3671 = vtanh.f32 %v1262_v39 }
 0x394   : > { %3673 = vtanh.f32 %v1263_v42  ;;  %v3652_v42 = vld [vmem:[%s5181_s4] sm:$0xff]  }
 0x395   : > { %3675 = vtanh.f32 %v1264_v43  ;;  %3553 = vmatprep.subr.bf16.mxu1 %v3652_v42 }
 0x396   : > { %3677 = vtanh.f32 %v1265_v44  ;;  %3554 = vmatpush3.bf16.msra.mxu1 %v3652_v42  ;;  %v3653_v44 = vld [vmem:[%s5181_s4 + $0x8] sm:$0xff]  }
 0x397   : > { %3679 = vtanh.f32 %v1266_v45  ;;  %3555 = vmatprep.subr.bf16.mxu1 %v3653_v44  ;;  %v3654_v45 = vld [vmem:[%s5181_s4 + $0x10] ss:$0 sps:$4 sm:$0x33]  }
 0x39a   : > { %v3666_v49 = vpop.eup %3665  ;;  %3556 = vmatpush3.bf16.msra.mxu1 %v3653_v44 }
 0x39b   : > { %v3668_v51 = vpop.eup %3667  ;;  %v1275_v52 = vadd.f32 1.0, %v3666_v49  ;;  %3600 = vmatprep.subr.msk.bf16.mxu1 %vm1046_vm5, %v3654_v45  ;;  %v1752_v49 = vsel %vm1046_vm5, %v3654_v45, 0 }
 0x39c   : > { %v3670_v54 = vpop.eup %3669  ;;  %v1276_v0 = vadd.f32 1.0, %v3668_v51 }
 0x39d   : > { %v3672_v1 = vpop.eup %3671  ;;  %v1277_v2 = vadd.f32 1.0, %v3670_v54  ;;  %v1283_v3 = vmul.f32 0.5, %v1275_v52 }
 0x39e   : > { %v3674_v5 = vpop.eup %3673  ;;  %v1278_v6 = vadd.f32 1.0, %v3672_v1  ;;  %v1284_v7 = vmul.f32 0.5, %v1276_v0  ;;  %3558 = vmatpush3.bf16.msra.mxu1 %v1752_v49 }
 0x39f   : > { %v3676_v11 = vpop.eup %3675  ;;  %v1279_v13 = vadd.f32 1.0, %v3674_v5  ;;  %v1285_v20 = vmul.f32 0.5, %v1277_v2  ;;  %v1291_v14 = vmul.f32 %v1283_v3, %v4236_v55  ;;  %v4381_v5 = vpop.permute.xlu1 %1593 }
 0x3a0   : > { %v3678_v21 = vpop.eup %3677  ;;  %v1280_v22 = vadd.f32 1.0, %v3676_v11  ;;  %v1286_v23 = vmul.f32 0.5, %v1278_v6  ;;  %v1292_v24 = vmul.f32 %v1284_v7, %v4238_v56 }
 0x3a1   : > { %v3680_v15 = vpop.eup %3679  ;;  %v1281_v16 = vadd.f32 1.0, %v3678_v21  ;;  %v1287_v26 = vmul.f32 0.5, %v1279_v13  ;;  %v1293_v27 = vmul.f32 %v1285_v20, %v4240_v57  ;;  %1299 = vst.msk [vmem:[#allocation2 + $0x11] sm:$0xff] %vm558_vm2, %v1291_v14 }
 0x3a2   : > { %v1282_v28 = vadd.f32 1.0, %v3680_v15  ;;  %v1288_v29 = vmul.f32 0.5, %v1280_v22  ;;  %v1294_v19 = vmul.f32 %v1286_v23, %v4242_v59  ;;  %1300 = vst.msk [vmem:[#allocation2 + $0x21] sm:$0xff] %vm558_vm2, %v1292_v24 }
 0x3a3   : > { %v1289_v55 = vmul.f32 0.5, %v1281_v16  ;;  %v1295_v30 = vmul.f32 %v1287_v26, %v4244_v60  ;;  %1301 = vst.msk [vmem:[#allocation2 + $0x31] sm:$0xff] %vm558_vm2, %v1293_v27  ;;  %v4387_v6 = vpop.permute.xlu1 %1641 }
 0x3a4   : > { %v1290_v31 = vmul.f32 0.5, %v1282_v28  ;;  %v1296_v56 = vmul.f32 %v1288_v29, %v4246_v61  ;;  %1302 = vst.msk [vmem:[#allocation2 + $0x41] sm:$0xff] %vm558_vm2, %v1294_v19 }
 0x3a5   : > { %v1297_v57 = vmul.f32 %v1289_v55, %v4248_v62  ;;  %1303 = vst.msk [vmem:[#allocation2 + $0x51] sm:$0xff] %vm558_vm2, %v1295_v30 }
 0x3a6   : > { %v1298_v34 = vmul.f32 %v1290_v31, %v4250_v63  ;;  %1304 = vst.msk [vmem:[#allocation2 + $0x61] sm:$0xff] %vm558_vm2, %v1296_v56 }
 0x3a7   : > { %1305 = vst.msk [vmem:[#allocation2 + $0x71] sm:$0xff] %vm558_vm2, %v1297_v57 }
 0x3a8   : > { %1306 = vst.msk [vmem:[#allocation2 + $0x81] sm:$0xff] %vm558_vm2, %v1298_v34  ;;  %v1324_v59 = vld [vmem:[#allocation2 + $0x11] sm:$0xff] }
 0x3a9   : > { %v1419_v60 = vld [vmem:[#allocation2 + $0x10] sm:$0xff]  ;;  %v1325_v10 = vld [vmem:[#allocation2 + $0x21] sm:$0xff]  ;;  %1341 = vrot.lane.b32.xlu1 %v1324_v59, %s3729_s16 }
 0x3aa   : > { %v1420_v61 = vld [vmem:[#allocation2 + $0x20] sm:$0xff]  ;;  %1316 = vst.msk [vmem:[#allocation3 + $0x8] sm:$0xff] %vm558_vm2, %v1419_v60  ;;  %1343 = vrot.lane.b32.xlu0 %v1325_v10, %s3729_s16  ;;  %v1421_v62 = vld [vmem:[#allocation2 + $0x30] sm:$0xff] }
 0x3ab   : > { %1317 = vst.msk [vmem:[#allocation3 + $0x10] sm:$0xff] %vm558_vm2, %v1420_v61  ;;  %v1422_v63 = vld [vmem:[#allocation2 + $0x40] sm:$0xff]  ;;  %1318 = vst.msk [vmem:[#allocation3 + $0x18] sm:$0xff] %vm558_vm2, %v1421_v62  ;;  %v1326_v9 = vld [vmem:[#allocation2 + $0x31] sm:$0xff] }
 0x3ac   : > { %v1566_v12 = vld [vmem:[#allocation2 + $0x50] sm:$0xff]  ;;  %1319 = vst.msk [vmem:[#allocation3 + $0x20] sm:$0xff] %vm558_vm2, %v1422_v63  ;;  %v1373_v18 = vld [vmem:[#allocation2 + $0x22] sm:$0xff] }
 0x3ad   : > { %1345 = vrot.lane.b32.xlu1 %v1326_v9, %s3729_s16  ;;  %v4309_v36 = vld [vmem:[#allocation2 + $0x60] sm:$0xff]  ;;  %1320 = vst.msk [vmem:[#allocation3 + $0x28] sm:$0xff] %vm558_vm2, %v1566_v12  ;;  %v1372_v38 = vld [vmem:[#allocation2 + $0x12] sm:$0xff] }
 0x3ae   : > { %1391 = vrot.lane.b32.xlu0 %v1373_v18, %s3730_s17  ;;  %v4313_v37 = vld [vmem:[#allocation2 + $0x70] sm:$0xff]  ;;  %1321 = vst.msk [vmem:[#allocation3 + $0x30] sm:$0xff] %vm558_vm2, %v4309_v36  ;;  %v1470_v41 = vld [vmem:[#allocation2 + $0x41] sm:$0xff] }
 0x3af   : > { %1322 = vst.msk [vmem:[#allocation3 + $0x38] sm:$0xff] %vm558_vm2, %v4313_v37  ;;  %v1374_v35 = vld [vmem:[#allocation2 + $0x32] sm:$0xff]  ;;  %v1518_v39 = vld [vmem:[#allocation2 + $0x42] sm:$0xff] }
 0x3b0   : > { %v1614_v43 = vld [vmem:[#allocation2 + $0x51] sm:$0xff]  ;;  %v1329_v50 = vld [vmem:[#allocation2 + $0x61] sm:$0xff] }
 0x3b1   : > { %1389 = vrot.lane.b32.xlu1 %v1372_v38, %s3730_s17  ;;  %v1662_v51 = vld [vmem:[#allocation2 + $0x52] sm:$0xff]  ;;  %v1377_v54 = vld [vmem:[#allocation2 + $0x62] sm:$0xff] }
 0x3b2   : > { %1435 = vrot.lane.b32.xlu0 %v1419_v60, %s3731_s18  ;;  %v1330_v52 = vld [vmem:[#allocation2 + $0x71] sm:$0xff]  ;;  %v1426_v1 = vld [vmem:[#allocation2 + $0x80] sm:$0xff] }
 0x3b3   : > { %v1378_v0 = vld [vmem:[#allocation2 + $0x72] sm:$0xff]  ;;  %v1474_v2 = vld [vmem:[#allocation2 + $0x81] sm:$0xff] }
 0x3b4   : > { %v1522_v3 = vld [vmem:[#allocation2 + $0x82] sm:$0xff] }
 0x3b5   : > { %1393 = vrot.lane.b32.xlu1 %v1374_v35, %s3730_s17 }
 0x3b6   : > { %1439 = vrot.lane.b32.xlu0 %v1421_v62, %s3731_s18 }
 0x3b9   : > { %1437 = vrot.lane.b32.xlu1 %v1420_v61, %s3731_s18 }
 0x3ba   : > { %1483 = vrot.lane.b32.xlu0 %v1324_v59, %s3732_s19 }
 0x3bd   : > { %1441 = vrot.lane.b32.xlu1 %v1422_v63, %s3731_s18 }
 0x3be   : > { %1487 = vrot.lane.b32.xlu0 %v1326_v9, %s3732_s19 }
 0x3c1   : > { %1485 = vrot.lane.b32.xlu1 %v1325_v10, %s3732_s19 }
 0x3c2   : > { %1531 = vrot.lane.b32.xlu0 %v1372_v38, %s3733_s20 }
 0x3c5   : > { %1489 = vrot.lane.b32.xlu1 %v1470_v41, %s3732_s19 }
 0x3c6   : > { %1535 = vrot.lane.b32.xlu0 %v1374_v35, %s3733_s20 }
 0x3c9   : > { %1533 = vrot.lane.b32.xlu1 %v1373_v18, %s3733_s20 }
 0x3ca   : > { %1579 = vrot.lane.b32.xlu0 %v1420_v61, %s3734_s21 }
 0x3cd   : > { %1537 = vrot.lane.b32.xlu1 %v1518_v39, %s3733_s20 }
 0x3ce   : > { %1583 = vrot.lane.b32.xlu0 %v1422_v63, %s3734_s21 }
 0x3d1   : > { %1581 = vrot.lane.b32.xlu1 %v1421_v62, %s3734_s21 }
 0x3d2   : > { %1627 = vrot.lane.b32.xlu0 %v1325_v10, %s3735_s22 }
 0x3d5   : > { %1585 = vrot.lane.b32.xlu1 %v1566_v12, %s3734_s21 }
 0x3d6   : > { %1631 = vrot.lane.b32.xlu0 %v1470_v41, %s3735_s22 }
 0x3d9   : > { %1629 = vrot.lane.b32.xlu1 %v1326_v9, %s3735_s22 }
 0x3da   : > { %1675 = vrot.lane.b32.xlu0 %v1373_v18, %s3736_s27 }
 0x3dd   : > { %1633 = vrot.lane.b32.xlu1 %v1614_v43, %s3735_s22 }
 0x3de   : > { %1347 = vrot.lane.b32.xlu0 %v1470_v41, %s3729_s16 }
 0x3e1   : > { %1677 = vrot.lane.b32.xlu1 %v1374_v35, %s3736_s27 }
 0x3e2   : > { %1679 = vrot.lane.b32.xlu0 %v1518_v39, %s3736_s27 }
 0x3e5   : > { %1349 = vrot.lane.b32.xlu1 %v1614_v43, %s3729_s16 }
 0x3e6   : > { %1351 = vrot.lane.b32.xlu0 %v1329_v50, %s3729_s16 }
 0x3e9   : > { %1681 = vrot.lane.b32.xlu1 %v1662_v51, %s3736_s27 }
 0x3ea   : > { %1395 = vrot.lane.b32.xlu0 %v1518_v39, %s3730_s17 }
 0x3ed   : > { %1353 = vrot.lane.b32.xlu1 %v1330_v52, %s3729_s16 }
 0x3ee   : > { %1399 = vrot.lane.b32.xlu0 %v1377_v54, %s3730_s17 }
 0x3f1   : > { %1397 = vrot.lane.b32.xlu1 %v1662_v51, %s3730_s17 }
 0x3f2   : > { %1443 = vrot.lane.b32.xlu0 %v1566_v12, %s3731_s18 }
 0x3f5   : > { %1401 = vrot.lane.b32.xlu1 %v1378_v0, %s3730_s17 }
 0x3f6   : > { %1447 = vrot.lane.b32.xlu0 %v4313_v37, %s3731_s18 }
 0x3f9   : > { %1445 = vrot.lane.b32.xlu1 %v4309_v36, %s3731_s18 }
 0x3fa   : > { %1491 = vrot.lane.b32.xlu0 %v1614_v43, %s3732_s19 }
 0x3fd   : > { %1449 = vrot.lane.b32.xlu1 %v1426_v1, %s3731_s18 }
 0x3fe   : > { %1495 = vrot.lane.b32.xlu0 %v1330_v52, %s3732_s19 }
 0x401   : > { %1493 = vrot.lane.b32.xlu1 %v1329_v50, %s3732_s19 }
 0x402   : > { %1539 = vrot.lane.b32.xlu0 %v1662_v51, %s3733_s20 }
 0x405   : > { %1497 = vrot.lane.b32.xlu1 %v1474_v2, %s3732_s19 }
 0x406   : > { %1543 = vrot.lane.b32.xlu0 %v1378_v0, %s3733_s20 }
 0x409   : > { %1541 = vrot.lane.b32.xlu1 %v1377_v54, %s3733_s20 }
 0x40a   : > { %1587 = vrot.lane.b32.xlu0 %v4309_v36, %s3734_s21 }
 0x40d   : > { %1545 = vrot.lane.b32.xlu1 %v1522_v3, %s3733_s20 }
 0x40e   : > { %1591 = vrot.lane.b32.xlu0 %v1426_v1, %s3734_s21 }
 0x411   : > { %1589 = vrot.lane.b32.xlu1 %v4313_v37, %s3734_s21 }
 0x412   : > { %1635 = vrot.lane.b32.xlu0 %v1329_v50, %s3735_s22 }
 0x415   : > { %1637 = vrot.lane.b32.xlu1 %v1330_v52, %s3735_s22 }
 0x416   : > { %1639 = vrot.lane.b32.xlu0 %v1474_v2, %s3735_s22 }
 0x419   : > { %1685 = vrot.lane.b32.xlu1 %v1378_v0, %s3736_s27 }
 0x41a   : > { %1683 = vrot.lane.b32.xlu0 %v1377_v54, %s3736_s27 }
 0x41b   : > { %v1342_v7 = vpop.permute.xlu1 %1341 }
 0x41c   : > { %1364 = vst.msk [vmem:[#allocation3 + $0x8] sm:$0xff] %vm648_vm3, %v1342_v7  ;;  %v1344_v8 = vpop.permute.xlu0 %1343 }
 0x41d   : > { %1365 = vst.msk [vmem:[#allocation3 + $0x10] sm:$0xff] %vm648_vm3, %v1344_v8  ;;  %1689 = vrot.lane.b32.xlu1 %v4086_v53, %s3736_s27 }
 0x41e   : > { %1687 = vrot.lane.b32.xlu0 %v1522_v3, %s3736_s27 }
 0x41f   : > { %v1346_v11 = vpop.permute.xlu1 %1345 }
 0x420   : > { %1366 = vst.msk [vmem:[#allocation3 + $0x18] sm:$0xff] %vm648_vm3, %v1346_v11  ;;  %v1392_v13 = vpop.permute.xlu0 %1391 }
 0x421   : > { %1413 = vst.msk [vmem:[#allocation3 + $0x10] sm:$0xff] %vm697_vm4, %v1392_v13 }
 0x423   : > { %v1390_v20 = vpop.permute.xlu1 %1389 }
 0x424   : > { %1412 = vst.msk [vmem:[#allocation3 + $0x8] sm:$0xff] %vm697_vm4, %v1390_v20  ;;  %v1436_v14 = vpop.permute.xlu0 %1435 }
 0x425   : > { %1459 = vst.msk [vmem:[#allocation3] sm:$0xff] %vm746_vm6, %v1436_v14 }
 0x427   : > { %v1394_v21 = vpop.permute.xlu1 %1393 }
 0x428   : > { %1414 = vst.msk [vmem:[#allocation3 + $0x18] sm:$0xff] %vm697_vm4, %v1394_v21  ;;  %v1440_v22 = vpop.permute.xlu0 %1439 }
 0x429   : > { %1461 = vst.msk [vmem:[#allocation3 + $0x10] sm:$0xff] %vm746_vm6, %v1440_v22 }
 0x42b   : > { %v1438_v53 = vpop.permute.xlu1 %1437 }
 0x42c   : > { %1460 = vst.msk [vmem:[#allocation3 + $0x8] sm:$0xff] %vm746_vm6, %v1438_v53  ;;  %v1484_v23 = vpop.permute.xlu0 %1483 }
 0x42d   : > { %1507 = vst.msk [vmem:[#allocation3] sm:$0xff] %vm795_vm7, %v1484_v23 }
 0x42f   : > { %v1442_v24 = vpop.permute.xlu1 %1441 }
 0x430   : > { %1462 = vst.msk [vmem:[#allocation3 + $0x18] sm:$0xff] %vm746_vm6, %v1442_v24  ;;  %v1488_v15 = vpop.permute.xlu0 %1487 }
 0x431   : > { %1509 = vst.msk [vmem:[#allocation3 + $0x10] sm:$0xff] %vm795_vm7, %v1488_v15 }
 0x433   : > { %v1486_v16 = vpop.permute.xlu1 %1485 }
 0x434   : > { %1508 = vst.msk [vmem:[#allocation3 + $0x8] sm:$0xff] %vm795_vm7, %v1486_v16  ;;  %v1532_v26 = vpop.permute.xlu0 %1531 }
 0x435   : > { %1555 = vst.msk [vmem:[#allocation3] sm:$0xff] %vm844_vm8, %v1532_v26 }
 0x437   : > { %v1490_v27 = vpop.permute.xlu1 %1489 }
 0x438   : > { %1510 = vst.msk [vmem:[#allocation3 + $0x18] sm:$0xff] %vm795_vm7, %v1490_v27  ;;  %v1536_v28 = vpop.permute.xlu0 %1535 }
 0x439   : > { %1557 = vst.msk [vmem:[#allocation3 + $0x10] sm:$0xff] %vm844_vm8, %v1536_v28 }
 0x43b   : > { %v1534_v29 = vpop.permute.xlu1 %1533 }
 0x43c   : > { %1556 = vst.msk [vmem:[#allocation3 + $0x8] sm:$0xff] %vm844_vm8, %v1534_v29  ;;  %v1580_v19 = vpop.permute.xlu0 %1579 }
 0x43d   : > { %1603 = vst.msk [vmem:[#allocation3] sm:$0xff] %vm894_vm9, %v1580_v19 }
 0x43f   : > { %v1538_v55 = vpop.permute.xlu1 %1537 }
 0x440   : > { %1558 = vst.msk [vmem:[#allocation3 + $0x18] sm:$0xff] %vm844_vm8, %v1538_v55  ;;  %v1584_v30 = vpop.permute.xlu0 %1583 }
 0x441   : > { %1605 = vst.msk [vmem:[#allocation3 + $0x10] sm:$0xff] %vm894_vm9, %v1584_v30 }
 0x443   : > { %v1582_v31 = vpop.permute.xlu1 %1581 }
 0x444   : > { %1604 = vst.msk [vmem:[#allocation3 + $0x8] sm:$0xff] %vm894_vm9, %v1582_v31  ;;  %v1628_v56 = vpop.permute.xlu0 %1627 }
 0x445   : > { %1651 = vst.msk [vmem:[#allocation3] sm:$0xff] %vm943_vm10, %v1628_v56 }
 0x447   : > { %v1586_v57 = vpop.permute.xlu1 %1585 }
 0x448   : > { %1606 = vst.msk [vmem:[#allocation3 + $0x18] sm:$0xff] %vm894_vm9, %v1586_v57  ;;  %v1632_v34 = vpop.permute.xlu0 %1631 }
 0x449   : > { %1653 = vst.msk [vmem:[#allocation3 + $0x10] sm:$0xff] %vm943_vm10, %v1632_v34 }
 0x44b   : > { %v1630_v59 = vpop.permute.xlu1 %1629 }
 0x44c   : > { %1652 = vst.msk [vmem:[#allocation3 + $0x8] sm:$0xff] %vm943_vm10, %v1630_v59  ;;  %v1676_v60 = vpop.permute.xlu0 %1675 }
 0x44d   : > { %1699 = vst.msk [vmem:[#allocation3] sm:$0xff] %vm992_vm11, %v1676_v60 }
 0x44f   : > { %v1634_v10 = vpop.permute.xlu1 %1633 }
 0x450   : > { %1654 = vst.msk [vmem:[#allocation3 + $0x18] sm:$0xff] %vm943_vm10, %v1634_v10  ;;  %v1348_v61 = vpop.permute.xlu0 %1347 }
 0x451   : > { %1367 = vst.msk [vmem:[#allocation3 + $0x20] sm:$0xff] %vm648_vm3, %v1348_v61 }
 0x453   : > { %v1678_v62 = vpop.permute.xlu1 %1677 }
 0x454   : > { %1700 = vst.msk [vmem:[#allocation3 + $0x8] sm:$0xff] %vm992_vm11, %v1678_v62  ;;  %v1680_v63 = vpop.permute.xlu0 %1679  ;;  %v1707_v36 = vld [vmem:[#allocation3] sm:$0xff] }
 0x455   : > { %1701 = vst.msk [vmem:[#allocation3 + $0x10] sm:$0xff] %vm992_vm11, %v1680_v63 }
 0x457   : > { %v1350_v9 = vpop.permute.xlu1 %1349 }
 0x458   : > { %1368 = vst.msk [vmem:[#allocation3 + $0x28] sm:$0xff] %vm648_vm3, %v1350_v9  ;;  %v1352_v12 = vpop.permute.xlu0 %1351 }
 0x459   : > { %1369 = vst.msk [vmem:[#allocation3 + $0x30] sm:$0xff] %vm648_vm3, %v1352_v12 }
 0x45b   : > { %v1682_v18 = vpop.permute.xlu1 %1681  ;;  %v1708_v37 = vld [vmem:[#allocation3 + $0x8] sm:$0xff] }
 0x45c   : > { %1702 = vst.msk [vmem:[#allocation3 + $0x18] sm:$0xff] %vm992_vm11, %v1682_v18  ;;  %v1396_v38 = vpop.permute.xlu0 %1395  ;;  %v1715_v35 = vpack.c.bf16 %v1708_v37, %v1707_v36  ;;  %v1709_v43 = vld [vmem:[#allocation3 + $0x10] sm:$0xff] }
 0x45d   : > { %1415 = vst.msk [vmem:[#allocation3 + $0x20] sm:$0xff] %vm697_vm4, %v1396_v38 }
 0x45e   : > { %3559 = vmatprep.mubr.msk.bf16.mxu1 %vm1033_vm12, %v1715_v35 }
 0x45f   : > { %v1354_v41 = vpop.permute.xlu1 %1353 }
 0x460   : > { %1370 = vst.msk [vmem:[#allocation3 + $0x38] sm:$0xff] %vm648_vm3, %v1354_v41  ;;  %v1400_v39 = vpop.permute.xlu0 %1399 }
 0x461   : > { %1417 = vst.msk [vmem:[#allocation3 + $0x30] sm:$0xff] %vm697_vm4, %v1400_v39 }
 0x463   : > { %v1398_v42 = vpop.permute.xlu1 %1397  ;;  %v1710_v44 = vld [vmem:[#allocation3 + $0x18] sm:$0xff] }
 0x464   : > { %1416 = vst.msk [vmem:[#allocation3 + $0x28] sm:$0xff] %vm697_vm4, %v1398_v42  ;;  %v1444_v45 = vpop.permute.xlu0 %1443  ;;  %v1716_v49 = vpack.c.bf16 %v1710_v44, %v1709_v43 }
 0x465   : > { %1463 = vst.msk [vmem:[#allocation3 + $0x20] sm:$0xff] %vm746_vm6, %v1444_v45 }
 0x466   : > { %3560 = vmatmul.mubr.msk.bf16.vlgmr.msra.gmra.mrb[0].mxu1 %vm1033_vm12, %v1716_v49 }
 0x467   : > { %v1402_v50 = vpop.permute.xlu1 %1401 }
 0x468   : > { %1418 = vst.msk [vmem:[#allocation3 + $0x38] sm:$0xff] %vm697_vm4, %v1402_v50  ;;  %v1448_v51 = vpop.permute.xlu0 %1447 }
 0x469   : > { %1465 = vst.msk [vmem:[#allocation3 + $0x30] sm:$0xff] %vm746_vm6, %v1448_v51 }
 0x46b   : > { %v1446_v52 = vpop.permute.xlu1 %1445 }
 0x46c   : > { %1464 = vst.msk [vmem:[#allocation3 + $0x28] sm:$0xff] %vm746_vm6, %v1446_v52  ;;  %v1492_v54 = vpop.permute.xlu0 %1491 }
 0x46d   : > { %1511 = vst.msk [vmem:[#allocation3 + $0x20] sm:$0xff] %vm795_vm7, %v1492_v54 }
 0x46f   : > { %v1450_v0 = vpop.permute.xlu1 %1449 }
 0x470   : > { %1466 = vst.msk [vmem:[#allocation3 + $0x38] sm:$0xff] %vm746_vm6, %v1450_v0  ;;  %v1496_v1 = vpop.permute.xlu0 %1495 }
 0x471   : > { %1513 = vst.msk [vmem:[#allocation3 + $0x30] sm:$0xff] %vm795_vm7, %v1496_v1 }
 0x473   : > { %v1494_v2 = vpop.permute.xlu1 %1493 }
 0x474   : > { %1512 = vst.msk [vmem:[#allocation3 + $0x28] sm:$0xff] %vm795_vm7, %v1494_v2  ;;  %v1540_v3 = vpop.permute.xlu0 %1539 }
 0x475   : > { %1559 = vst.msk [vmem:[#allocation3 + $0x20] sm:$0xff] %vm844_vm8, %v1540_v3 }
 0x477   : > { %v1498_v7 = vpop.permute.xlu1 %1497 }
 0x478   : > { %1514 = vst.msk [vmem:[#allocation3 + $0x38] sm:$0xff] %vm795_vm7, %v1498_v7  ;;  %v1544_v8 = vpop.permute.xlu0 %1543 }
 0x479   : > { %1561 = vst.msk [vmem:[#allocation3 + $0x30] sm:$0xff] %vm844_vm8, %v1544_v8 }
 0x47b   : > { %v1542_v11 = vpop.permute.xlu1 %1541 }
 0x47c   : > { %1560 = vst.msk [vmem:[#allocation3 + $0x28] sm:$0xff] %vm844_vm8, %v1542_v11  ;;  %v1588_v13 = vpop.permute.xlu0 %1587 }
 0x47d   : > { %1607 = vst.msk [vmem:[#allocation3 + $0x20] sm:$0xff] %vm894_vm9, %v1588_v13 }
 0x47f   : > { %v1546_v20 = vpop.permute.xlu1 %1545 }
 0x480   : > { %1562 = vst.msk [vmem:[#allocation3 + $0x38] sm:$0xff] %vm844_vm8, %v1546_v20  ;;  %v1592_v14 = vpop.permute.xlu0 %1591 }
 0x481   : > { %1610 = vst.msk [vmem:[#allocation3 + $0x38] sm:$0xff] %vm894_vm9, %v4381_v5  ;;  %1609 = vst.msk [vmem:[#allocation3 + $0x30] sm:$0xff] %vm894_vm9, %v1592_v14 }
 0x482   : > { %1658 = vst.msk [vmem:[#allocation3 + $0x38] sm:$0xff] %vm943_vm10, %v4387_v6 }
 0x483   : > { %v1590_v21 = vpop.permute.xlu1 %1589 }
 0x484   : > { %1608 = vst.msk [vmem:[#allocation3 + $0x28] sm:$0xff] %vm894_vm9, %v1590_v21  ;;  %v1636_v22 = vpop.permute.xlu0 %1635 }
 0x485   : > { %1655 = vst.msk [vmem:[#allocation3 + $0x20] sm:$0xff] %vm943_vm10, %v1636_v22 }
 0x487   : > { %v1638_v53 = vpop.permute.xlu1 %1637 }
 0x488   : > { %1656 = vst.msk [vmem:[#allocation3 + $0x28] sm:$0xff] %vm943_vm10, %v1638_v53  ;;  %v1640_v23 = vpop.permute.xlu0 %1639 }
 0x489   : > { %1657 = vst.msk [vmem:[#allocation3 + $0x30] sm:$0xff] %vm943_vm10, %v1640_v23 }
 0x48b   : > { %v1686_v24 = vpop.permute.xlu1 %1685 }
 0x48c   : > { %1704 = vst.msk [vmem:[#allocation3 + $0x28] sm:$0xff] %vm992_vm11, %v1686_v24  ;;  %v1684_v5 = vpop.permute.xlu0 %1683 }
 0x48d   : > { %1703 = vst.msk [vmem:[#allocation3 + $0x20] sm:$0xff] %vm992_vm11, %v1684_v5 }
 0x48f   : > { %v1690_v15 = vpop.permute.xlu1 %1689 }
 0x490   : > { %1706 = vst.msk [vmem:[#allocation3 + $0x38] sm:$0xff] %vm992_vm11, %v1690_v15  ;;  %v1688_v6 = vpop.permute.xlu0 %1687 }
 0x491   : > { %1705 = vst.msk [vmem:[#allocation3 + $0x30] sm:$0xff] %vm992_vm11, %v1688_v6 }
 0x493   : > { %v1712_v16 = vld [vmem:[#allocation3 + $0x28] sm:$0xff] }
 0x494   : > { %v1711_v26 = vld [vmem:[#allocation3 + $0x20] sm:$0xff] }
 0x495   : > { %v1717_v27 = vpack.c.bf16 %v1712_v16, %v1711_v26 }
 0x497   : > { %3563 = vmatprep.mubr.msk.bf16.mxu1 %vm1033_vm12, %v1717_v27  ;;  %v1714_v28 = vld [vmem:[#allocation3 + $0x38] sm:$0xff] }
 0x498   : > { %v1713_v29 = vld [vmem:[#allocation3 + $0x30] sm:$0xff] }
 0x499   : > { %v1718_v19 = vpack.c.bf16 %v1714_v28, %v1713_v29 }
 0x49b   : > { %3564 = vmatmul.mubr.msk.bf16.gmra.mrb[4].mxu1 %vm1033_vm12, %v1718_v19 }
 0x539   : > { %v4463_v55 = vpop.f32.mrb[0].mxu1 }
 0x53a   : > { %v4465_v30 = vpop.f32.mrb[1].mxu1  ;;  %v1846_v34 = vmul.f32 %v4463_v55, %v4463_v55  ;;  %v1822_v62 = vsel %vm558_vm2, %v4463_v55, 0.0 }
 0x53b   : > { %v1844_v31 = vmul.f32 %v4465_v30, %v4465_v30  ;;  %v4469_v56 = vpop.f32.mrb[2].mxu1  ;;  %v1819_v59 = vsel %vm558_vm2, %v4465_v30, 0.0 }
 0x53c   : > { %v4471_v57 = vpop.f32.mrb[3].mxu1  ;;  %v1847_v9 = vmul.f32 %v4469_v56, %v4469_v56  ;;  %v1855_v37 = vsel %vm558_vm2, %v1846_v34, 0.0  ;;  %v1824_v38 = vsel %vm558_vm2, %v4469_v56, 0.0 }
 0x53d   : > { %v1820_v60 = vsel %vm558_vm2, %v4471_v57, 0.0  ;;  %v1845_v10 = vmul.f32 %v4471_v57, %v4471_v57  ;;  %v1852_v63 = vsel %vm558_vm2, %v1844_v31, 0.0 }
 0x53e   : > { %v1821_v61 = vadd.f32 %v1820_v60, %v1819_v59  ;;  %v1857_v39 = vsel %vm558_vm2, %v1847_v9, 0.0 }
 0x53f   : > { %v1853_v12 = vsel %vm558_vm2, %v1845_v10, 0.0 }
 0x540   : > { %v1823_v18 = vadd.f32 %v1822_v62, %v1821_v61  ;;  %v1854_v36 = vadd.f32 %v1853_v12, %v1852_v63 }
 0x542   : > { %v1856_v35 = vadd.f32 %v1855_v37, %v1854_v36  ;;  %v1825_v41 = vadd.f32 %v1824_v38, %v1823_v18 }
 0x544   : > { %v1858_v42 = vadd.f32 %v1857_v39, %v1856_v35 }
 0x56e   : > { %v4491_v43 = vpop.f32.mrb[4].mxu1 }
 0x56f   : > { %v4493_v44 = vpop.f32.mrb[5].mxu1  ;;  %v1850_v54 = vmul.f32 %v4491_v43, %v4491_v43  ;;  %v1830_v8 = vsel %vm558_vm2, %v4491_v43, 0.0 }
 0x570   : > { %v1826_v45 = vsel %vm558_vm2, %v4493_v44, 0.0  ;;  %v1848_v49 = vmul.f32 %v4493_v44, %v4493_v44  ;;  %v4499_v50 = vpop.f32.mrb[6].mxu1 }
 0x571   : > { %v1827_v51 = vadd.f32 %v1826_v45, %v1825_v41  ;;  %v4501_v52 = vpop.f32.mrb[7].mxu1  ;;  %v1851_v11 = vmul.f32 %v4499_v50, %v4499_v50  ;;  %v1863_v21 = vsel %vm558_vm2, %v1850_v54, 0.0  ;;  %v1832_v22 = vsel %vm558_vm2, %v4499_v50, 0.0 }
 0x572   : > { %v1859_v0 = vsel %vm558_vm2, %v1848_v49, 0.0  ;;  %v1828_v1 = vsel %vm558_vm2, %v4501_v52, 0.0  ;;  %v1849_v2 = vmul.f32 %v4501_v52, %v4501_v52 }
 0x573   : > { %v1860_v3 = vadd.f32 %v1859_v0, %v1858_v42  ;;  %v1829_v7 = vadd.f32 %v1828_v1, %v1827_v51  ;;  %v1865_v24 = vsel %vm558_vm2, %v1851_v11, 0.0  ;;  %v3485_v51 = vld [vmem:[%s5183_s6] ss:$0 sm:$0xff] }
 0x574   : > { %v1861_v13 = vsel %vm558_vm2, %v1849_v2, 0.0 }
 0x575   : > { %v1862_v20 = vadd.f32 %v1861_v13, %v1860_v3  ;;  %v1831_v14 = vadd.f32 %v1830_v8, %v1829_v7 }
 0x577   : > { %v1833_v53 = vadd.f32 %v1832_v22, %v1831_v14  ;;  %v1864_v23 = vadd.f32 %v1863_v21, %v1862_v20 }
 0x579   : > { %1834 = vadd.xlane.f32.xlu0 %v1833_v53  ;;  %v1866_v5 = vadd.f32 %v1865_v24, %v1864_v23 }
 0x57b   : > { %1867 = vadd.xlane.f32.xlu1 %v1866_v5 }
 0x58f   : > { %2051 = vrot.lane.b32.xlu0 %v4214_v46, %s3729_s16  ;;  %v4523_v46 = vld [vmem:[#allocation2 + $0x90] sm:$0xff] }
 0x590   : > { %2305 = vrot.lane.b32.xlu1 %v4523_v46, %s3734_s21 }
 0x593   : > { %2099 = vrot.lane.b32.xlu0 %v4218_v48, %s3730_s17  ;;  %v4527_v48 = vld [vmem:[#allocation2 + $0x91] sm:$0xff] }
 0x594   : > { %2353 = vrot.lane.b32.xlu1 %v4527_v48, %s3735_s22 }
 0x606   : > { %v1835_v15 = vpop.xlane.xlu0 %1834 }
 0x607   : > { %v1836_v6 = vrot.slane %v1835_v15, 4 }
 0x608   : > { %v1868_v16 = vpop.xlane.xlu1 %1867 }
 0x609   : > { %v1837_v26 = vadd.f32 %v1836_v6, %v1835_v15  ;;  %v1869_v27 = vrot.slane %v1868_v16, 4 }
 0x60b   : > { %v1870_v28 = vadd.f32 %v1869_v27, %v1868_v16  ;;  %v1838_v29 = vrot.slane %v1837_v26, 2 }
 0x60d   : > { %v1839_v19 = vadd.f32 %v1838_v29, %v1837_v26  ;;  %v1871_v31 = vrot.slane %v1870_v28, 2 }
 0x60f   : > { %v1840_v34 = vrot.slane %v1839_v19, 1  ;;  %v1872_v59 = vadd.f32 %v1871_v31, %v1870_v28 }
 0x611   : > { %v1841_v60 = vadd.f32 %v1840_v34, %v1839_v19  ;;  %v1873_v10 = vrot.slane %v1872_v59, 1 }
 0x613   : > { %3609 = vpush %v1841_v60  ;;  %v1874_v61 = vadd.f32 %v1873_v10, %v1872_v59 }
 0x615   : > { %3611 = vpush %v1874_v61 }
 0x644   : > { %s3610_s29 = spop %3609 }
 0x645   : > { %s1843_s30 = smul.f32 0.00390625, %s3610_s29 }
 0x646   : > { %s3612_s14 = spop %3611 }
 0x647   : > { %s1877_s15 = smul.f32 %s1843_s30, %s1843_s30  ;;  %v1879_v62 = vstv %s1843_s30 }
 0x648   : > { %s1876_s23 = smul.f32 0.00390625, %s3612_s14  ;;  %v1880_v63 = vsub.f32 %v4465_v30, %v1879_v62  ;;  %v1881_v9 = vsub.f32 %v4471_v57, %v1879_v62  ;;  %v1882_v12 = vsub.f32 %v4463_v55, %v1879_v62  ;;  %v1883_v18 = vsub.f32 %v4469_v56, %v1879_v62  ;;  %v3484_v55 = vld [vmem:[%s5182_s5] ss:$0 sm:$0xff] }
 0x649   : > { %v1884_v36 = vsub.f32 %v4493_v44, %v1879_v62  ;;  %v1885_v37 = vsub.f32 %v4501_v52, %v1879_v62  ;;  %v1886_v38 = vsub.f32 %v4491_v43, %v1879_v62  ;;  %v1887_v35 = vsub.f32 %v4499_v50, %v1879_v62 }
 0x64a   : > { %s1878_s24 = ssub.f32 %s1876_s23, %s1877_s15 }
 0x64c   : > { %s1888_s28 = sadd.f32 1e-05, %s1878_s24 }
 0x64e   : > { %v1889_v41 = vstv %s1888_s28 }
 0x64f   : > { %3681 = vrsqrt.f32 %v1889_v41 }
 0x659   : > { %v3682_v39 = vpop.eup %3681 }
 0x65a   : > { %3613 = vpush %v3682_v39 }
 0x68b   : > { %s3614_s29 = spop %3613 }
 0x68c   : > { %v1892_v30 = vstv %s3614_s29 }
 0x68d   : > { %v1893_v56 = vmul.f32 %v1892_v30, %v1880_v63  ;;  %v1894_v57 = vmul.f32 %v1892_v30, %v1881_v9  ;;  %v1895_v42 = vmul.f32 %v1892_v30, %v1882_v12  ;;  %v1896_v44 = vmul.f32 %v1892_v30, %v1883_v18 }
 0x68e   : > { %v1897_v45 = vmul.f32 %v1892_v30, %v1884_v36  ;;  %v1898_v43 = vmul.f32 %v1892_v30, %v1885_v37  ;;  %v1899_v49 = vmul.f32 %v1892_v30, %v1886_v38  ;;  %v1900_v50 = vmul.f32 %v1892_v30, %v1887_v35 }
 0x68f   : > { %v1908_v52 = vmul.f32 %v3484_v55, %v1893_v56  ;;  %v1909_v54 = vmul.f32 %v3484_v55, %v1894_v57  ;;  %v1910_v0 = vmul.f32 %v3484_v55, %v1895_v42  ;;  %v1911_v1 = vmul.f32 %v3484_v55, %v1896_v44 }
 0x690   : > { %v1912_v2 = vmul.f32 %v3484_v55, %v1897_v45  ;;  %v1913_v3 = vmul.f32 %v3484_v55, %v1898_v43  ;;  %v1914_v7 = vmul.f32 %v3484_v55, %v1899_v49  ;;  %v1915_v8 = vmul.f32 %v3484_v55, %v1900_v50 }
 0x691   : > { %v1923_v11 = vadd.f32 %v3485_v51, %v1908_v52  ;;  %v1924_v13 = vadd.f32 %v3485_v51, %v1909_v54  ;;  %v1925_v20 = vadd.f32 %v3485_v51, %v1910_v0  ;;  %v1926_v14 = vadd.f32 %v3485_v51, %v1911_v1  ;;  %v4601_v54 = vld [vmem:[#allocation2] sm:$0xff]  ;;  %v2052_v0 = vpop.permute.xlu0 %2051 }
 0x692   : > { %v1927_v21 = vadd.f32 %v3485_v51, %v1912_v2  ;;  %v1928_v22 = vadd.f32 %v3485_v51, %v1913_v3  ;;  %v1929_v53 = vadd.f32 %v3485_v51, %v1914_v7  ;;  %v1930_v23 = vadd.f32 %v3485_v51, %v1915_v8  ;;  %2027 = vst.msk [vmem:[#allocation3] sm:$0xff] %vm558_vm2, %v4601_v54 }
 0x693   : > { %v4546_v24 = vadd.f32 %v1923_v11, %v3905_v33  ;;  %v4549_v5 = vadd.f32 %v1924_v13, %v3903_v32  ;;  %v4552_v15 = vadd.f32 %v1925_v20, %v3913_v40  ;;  %v4555_v6 = vadd.f32 %v1926_v14, %v3919_v47  ;;  %2075 = vst.msk [vmem:[#allocation3] sm:$0xff] %vm648_vm3, %v2052_v0 }
 0x694   : > { %v4558_v16 = vadd.f32 %v1927_v21, %v3937_v58  ;;  %v4561_v26 = vadd.f32 %v1928_v22, %v3957_v4  ;;  %v4564_v27 = vadd.f32 %v1929_v53, %v3968_v17  ;;  %v4567_v33 = vadd.f32 %v1930_v23, %v3983_v25 }
 0x695   : > { %v1939_v32 = vmul.f32 %v4546_v24, %v4546_v24  ;;  %v1940_v40 = vmul.f32 %v4549_v5, %v4549_v5  ;;  %v1941_v47 = vmul.f32 %v4552_v15, %v4552_v15  ;;  %v1942_v58 = vmul.f32 %v4555_v6, %v4555_v6  ;;  %v2100_v2 = vpop.permute.xlu0 %2099 }
 0x696   : > { %v1943_v4 = vmul.f32 %v4558_v16, %v4558_v16  ;;  %v1944_v17 = vmul.f32 %v4561_v26, %v4561_v26  ;;  %v1945_v25 = vmul.f32 %v4564_v27, %v4564_v27  ;;  %v1946_v28 = vmul.f32 %v4567_v33, %v4567_v33  ;;  %2123 = vst.msk [vmem:[#allocation3] sm:$0xff] %vm697_vm4, %v2100_v2  ;;  %v4702_v2 = vpop.permute.xlu1 %2305 }
 0x697   : > { %v1947_v29 = vmul.f32 %v1939_v32, %v4546_v24  ;;  %v1948_v19 = vmul.f32 %v1940_v40, %v4549_v5  ;;  %v1949_v31 = vmul.f32 %v1941_v47, %v4552_v15  ;;  %v1950_v34 = vmul.f32 %v1942_v58, %v4555_v6 }
 0x698   : > { %v1951_v59 = vmul.f32 %v1943_v4, %v4558_v16  ;;  %v1952_v60 = vmul.f32 %v1944_v17, %v4561_v26  ;;  %v1953_v10 = vmul.f32 %v1945_v25, %v4564_v27  ;;  %v1954_v61 = vmul.f32 %v1946_v28, %v4567_v33 }
 0x699   : > { %v1955_v62 = vmul.f32 0.044715, %v1947_v29  ;;  %v1956_v63 = vmul.f32 0.044715, %v1948_v19  ;;  %v1957_v9 = vmul.f32 0.044715, %v1949_v31 }
 0x69a   : > { %v1958_v12 = vmul.f32 0.044715, %v1950_v34  ;;  %v1959_v18 = vmul.f32 0.044715, %v1951_v59  ;;  %v1960_v36 = vmul.f32 0.044715, %v1952_v60 }
 0x69b   : > { %v1961_v37 = vmul.f32 0.044715, %v1953_v10  ;;  %v1962_v38 = vmul.f32 0.044715, %v1954_v61  ;;  %v1963_v35 = vadd.f32 %v1955_v62, %v4546_v24  ;;  %v1964_v41 = vadd.f32 %v1956_v63, %v4549_v5 }
 0x69c   : > { %v1965_v39 = vadd.f32 %v1957_v9, %v4552_v15  ;;  %v1966_v30 = vadd.f32 %v1958_v12, %v4555_v6  ;;  %v1967_v55 = vadd.f32 %v1959_v18, %v4558_v16  ;;  %v1968_v56 = vadd.f32 %v1960_v36, %v4561_v26 }
 0x69d   : > { %v1969_v57 = vadd.f32 %v1961_v37, %v4564_v27  ;;  %v1971_v42 = vmul.f32 0.7978846, %v1963_v35  ;;  %v1972_v44 = vmul.f32 0.7978846, %v1964_v41  ;;  %v1970_v45 = vadd.f32 %v1962_v38, %v4567_v33 }
 0x69e   : > { %v1973_v43 = vmul.f32 0.7978846, %v1965_v39  ;;  %v1974_v49 = vmul.f32 0.7978846, %v1966_v30  ;;  %v1975_v50 = vmul.f32 0.7978846, %v1967_v55 }
 0x69f   : > { %3683 = vtanh.f32 %v1971_v42  ;;  %v1976_v51 = vmul.f32 0.7978846, %v1968_v56  ;;  %v1977_v52 = vmul.f32 0.7978846, %v1969_v57  ;;  %v1978_v1 = vmul.f32 0.7978846, %v1970_v45 }
 0x6a0   : > { %3685 = vtanh.f32 %v1972_v44  ;;  %v3655_v55 = vld [vmem:[%s5184_s7] sm:$0xff]   ;;  %v3656_v57 = vld [vmem:[%s5184_s7 + $0x8] sm:$0xff]   ;;  %v3657_v42 = vld [vmem:[%s5184_s7 + $0x10] ss:$0 sps:$4 sm:$0x33]  }
 0x6a1   : > { %3687 = vtanh.f32 %v1973_v43  ;;  %3567 = vmatprep.subr.bf16.mxu0 %v3655_v55  ;;  %v2464_v44 = vsel %vm1046_vm5, %v3657_v42, 0 }
 0x6a2   : > { %3689 = vtanh.f32 %v1974_v49  ;;  %3568 = vmatpush3.bf16.msra.mxu0 %v3655_v55 }
 0x6a3   : > { %3691 = vtanh.f32 %v1975_v50  ;;  %3569 = vmatprep.subr.bf16.mxu0 %v3656_v57 }
 0x6a4   : > { %3693 = vtanh.f32 %v1976_v51 }
 0x6a5   : > { %3695 = vtanh.f32 %v1977_v52 }
 0x6a6   : > { %3697 = vtanh.f32 %v1978_v1  ;;  %3570 = vmatpush3.bf16.msra.mxu0 %v3656_v57 }
 0x6a7   : > { %3601 = vmatprep.subr.msk.bf16.mxu0 %vm1046_vm5, %v3657_v42  ;;  %vm3073_vm5 = vcmask 523712  }
 0x6a9   : > { %v3684_v3 = vpop.eup %3683 }
 0x6aa   : > { %v3686_v7 = vpop.eup %3685  ;;  %v1987_v8 = vadd.f32 1.0, %v3684_v3  ;;  %3572 = vmatpush3.bf16.msra.mxu0 %v2464_v44  ;;  %v4708_v3 = vpop.permute.xlu1 %2353 }
 0x6ab   : > { %v3688_v11 = vpop.eup %3687  ;;  %v1988_v13 = vadd.f32 1.0, %v3686_v7  ;;  %v4713_v7 = vld [vmem:[#allocation2 + $0x92] sm:$0xff] }
 0x6ac   : > { %v3690_v20 = vpop.eup %3689  ;;  %v1989_v14 = vadd.f32 1.0, %v3688_v11  ;;  %v1995_v21 = vmul.f32 0.5, %v1987_v8 }
 0x6ad   : > { %v3692_v22 = vpop.eup %3691  ;;  %v1990_v53 = vadd.f32 1.0, %v3690_v20  ;;  %v1996_v23 = vmul.f32 0.5, %v1988_v13 }
 0x6ae   : > { %v3694_v32 = vpop.eup %3693  ;;  %v1991_v40 = vadd.f32 1.0, %v3692_v22  ;;  %v1997_v47 = vmul.f32 0.5, %v1989_v14  ;;  %v2003_v58 = vmul.f32 %v1995_v21, %v4546_v24 }
 0x6af   : > { %v3696_v4 = vpop.eup %3695  ;;  %v1992_v17 = vadd.f32 1.0, %v3694_v32  ;;  %v1998_v25 = vmul.f32 0.5, %v1990_v53  ;;  %v2004_v28 = vmul.f32 %v1996_v23, %v4549_v5 }
 0x6b0   : > { %v3698_v29 = vpop.eup %3697  ;;  %v1993_v19 = vadd.f32 1.0, %v3696_v4  ;;  %v1999_v31 = vmul.f32 0.5, %v1991_v40  ;;  %v2005_v34 = vmul.f32 %v1997_v47, %v4552_v15  ;;  %2011 = vst.msk [vmem:[#allocation2 + $0x11] sm:$0xff] %vm558_vm2, %v2003_v58 }
 0x6b1   : > { %v1994_v59 = vadd.f32 1.0, %v3698_v29  ;;  %v2000_v60 = vmul.f32 0.5, %v1992_v17  ;;  %v2006_v10 = vmul.f32 %v1998_v25, %v4555_v6  ;;  %2012 = vst.msk [vmem:[#allocation2 + $0x21] sm:$0xff] %vm558_vm2, %v2004_v28 }
 0x6b2   : > { %v2001_v61 = vmul.f32 0.5, %v1993_v19  ;;  %v2007_v24 = vmul.f32 %v1999_v31, %v4558_v16  ;;  %2013 = vst.msk [vmem:[#allocation2 + $0x31] sm:$0xff] %vm558_vm2, %v2005_v34 }
 0x6b3   : > { %v2002_v62 = vmul.f32 0.5, %v1994_v59  ;;  %v2008_v5 = vmul.f32 %v2000_v60, %v4561_v26  ;;  %2014 = vst.msk [vmem:[#allocation2 + $0x41] sm:$0xff] %vm558_vm2, %v2006_v10 }
 0x6b4   : > { %v2009_v15 = vmul.f32 %v2001_v61, %v4564_v27  ;;  %2015 = vst.msk [vmem:[#allocation2 + $0x51] sm:$0xff] %vm558_vm2, %v2007_v24 }
 0x6b5   : > { %v2010_v63 = vmul.f32 %v2002_v62, %v4567_v33  ;;  %2016 = vst.msk [vmem:[#allocation2 + $0x61] sm:$0xff] %vm558_vm2, %v2008_v5 }
 0x6b6   : > { %2017 = vst.msk [vmem:[#allocation2 + $0x71] sm:$0xff] %vm558_vm2, %v2009_v15 }
 0x6b7   : > { %2018 = vst.msk [vmem:[#allocation2 + $0x81] sm:$0xff] %vm558_vm2, %v2010_v63  ;;  %v2036_v6 = vld [vmem:[#allocation2 + $0x11] sm:$0xff] }
 0x6b8   : > { %v2131_v16 = vld [vmem:[#allocation2 + $0x10] sm:$0xff]  ;;  %v2037_v9 = vld [vmem:[#allocation2 + $0x21] sm:$0xff]  ;;  %2053 = vrot.lane.b32.xlu1 %v2036_v6, %s3729_s16 }
 0x6b9   : > { %v2132_v26 = vld [vmem:[#allocation2 + $0x20] sm:$0xff]  ;;  %2028 = vst.msk [vmem:[#allocation3 + $0x8] sm:$0xff] %vm558_vm2, %v2131_v16  ;;  %2055 = vrot.lane.b32.xlu0 %v2037_v9, %s3729_s16  ;;  %v2133_v27 = vld [vmem:[#allocation2 + $0x30] sm:$0xff] }
 0x6ba   : > { %2029 = vst.msk [vmem:[#allocation3 + $0x10] sm:$0xff] %vm558_vm2, %v2132_v26  ;;  %v2134_v33 = vld [vmem:[#allocation2 + $0x40] sm:$0xff]  ;;  %2030 = vst.msk [vmem:[#allocation3 + $0x18] sm:$0xff] %vm558_vm2, %v2133_v27  ;;  %v2038_v12 = vld [vmem:[#allocation2 + $0x31] sm:$0xff] }
 0x6bb   : > { %v2278_v18 = vld [vmem:[#allocation2 + $0x50] sm:$0xff]  ;;  %2031 = vst.msk [vmem:[#allocation3 + $0x20] sm:$0xff] %vm558_vm2, %v2134_v33  ;;  %v2085_v36 = vld [vmem:[#allocation2 + $0x22] sm:$0xff] }
 0x6bc   : > { %2057 = vrot.lane.b32.xlu1 %v2038_v12, %s3729_s16  ;;  %v4630_v37 = vld [vmem:[#allocation2 + $0x60] sm:$0xff]  ;;  %2032 = vst.msk [vmem:[#allocation3 + $0x28] sm:$0xff] %vm558_vm2, %v2278_v18  ;;  %v2084_v35 = vld [vmem:[#allocation2 + $0x12] sm:$0xff] }
 0x6bd   : > { %2103 = vrot.lane.b32.xlu0 %v2085_v36, %s3730_s17  ;;  %v4634_v38 = vld [vmem:[#allocation2 + $0x70] sm:$0xff]  ;;  %2033 = vst.msk [vmem:[#allocation3 + $0x30] sm:$0xff] %vm558_vm2, %v4630_v37  ;;  %v2182_v39 = vld [vmem:[#allocation2 + $0x41] sm:$0xff] }
 0x6be   : > { %2034 = vst.msk [vmem:[#allocation3 + $0x38] sm:$0xff] %vm558_vm2, %v4634_v38  ;;  %v2086_v41 = vld [vmem:[#allocation2 + $0x32] sm:$0xff]  ;;  %v2230_v30 = vld [vmem:[#allocation2 + $0x42] sm:$0xff]  ;;  %vm2926_vm2 = vcmask 326912  }
 0x6bf   : > { %v2326_v56 = vld [vmem:[#allocation2 + $0x51] sm:$0xff]  ;;  %v2041_v45 = vld [vmem:[#allocation2 + $0x61] sm:$0xff] }
 0x6c0   : > { %2101 = vrot.lane.b32.xlu1 %v2084_v35, %s3730_s17  ;;  %v2374_v43 = vld [vmem:[#allocation2 + $0x52] sm:$0xff]  ;;  %v2089_v50 = vld [vmem:[#allocation2 + $0x62] sm:$0xff] }
 0x6c1   : > { %2147 = vrot.lane.b32.xlu0 %v2131_v16, %s3731_s18  ;;  %v2042_v49 = vld [vmem:[#allocation2 + $0x71] sm:$0xff]  ;;  %v2138_v52 = vld [vmem:[#allocation2 + $0x80] sm:$0xff] }
 0x6c2   : > { %v2090_v51 = vld [vmem:[#allocation2 + $0x72] sm:$0xff]  ;;  %v2186_v0 = vld [vmem:[#allocation2 + $0x81] sm:$0xff] }
 0x6c3   : > { %v2234_v1 = vld [vmem:[#allocation2 + $0x82] sm:$0xff] }
 0x6c4   : > { %2105 = vrot.lane.b32.xlu1 %v2086_v41, %s3730_s17 }
 0x6c5   : > { %2151 = vrot.lane.b32.xlu0 %v2133_v27, %s3731_s18 }
 0x6c8   : > { %2149 = vrot.lane.b32.xlu1 %v2132_v26, %s3731_s18 }
 0x6c9   : > { %2195 = vrot.lane.b32.xlu0 %v2036_v6, %s3732_s19 }
 0x6cc   : > { %2153 = vrot.lane.b32.xlu1 %v2134_v33, %s3731_s18 }
 0x6cd   : > { %2199 = vrot.lane.b32.xlu0 %v2038_v12, %s3732_s19 }
 0x6d0   : > { %2197 = vrot.lane.b32.xlu1 %v2037_v9, %s3732_s19 }
 0x6d1   : > { %2243 = vrot.lane.b32.xlu0 %v2084_v35, %s3733_s20 }
 0x6d4   : > { %2201 = vrot.lane.b32.xlu1 %v2182_v39, %s3732_s19 }
 0x6d5   : > { %2247 = vrot.lane.b32.xlu0 %v2086_v41, %s3733_s20 }
 0x6d8   : > { %2245 = vrot.lane.b32.xlu1 %v2085_v36, %s3733_s20 }
 0x6d9   : > { %2291 = vrot.lane.b32.xlu0 %v2132_v26, %s3734_s21 }
 0x6dc   : > { %2249 = vrot.lane.b32.xlu1 %v2230_v30, %s3733_s20 }
 0x6dd   : > { %2295 = vrot.lane.b32.xlu0 %v2134_v33, %s3734_s21 }
 0x6e0   : > { %2293 = vrot.lane.b32.xlu1 %v2133_v27, %s3734_s21 }
 0x6e1   : > { %2339 = vrot.lane.b32.xlu0 %v2037_v9, %s3735_s22 }
 0x6e4   : > { %2297 = vrot.lane.b32.xlu1 %v2278_v18, %s3734_s21 }
 0x6e5   : > { %2343 = vrot.lane.b32.xlu0 %v2182_v39, %s3735_s22 }
 0x6e8   : > { %2341 = vrot.lane.b32.xlu1 %v2038_v12, %s3735_s22 }
 0x6e9   : > { %2387 = vrot.lane.b32.xlu0 %v2085_v36, %s3736_s27 }
 0x6ec   : > { %2345 = vrot.lane.b32.xlu1 %v2326_v56, %s3735_s22 }
 0x6ed   : > { %2059 = vrot.lane.b32.xlu0 %v2182_v39, %s3729_s16 }
 0x6f0   : > { %2389 = vrot.lane.b32.xlu1 %v2086_v41, %s3736_s27 }
 0x6f1   : > { %2391 = vrot.lane.b32.xlu0 %v2230_v30, %s3736_s27 }
 0x6f4   : > { %2061 = vrot.lane.b32.xlu1 %v2326_v56, %s3729_s16 }
 0x6f5   : > { %2063 = vrot.lane.b32.xlu0 %v2041_v45, %s3729_s16 }
 0x6f8   : > { %2393 = vrot.lane.b32.xlu1 %v2374_v43, %s3736_s27 }
 0x6f9   : > { %2107 = vrot.lane.b32.xlu0 %v2230_v30, %s3730_s17 }
 0x6fc   : > { %2065 = vrot.lane.b32.xlu1 %v2042_v49, %s3729_s16  ;;  %s3737_s16 = smov 48  }
 0x6fd   : > { %2111 = vrot.lane.b32.xlu0 %v2089_v50, %s3730_s17 }
 0x700   : > { %2109 = vrot.lane.b32.xlu1 %v2374_v43, %s3730_s17 }
 0x701   : > { %2155 = vrot.lane.b32.xlu0 %v2278_v18, %s3731_s18 }
 0x704   : > { %2113 = vrot.lane.b32.xlu1 %v2090_v51, %s3730_s17 }
 0x705   : > { %2159 = vrot.lane.b32.xlu0 %v4634_v38, %s3731_s18 }
 0x708   : > { %2157 = vrot.lane.b32.xlu1 %v4630_v37, %s3731_s18 }
 0x709   : > { %2203 = vrot.lane.b32.xlu0 %v2326_v56, %s3732_s19 }
 0x70c   : > { %2161 = vrot.lane.b32.xlu1 %v2138_v52, %s3731_s18  ;;  %s3738_s18 = smov 56  }
 0x70d   : > { %2207 = vrot.lane.b32.xlu0 %v2042_v49, %s3732_s19 }
 0x710   : > { %2205 = vrot.lane.b32.xlu1 %v2041_v45, %s3732_s19 }
 0x711   : > { %2251 = vrot.lane.b32.xlu0 %v2374_v43, %s3733_s20 }
 0x714   : > { %2209 = vrot.lane.b32.xlu1 %v2186_v0, %s3732_s19 }
 0x715   : > { %2255 = vrot.lane.b32.xlu0 %v2090_v51, %s3733_s20 }
 0x718   : > { %2253 = vrot.lane.b32.xlu1 %v2089_v50, %s3733_s20 }
 0x719   : > { %2299 = vrot.lane.b32.xlu0 %v4630_v37, %s3734_s21 }
 0x71c   : > { %2257 = vrot.lane.b32.xlu1 %v2234_v1, %s3733_s20 }
 0x71d   : > { %2303 = vrot.lane.b32.xlu0 %v2138_v52, %s3734_s21 }
 0x720   : > { %2301 = vrot.lane.b32.xlu1 %v4634_v38, %s3734_s21 }
 0x721   : > { %2347 = vrot.lane.b32.xlu0 %v2041_v45, %s3735_s22 }
 0x724   : > { %2349 = vrot.lane.b32.xlu1 %v2042_v49, %s3735_s22 }
 0x725   : > { %2351 = vrot.lane.b32.xlu0 %v2186_v0, %s3735_s22 }
 0x728   : > { %2397 = vrot.lane.b32.xlu1 %v2090_v51, %s3736_s27 }
 0x729   : > { %2395 = vrot.lane.b32.xlu0 %v2089_v50, %s3736_s27 }
 0x72a   : > { %v2054_v8 = vpop.permute.xlu1 %2053 }
 0x72b   : > { %2076 = vst.msk [vmem:[#allocation3 + $0x8] sm:$0xff] %vm648_vm3, %v2054_v8  ;;  %v2056_v11 = vpop.permute.xlu0 %2055 }
 0x72c   : > { %2077 = vst.msk [vmem:[#allocation3 + $0x10] sm:$0xff] %vm648_vm3, %v2056_v11  ;;  %2401 = vrot.lane.b32.xlu1 %v4713_v7, %s3736_s27 }
 0x72d   : > { %2399 = vrot.lane.b32.xlu0 %v2234_v1, %s3736_s27 }
 0x72e   : > { %v2058_v13 = vpop.permute.xlu1 %2057 }
 0x72f   : > { %2078 = vst.msk [vmem:[#allocation3 + $0x18] sm:$0xff] %vm648_vm3, %v2058_v13  ;;  %v2104_v20 = vpop.permute.xlu0 %2103 }
 0x730   : > { %2125 = vst.msk [vmem:[#allocation3 + $0x10] sm:$0xff] %vm697_vm4, %v2104_v20 }
 0x732   : > { %v2102_v14 = vpop.permute.xlu1 %2101 }
 0x733   : > { %2124 = vst.msk [vmem:[#allocation3 + $0x8] sm:$0xff] %vm697_vm4, %v2102_v14  ;;  %v2148_v21 = vpop.permute.xlu0 %2147 }
 0x734   : > { %2171 = vst.msk [vmem:[#allocation3] sm:$0xff] %vm746_vm6, %v2148_v21 }
 0x736   : > { %v2106_v22 = vpop.permute.xlu1 %2105 }
 0x737   : > { %2126 = vst.msk [vmem:[#allocation3 + $0x18] sm:$0xff] %vm697_vm4, %v2106_v22  ;;  %v2152_v53 = vpop.permute.xlu0 %2151 }
 0x738   : > { %2173 = vst.msk [vmem:[#allocation3 + $0x10] sm:$0xff] %vm746_vm6, %v2152_v53 }
 0x73a   : > { %v2150_v23 = vpop.permute.xlu1 %2149 }
 0x73b   : > { %2172 = vst.msk [vmem:[#allocation3 + $0x8] sm:$0xff] %vm746_vm6, %v2150_v23  ;;  %v2196_v32 = vpop.permute.xlu0 %2195 }
 0x73c   : > { %2219 = vst.msk [vmem:[#allocation3] sm:$0xff] %vm795_vm7, %v2196_v32 }
 0x73e   : > { %v2154_v40 = vpop.permute.xlu1 %2153 }
 0x73f   : > { %2174 = vst.msk [vmem:[#allocation3 + $0x18] sm:$0xff] %vm746_vm6, %v2154_v40  ;;  %v2200_v47 = vpop.permute.xlu0 %2199 }
 0x740   : > { %2221 = vst.msk [vmem:[#allocation3 + $0x10] sm:$0xff] %vm795_vm7, %v2200_v47 }
 0x742   : > { %v2198_v58 = vpop.permute.xlu1 %2197 }
 0x743   : > { %2220 = vst.msk [vmem:[#allocation3 + $0x8] sm:$0xff] %vm795_vm7, %v2198_v58  ;;  %v2244_v4 = vpop.permute.xlu0 %2243 }
 0x744   : > { %2267 = vst.msk [vmem:[#allocation3] sm:$0xff] %vm844_vm8, %v2244_v4 }
 0x746   : > { %v2202_v17 = vpop.permute.xlu1 %2201 }
 0x747   : > { %2222 = vst.msk [vmem:[#allocation3 + $0x18] sm:$0xff] %vm795_vm7, %v2202_v17  ;;  %v2248_v25 = vpop.permute.xlu0 %2247 }
 0x748   : > { %2269 = vst.msk [vmem:[#allocation3 + $0x10] sm:$0xff] %vm844_vm8, %v2248_v25 }
 0x74a   : > { %v2246_v28 = vpop.permute.xlu1 %2245 }
 0x74b   : > { %2268 = vst.msk [vmem:[#allocation3 + $0x8] sm:$0xff] %vm844_vm8, %v2246_v28  ;;  %v2292_v29 = vpop.permute.xlu0 %2291 }
 0x74c   : > { %2315 = vst.msk [vmem:[#allocation3] sm:$0xff] %vm894_vm9, %v2292_v29 }
 0x74e   : > { %v2250_v19 = vpop.permute.xlu1 %2249 }
 0x74f   : > { %2270 = vst.msk [vmem:[#allocation3 + $0x18] sm:$0xff] %vm844_vm8, %v2250_v19  ;;  %v2296_v31 = vpop.permute.xlu0 %2295 }
 0x750   : > { %2317 = vst.msk [vmem:[#allocation3 + $0x10] sm:$0xff] %vm894_vm9, %v2296_v31 }
 0x752   : > { %v2294_v34 = vpop.permute.xlu1 %2293 }
 0x753   : > { %2316 = vst.msk [vmem:[#allocation3 + $0x8] sm:$0xff] %vm894_vm9, %v2294_v34  ;;  %v2340_v59 = vpop.permute.xlu0 %2339 }
 0x754   : > { %2363 = vst.msk [vmem:[#allocation3] sm:$0xff] %vm943_vm10, %v2340_v59 }
 0x756   : > { %v2298_v60 = vpop.permute.xlu1 %2297 }
 0x757   : > { %2318 = vst.msk [vmem:[#allocation3 + $0x18] sm:$0xff] %vm894_vm9, %v2298_v60  ;;  %v2344_v10 = vpop.permute.xlu0 %2343 }
 0x758   : > { %2365 = vst.msk [vmem:[#allocation3 + $0x10] sm:$0xff] %vm943_vm10, %v2344_v10 }
 0x75a   : > { %v2342_v61 = vpop.permute.xlu1 %2341 }
 0x75b   : > { %2364 = vst.msk [vmem:[#allocation3 + $0x8] sm:$0xff] %vm943_vm10, %v2342_v61  ;;  %v2388_v24 = vpop.permute.xlu0 %2387 }
 0x75c   : > { %2411 = vst.msk [vmem:[#allocation3] sm:$0xff] %vm992_vm11, %v2388_v24 }
 0x75e   : > { %v2346_v62 = vpop.permute.xlu1 %2345 }
 0x75f   : > { %2366 = vst.msk [vmem:[#allocation3 + $0x18] sm:$0xff] %vm943_vm10, %v2346_v62  ;;  %v2060_v5 = vpop.permute.xlu0 %2059 }
 0x760   : > { %2079 = vst.msk [vmem:[#allocation3 + $0x20] sm:$0xff] %vm648_vm3, %v2060_v5 }
 0x762   : > { %v2390_v15 = vpop.permute.xlu1 %2389 }
 0x763   : > { %2412 = vst.msk [vmem:[#allocation3 + $0x8] sm:$0xff] %vm992_vm11, %v2390_v15  ;;  %v2392_v63 = vpop.permute.xlu0 %2391  ;;  %v2419_v6 = vld [vmem:[#allocation3] sm:$0xff] }
 0x764   : > { %2413 = vst.msk [vmem:[#allocation3 + $0x10] sm:$0xff] %vm992_vm11, %v2392_v63 }
 0x765   : > { %2731 = vst.msk [vmem:[#allocation3] sm:$0xff] %vm440_vm0, %v4601_v54 }
 0x766   : > { %v2062_v16 = vpop.permute.xlu1 %2061 }
 0x767   : > { %2080 = vst.msk [vmem:[#allocation3 + $0x28] sm:$0xff] %vm648_vm3, %v2062_v16  ;;  %v2064_v9 = vpop.permute.xlu0 %2063 }
 0x768   : > { %2081 = vst.msk [vmem:[#allocation3 + $0x30] sm:$0xff] %vm648_vm3, %v2064_v9 }
 0x76a   : > { %v2394_v26 = vpop.permute.xlu1 %2393  ;;  %v2420_v27 = vld [vmem:[#allocation3 + $0x8] sm:$0xff] }
 0x76b   : > { %2414 = vst.msk [vmem:[#allocation3 + $0x18] sm:$0xff] %vm992_vm11, %v2394_v26  ;;  %v2108_v33 = vpop.permute.xlu0 %2107  ;;  %v2427_v12 = vpack.c.bf16 %v2420_v27, %v2419_v6  ;;  %v2421_v37 = vld [vmem:[#allocation3 + $0x10] sm:$0xff] }
 0x76c   : > { %2127 = vst.msk [vmem:[#allocation3 + $0x20] sm:$0xff] %vm697_vm4, %v2108_v33 }
 0x76d   : > { %3573 = vmatprep.mubr.msk.bf16.mxu0 %vm1033_vm12, %v2427_v12 }
 0x76e   : > { %v2066_v18 = vpop.permute.xlu1 %2065 }
 0x76f   : > { %2082 = vst.msk [vmem:[#allocation3 + $0x38] sm:$0xff] %vm648_vm3, %v2066_v18  ;;  %v2112_v54 = vpop.permute.xlu0 %2111  ;;  %vm2975_vm3 = vcmask 392512  }
 0x770   : > { %2129 = vst.msk [vmem:[#allocation3 + $0x30] sm:$0xff] %vm697_vm4, %v2112_v54 }
 0x772   : > { %v2110_v36 = vpop.permute.xlu1 %2109  ;;  %v2422_v38 = vld [vmem:[#allocation3 + $0x18] sm:$0xff] }
 0x773   : > { %2128 = vst.msk [vmem:[#allocation3 + $0x28] sm:$0xff] %vm697_vm4, %v2110_v36  ;;  %v2156_v35 = vpop.permute.xlu0 %2155  ;;  %v2428_v41 = vpack.c.bf16 %v2422_v38, %v2421_v37 }
 0x774   : > { %2175 = vst.msk [vmem:[#allocation3 + $0x20] sm:$0xff] %vm746_vm6, %v2156_v35 }
 0x775   : > { %3574 = vmatmul.mubr.msk.bf16.vlgmr.msra.gmra.mrb[8].mxu0 %vm1033_vm12, %v2428_v41 }
 0x776   : > { %v2114_v39 = vpop.permute.xlu1 %2113 }
 0x777   : > { %2130 = vst.msk [vmem:[#allocation3 + $0x38] sm:$0xff] %vm697_vm4, %v2114_v39  ;;  %v2160_v30 = vpop.permute.xlu0 %2159  ;;  %vm3024_vm4 = vcmask 458112  }
 0x778   : > { %2177 = vst.msk [vmem:[#allocation3 + $0x30] sm:$0xff] %vm746_vm6, %v2160_v30 }
 0x77a   : > { %v2158_v55 = vpop.permute.xlu1 %2157 }
 0x77b   : > { %2176 = vst.msk [vmem:[#allocation3 + $0x28] sm:$0xff] %vm746_vm6, %v2158_v55  ;;  %v2204_v56 = vpop.permute.xlu0 %2203 }
 0x77c   : > { %2223 = vst.msk [vmem:[#allocation3 + $0x20] sm:$0xff] %vm795_vm7, %v2204_v56 }
 0x77e   : > { %v2162_v57 = vpop.permute.xlu1 %2161 }
 0x77f   : > { %2178 = vst.msk [vmem:[#allocation3 + $0x38] sm:$0xff] %vm746_vm6, %v2162_v57  ;;  %v2208_v42 = vpop.permute.xlu0 %2207  ;;  %vm3122_vm6 = vcmask 589312  }
 0x780   : > { %2225 = vst.msk [vmem:[#allocation3 + $0x30] sm:$0xff] %vm795_vm7, %v2208_v42 }
 0x782   : > { %v2206_v44 = vpop.permute.xlu1 %2205 }
 0x783   : > { %2224 = vst.msk [vmem:[#allocation3 + $0x28] sm:$0xff] %vm795_vm7, %v2206_v44  ;;  %v2252_v45 = vpop.permute.xlu0 %2251 }
 0x784   : > { %2271 = vst.msk [vmem:[#allocation3 + $0x20] sm:$0xff] %vm844_vm8, %v2252_v45 }
 0x786   : > { %v2210_v43 = vpop.permute.xlu1 %2209 }
 0x787   : > { %2226 = vst.msk [vmem:[#allocation3 + $0x38] sm:$0xff] %vm795_vm7, %v2210_v43  ;;  %v2256_v49 = vpop.permute.xlu0 %2255  ;;  %vm3179_vm7 = vcmask 588800  }
 0x788   : > { %2273 = vst.msk [vmem:[#allocation3 + $0x30] sm:$0xff] %vm844_vm8, %v2256_v49 }
 0x78a   : > { %v2254_v50 = vpop.permute.xlu1 %2253 }
 0x78b   : > { %2272 = vst.msk [vmem:[#allocation3 + $0x28] sm:$0xff] %vm844_vm8, %v2254_v50  ;;  %v2300_v51 = vpop.permute.xlu0 %2299 }
 0x78c   : > { %2319 = vst.msk [vmem:[#allocation3 + $0x20] sm:$0xff] %vm894_vm9, %v2300_v51 }
 0x78e   : > { %v2258_v52 = vpop.permute.xlu1 %2257 }
 0x78f   : > { %2274 = vst.msk [vmem:[#allocation3 + $0x38] sm:$0xff] %vm844_vm8, %v2258_v52  ;;  %v2304_v0 = vpop.permute.xlu0 %2303 }
 0x790   : > { %2322 = vst.msk [vmem:[#allocation3 + $0x38] sm:$0xff] %vm894_vm9, %v4702_v2  ;;  %2321 = vst.msk [vmem:[#allocation3 + $0x30] sm:$0xff] %vm894_vm9, %v2304_v0 }
 0x791   : > { %2370 = vst.msk [vmem:[#allocation3 + $0x38] sm:$0xff] %vm943_vm10, %v4708_v3 }
 0x792   : > { %v2302_v1 = vpop.permute.xlu1 %2301 }
 0x793   : > { %2320 = vst.msk [vmem:[#allocation3 + $0x28] sm:$0xff] %vm894_vm9, %v2302_v1  ;;  %v2348_v8 = vpop.permute.xlu0 %2347 }
 0x794   : > { %2367 = vst.msk [vmem:[#allocation3 + $0x20] sm:$0xff] %vm943_vm10, %v2348_v8 }
 0x796   : > { %v2350_v11 = vpop.permute.xlu1 %2349 }
 0x797   : > { %2368 = vst.msk [vmem:[#allocation3 + $0x28] sm:$0xff] %vm943_vm10, %v2350_v11  ;;  %v2352_v13 = vpop.permute.xlu0 %2351 }
 0x798   : > { %2369 = vst.msk [vmem:[#allocation3 + $0x30] sm:$0xff] %vm943_vm10, %v2352_v13 }
 0x79a   : > { %v2398_v20 = vpop.permute.xlu1 %2397 }
 0x79b   : > { %2416 = vst.msk [vmem:[#allocation3 + $0x28] sm:$0xff] %vm992_vm11, %v2398_v20  ;;  %v2396_v2 = vpop.permute.xlu0 %2395 }
 0x79c   : > { %2415 = vst.msk [vmem:[#allocation3 + $0x20] sm:$0xff] %vm992_vm11, %v2396_v2 }
 0x79e   : > { %v2402_v14 = vpop.permute.xlu1 %2401 }
 0x79f   : > { %2418 = vst.msk [vmem:[#allocation3 + $0x38] sm:$0xff] %vm992_vm11, %v2402_v14  ;;  %v2400_v3 = vpop.permute.xlu0 %2399 }
 0x7a0   : > { %2417 = vst.msk [vmem:[#allocation3 + $0x30] sm:$0xff] %vm992_vm11, %v2400_v3 }
 0x7a2   : > { %v2424_v21 = vld [vmem:[#allocation3 + $0x28] sm:$0xff] }
 0x7a3   : > { %v2423_v22 = vld [vmem:[#allocation3 + $0x20] sm:$0xff] }
 0x7a4   : > { %v2429_v53 = vpack.c.bf16 %v2424_v21, %v2423_v22 }
 0x7a6   : > { %3577 = vmatprep.mubr.msk.bf16.mxu0 %vm1033_vm12, %v2429_v53  ;;  %v2426_v23 = vld [vmem:[#allocation3 + $0x38] sm:$0xff] }
 0x7a7   : > { %v2425_v32 = vld [vmem:[#allocation3 + $0x30] sm:$0xff] }
 0x7a8   : > { %v2430_v40 = vpack.c.bf16 %v2426_v23, %v2425_v32 }
 0x7aa   : > { %3578 = vmatmul.mubr.msk.bf16.gmra.mrb[12].mxu0 %vm1033_vm12, %v2430_v40  ;;  %v2739_v40 = vld [vmem:[#allocation2 + $0x1] sm:$0xff] }
 0x848   : > { %v4788_v47 = vpop.f32.mrb[8].mxu0 }
 0x849   : > { %v4790_v58 = vpop.f32.mrb[9].mxu0  ;;  %v2558_v28 = vmul.f32 %v4788_v47, %v4788_v47  ;;  %v2534_v59 = vsel %vm440_vm0, %v4788_v47, 0.0 }
 0x84a   : > { %v2556_v4 = vmul.f32 %v4790_v58, %v4790_v58  ;;  %v4794_v17 = vpop.f32.mrb[10].mxu0  ;;  %v2531_v29 = vsel %vm440_vm0, %v4790_v58, 0.0 }
 0x84b   : > { %v4796_v25 = vpop.f32.mrb[11].mxu0  ;;  %v2559_v10 = vmul.f32 %v4794_v17, %v4794_v17  ;;  %v2567_v5 = vsel %vm440_vm0, %v2558_v28, 0.0  ;;  %v2536_v15 = vsel %vm440_vm0, %v4794_v17, 0.0 }
 0x84c   : > { %v2532_v19 = vsel %vm440_vm0, %v4796_v25, 0.0  ;;  %v2557_v31 = vmul.f32 %v4796_v25, %v4796_v25  ;;  %v2564_v60 = vsel %vm440_vm0, %v2556_v4, 0.0  ;;  %v2788_v4 = vld [vmem:[#allocation2 + $0x2] sm:$0xff] }
 0x84d   : > { %v2533_v34 = vadd.f32 %v2532_v19, %v2531_v29  ;;  %v2569_v16 = vsel %vm440_vm0, %v2559_v10, 0.0 }
 0x84e   : > { %v2565_v61 = vsel %vm440_vm0, %v2557_v31, 0.0 }
 0x84f   : > { %v2535_v24 = vadd.f32 %v2534_v59, %v2533_v34  ;;  %v2566_v62 = vadd.f32 %v2565_v61, %v2564_v60 }
 0x851   : > { %v2568_v63 = vadd.f32 %v2567_v5, %v2566_v62  ;;  %v2537_v6 = vadd.f32 %v2536_v15, %v2535_v24 }
 0x853   : > { %v2570_v9 = vadd.f32 %v2569_v16, %v2568_v63  ;;  %v3494_v16 = vld [vmem:[%s5186_s9] ss:$0 sm:$0xff] }
 0x87d   : > { %v4816_v26 = vpop.f32.mrb[12].mxu0 }
 0x87e   : > { %v4818_v27 = vpop.f32.mrb[13].mxu0  ;;  %v2562_v37 = vmul.f32 %v4816_v26, %v4816_v26  ;;  %v2542_v55 = vsel %vm440_vm0, %v4816_v26, 0.0 }
 0x87f   : > { %v2538_v33 = vsel %vm440_vm0, %v4818_v27, 0.0  ;;  %v2560_v12 = vmul.f32 %v4818_v27, %v4818_v27  ;;  %v4824_v18 = vpop.f32.mrb[14].mxu0 }
 0x880   : > { %v2539_v54 = vadd.f32 %v2538_v33, %v2537_v6  ;;  %v4826_v36 = vpop.f32.mrb[15].mxu0  ;;  %v2563_v56 = vmul.f32 %v4824_v18, %v4824_v18  ;;  %v2575_v45 = vsel %vm440_vm0, %v2562_v37, 0.0  ;;  %v2544_v43 = vsel %vm440_vm0, %v4824_v18, 0.0 }
 0x881   : > { %v2571_v38 = vsel %vm440_vm0, %v2560_v12, 0.0  ;;  %v2540_v35 = vsel %vm440_vm0, %v4826_v36, 0.0  ;;  %v2561_v41 = vmul.f32 %v4826_v36, %v4826_v36 }
 0x882   : > { %v2572_v39 = vadd.f32 %v2571_v38, %v2570_v9  ;;  %v2541_v30 = vadd.f32 %v2540_v35, %v2539_v54  ;;  %v2577_v51 = vsel %vm440_vm0, %v2563_v56, 0.0 }
 0x883   : > { %v2573_v57 = vsel %vm440_vm0, %v2561_v41, 0.0 }
 0x884   : > { %v2543_v42 = vadd.f32 %v2542_v55, %v2541_v30  ;;  %v2574_v44 = vadd.f32 %v2573_v57, %v2572_v39 }
 0x886   : > { %v2545_v49 = vadd.f32 %v2544_v43, %v2543_v42  ;;  %v2576_v50 = vadd.f32 %v2575_v45, %v2574_v44 }
 0x888   : > { %2546 = vadd.xlane.f32.xlu0 %v2545_v49  ;;  %v2578_v52 = vadd.f32 %v2577_v51, %v2576_v50 }
 0x88a   : > { %2579 = vadd.xlane.f32.xlu1 %v2578_v52 }
 0x89b   : > { %3014 = vrot.lane.b32.xlu1 %v4523_v46, %s3737_s16 }
 0x89e   : > { %2755 = vrot.lane.b32.xlu0 %v2739_v40, %s3730_s17 }
 0x89f   : > { %3063 = vrot.lane.b32.xlu1 %v4527_v48, %s3738_s18 }
 0x8a2   : > { %2804 = vrot.lane.b32.xlu0 %v2788_v4, %s3732_s19 }
 0x915   : > { %v2547_v0 = vpop.xlane.xlu0 %2546 }
 0x916   : > { %v2548_v1 = vrot.slane %v2547_v0, 4 }
 0x917   : > { %v2580_v8 = vpop.xlane.xlu1 %2579 }
 0x918   : > { %v2549_v11 = vadd.f32 %v2548_v1, %v2547_v0  ;;  %v2581_v13 = vrot.slane %v2580_v8, 4 }
 0x91a   : > { %v2550_v20 = vrot.slane %v2549_v11, 2  ;;  %v2582_v2 = vadd.f32 %v2581_v13, %v2580_v8 }
 0x91c   : > { %v2583_v14 = vrot.slane %v2582_v2, 2  ;;  %v2551_v3 = vadd.f32 %v2550_v20, %v2549_v11 }
 0x91e   : > { %v2552_v21 = vrot.slane %v2551_v3, 1  ;;  %v2584_v22 = vadd.f32 %v2583_v14, %v2582_v2 }
 0x920   : > { %v2553_v53 = vadd.f32 %v2552_v21, %v2551_v3  ;;  %v2585_v23 = vrot.slane %v2584_v22, 1 }
 0x922   : > { %3615 = vpush %v2553_v53  ;;  %v2586_v32 = vadd.f32 %v2585_v23, %v2584_v22 }
 0x924   : > { %3617 = vpush %v2586_v32 }
 0x953   : > { %s3616_s20 = spop %3615 }
 0x954   : > { %s2555_s22 = smul.f32 0.001953125, %s3616_s20 }
 0x955   : > { %s3618_s23 = spop %3617 }
 0x956   : > { %s2589_s24 = smul.f32 %s2555_s22, %s2555_s22  ;;  %v2591_v28 = vstv %s2555_s22  ;;  %s3740_s22 = smov 64  }
 0x957   : > { %s2588_s28 = smul.f32 0.001953125, %s3618_s23  ;;  %v2592_v29 = vsub.f32 %v4790_v58, %v2591_v28  ;;  %v2593_v19 = vsub.f32 %v4796_v25, %v2591_v28  ;;  %v2594_v46 = vsub.f32 %v4788_v47, %v2591_v28  ;;  %v2595_v31 = vsub.f32 %v4794_v17, %v2591_v28  ;;  %v3493_v47 = vld [vmem:[%s5185_s8] ss:$0 sm:$0xff] }
 0x958   : > { %v2596_v34 = vsub.f32 %v4818_v27, %v2591_v28  ;;  %v2597_v48 = vsub.f32 %v4826_v36, %v2591_v28  ;;  %v2598_v59 = vsub.f32 %v4816_v26, %v2591_v28  ;;  %v2599_v60 = vsub.f32 %v4824_v18, %v2591_v28 }
 0x959   : > { %s2590_s29 = ssub.f32 %s2588_s28, %s2589_s24  ;;  %s3739_s24 = smov 40  }
 0x95a   : > { %s3467_s28 = sshll.u32 %s5193_s26, 3 }
 0x95b   : > { %s2600_s30 = sadd.f32 1e-05, %s2590_s29 }
 0x95d   : > { %v2601_v10 = vstv %s2600_s30 }
 0x95e   : > { %3699 = vrsqrt.f32 %v2601_v10 }
 0x968   : > { %v3700_v61 = vpop.eup %3699 }
 0x969   : > { %3619 = vpush %v3700_v61 }
 0x99a   : > { %s3620_s14 = spop %3619 }
 0x99b   : > { %v2604_v58 = vstv %s3620_s14 }
 0x99c   : > { %v2605_v17 = vmul.f32 %v2604_v58, %v2592_v29  ;;  %v2606_v25 = vmul.f32 %v2604_v58, %v2593_v19  ;;  %v2607_v24 = vmul.f32 %v2604_v58, %v2594_v46  ;;  %v2608_v62 = vmul.f32 %v2604_v58, %v2595_v31 }
 0x99d   : > { %v2609_v5 = vmul.f32 %v2604_v58, %v2596_v34  ;;  %v2610_v15 = vmul.f32 %v2604_v58, %v2597_v48  ;;  %v2611_v63 = vmul.f32 %v2604_v58, %v2598_v59  ;;  %v2612_v6 = vmul.f32 %v2604_v58, %v2599_v60 }
 0x99e   : > { %v2620_v9 = vmul.f32 %v3493_v47, %v2605_v17  ;;  %v2621_v26 = vmul.f32 %v3493_v47, %v2606_v25  ;;  %v2622_v27 = vmul.f32 %v3493_v47, %v2607_v24  ;;  %v2623_v33 = vmul.f32 %v3493_v47, %v2608_v62  ;;  %v2756_v62 = vpop.permute.xlu0 %2755 }
 0x99f   : > { %v2624_v12 = vmul.f32 %v3493_v47, %v2609_v5  ;;  %v2625_v18 = vmul.f32 %v3493_v47, %v2610_v15  ;;  %v2626_v54 = vmul.f32 %v3493_v47, %v2611_v63  ;;  %v2627_v36 = vmul.f32 %v3493_v47, %v2612_v6  ;;  %2780 = vst.msk [vmem:[#allocation3] sm:$0xff] %vm2779_vm13, %v2756_v62  ;;  %v5018_v62 = vpop.permute.xlu1 %3014 }
 0x9a0   : > { %v4864_v37 = vadd.f32 %v3494_v16, %v2620_v9  ;;  %v4866_v38 = vadd.f32 %v3494_v16, %v2621_v26  ;;  %v4868_v35 = vadd.f32 %v3494_v16, %v2622_v27  ;;  %v4870_v41 = vadd.f32 %v3494_v16, %v2623_v33 }
 0x9a1   : > { %v4872_v39 = vadd.f32 %v3494_v16, %v2624_v12  ;;  %v4874_v30 = vadd.f32 %v3494_v16, %v2625_v18  ;;  %v4876_v55 = vadd.f32 %v3494_v16, %v2626_v54  ;;  %v4878_v56 = vadd.f32 %v3494_v16, %v2627_v36 }
 0x9a2   : > { %v2643_v57 = vmul.f32 %v4864_v37, %v4864_v37  ;;  %v2644_v42 = vmul.f32 %v4866_v38, %v4866_v38  ;;  %v2645_v44 = vmul.f32 %v4868_v35, %v4868_v35  ;;  %v2646_v45 = vmul.f32 %v4870_v41, %v4870_v41  ;;  %v2805_v18 = vpop.permute.xlu0 %2804 }
 0x9a3   : > { %v2647_v43 = vmul.f32 %v4872_v39, %v4872_v39  ;;  %v2648_v49 = vmul.f32 %v4874_v30, %v4874_v30  ;;  %v2649_v50 = vmul.f32 %v4876_v55, %v4876_v55  ;;  %v2650_v51 = vmul.f32 %v4878_v56, %v4878_v56  ;;  %2829 = vst.msk [vmem:[#allocation3] sm:$0xff] %vm2828_vm14, %v2805_v18 }
 0x9a4   : > { %v2651_v52 = vmul.f32 %v2643_v57, %v4864_v37  ;;  %v2652_v0 = vmul.f32 %v2644_v42, %v4866_v38  ;;  %v2653_v1 = vmul.f32 %v2645_v44, %v4868_v35  ;;  %v2654_v8 = vmul.f32 %v2646_v45, %v4870_v41 }
 0x9a5   : > { %v2655_v11 = vmul.f32 %v2647_v43, %v4872_v39  ;;  %v2656_v13 = vmul.f32 %v2648_v49, %v4874_v30  ;;  %v2657_v20 = vmul.f32 %v2649_v50, %v4876_v55  ;;  %v2658_v2 = vmul.f32 %v2650_v51, %v4878_v56 }
 0x9a6   : > { %v2659_v14 = vmul.f32 0.044715, %v2651_v52  ;;  %v2660_v3 = vmul.f32 0.044715, %v2652_v0  ;;  %v2661_v21 = vmul.f32 0.044715, %v2653_v1 }
 0x9a7   : > { %v2662_v22 = vmul.f32 0.044715, %v2654_v8  ;;  %v2663_v53 = vmul.f32 0.044715, %v2655_v11  ;;  %v2664_v23 = vmul.f32 0.044715, %v2656_v13 }
 0x9a8   : > { %v2665_v32 = vmul.f32 0.044715, %v2657_v20  ;;  %v2666_v40 = vmul.f32 0.044715, %v2658_v2  ;;  %v2667_v4 = vadd.f32 %v2659_v14, %v4864_v37  ;;  %v2668_v28 = vadd.f32 %v2660_v3, %v4866_v38 }
 0x9a9   : > { %v2669_v29 = vadd.f32 %v2661_v21, %v4868_v35  ;;  %v2670_v19 = vadd.f32 %v2662_v22, %v4870_v41  ;;  %v2671_v46 = vadd.f32 %v2663_v53, %v4872_v39  ;;  %v2672_v31 = vadd.f32 %v2664_v23, %v4874_v30 }
 0x9aa   : > { %v2673_v34 = vadd.f32 %v2665_v32, %v4876_v55  ;;  %v2675_v48 = vmul.f32 0.7978846, %v2667_v4  ;;  %v2676_v59 = vmul.f32 0.7978846, %v2668_v28  ;;  %v2674_v60 = vadd.f32 %v2666_v40, %v4878_v56 }
 0x9ab   : > { %v2677_v10 = vmul.f32 0.7978846, %v2669_v29  ;;  %v2678_v61 = vmul.f32 0.7978846, %v2670_v19  ;;  %v2679_v58 = vmul.f32 0.7978846, %v2671_v46 }
 0x9ac   : > { %3701 = vtanh.f32 %v2675_v48  ;;  %v2680_v47 = vmul.f32 0.7978846, %v2672_v31  ;;  %v2681_v17 = vmul.f32 0.7978846, %v2673_v34  ;;  %v2682_v25 = vmul.f32 0.7978846, %v2674_v60 }
 0x9ad   : > { %3703 = vtanh.f32 %v2676_v59  ;;  %v3658_v29 = vld [vmem:[%s5187_s10] sm:$0xff]   ;;  %v3659_v19 = vld [vmem:[%s5187_s10 + $0x8] sm:$0xff]   ;;  %v3660_v46 = vld [vmem:[%s5187_s10 + $0x10] sm:$0xff]  }
 0x9ae   : > { %3705 = vtanh.f32 %v2677_v10  ;;  %3581 = vmatprep.subr.bf16.mxu1 %v3658_v29  ;;  %v3661_v34 = vld [vmem:[%s5187_s10 + $0x18] sm:$0xff]   ;;  %v3662_v48 = vld [vmem:[%s5187_s10 + $0x20] ss:$0 sps:$4 sm:$0xff]  }
 0x9af   : > { %3707 = vtanh.f32 %v2678_v61  ;;  %3582 = vmatpush3.bf16.msra.mxu1 %v3658_v29  ;;  %v3194_v59 = vsel %vm3192_vm15, %v3662_v48, 0 }
 0x9b0   : > { %3709 = vtanh.f32 %v2679_v58  ;;  %3583 = vmatprep.subr.bf16.mxu1 %v3659_v19 }
 0x9b1   : > { %3711 = vtanh.f32 %v2680_v47 }
 0x9b2   : > { %3713 = vtanh.f32 %v2681_v17 }
 0x9b3   : > { %3715 = vtanh.f32 %v2682_v25  ;;  %3584 = vmatpush3.bf16.msra.mxu1 %v3659_v19 }
 0x9b4   : > { %3585 = vmatprep.subr.bf16.mxu1 %v3660_v46 }
 0x9b6   : > { %v3702_v24 = vpop.eup %3701 }
 0x9b7   : > { %v3704_v5 = vpop.eup %3703  ;;  %v2691_v15 = vadd.f32 1.0, %v3702_v24  ;;  %3586 = vmatpush3.bf16.msra.mxu1 %v3660_v46 }
 0x9b8   : > { %v3706_v63 = vpop.eup %3705  ;;  %v2692_v6 = vadd.f32 1.0, %v3704_v5  ;;  %3587 = vmatprep.subr.bf16.mxu1 %v3661_v34  ;;  %v5024_v5 = vpop.permute.xlu1 %3063 }
 0x9b9   : > { %v3708_v16 = vpop.eup %3707  ;;  %v2693_v9 = vadd.f32 1.0, %v3706_v63  ;;  %v2699_v26 = vmul.f32 0.5, %v2691_v15 }
 0x9ba   : > { %v3710_v27 = vpop.eup %3709  ;;  %v2694_v33 = vadd.f32 1.0, %v3708_v16  ;;  %v2700_v12 = vmul.f32 0.5, %v2692_v6 }
 0x9bb   : > { %v3712_v54 = vpop.eup %3711  ;;  %v2695_v36 = vadd.f32 1.0, %v3710_v27  ;;  %v2701_v57 = vmul.f32 0.5, %v2693_v9  ;;  %v2707_v42 = vmul.f32 %v2699_v26, %v4864_v37  ;;  %3588 = vmatpush3.bf16.msra.mxu1 %v3661_v34 }
 0x9bc   : > { %v3714_v44 = vpop.eup %3713  ;;  %v2696_v45 = vadd.f32 1.0, %v3712_v54  ;;  %v2702_v43 = vmul.f32 0.5, %v2694_v33  ;;  %v2708_v49 = vmul.f32 %v2700_v12, %v4866_v38  ;;  %3602 = vmatprep.subr.msk.bf16.mxu1 %vm3192_vm15, %v3662_v48 }
 0x9bd   : > { %v3716_v50 = vpop.eup %3715  ;;  %v2697_v51 = vadd.f32 1.0, %v3714_v44  ;;  %v2703_v52 = vmul.f32 0.5, %v2695_v36  ;;  %v2709_v0 = vmul.f32 %v2701_v57, %v4868_v35  ;;  %2715 = vst.msk [vmem:[#allocation2 + $0x11] sm:$0xff] %vm440_vm0, %v2707_v42 }
 0x9be   : > { %v2698_v1 = vadd.f32 1.0, %v3716_v50  ;;  %v2704_v8 = vmul.f32 0.5, %v2696_v45  ;;  %v2710_v11 = vmul.f32 %v2702_v43, %v4870_v41  ;;  %2716 = vst.msk [vmem:[#allocation2 + $0x21] sm:$0xff] %vm440_vm0, %v2708_v49 }
 0x9bf   : > { %v2705_v37 = vmul.f32 0.5, %v2697_v51  ;;  %v2711_v13 = vmul.f32 %v2703_v52, %v4872_v39  ;;  %2717 = vst.msk [vmem:[#allocation2 + $0x31] sm:$0xff] %vm440_vm0, %v2709_v0  ;;  %3590 = vmatpush3.bf16.msra.mxu1 %v3194_v59 }
 0x9c0   : > { %v2706_v20 = vmul.f32 0.5, %v2698_v1  ;;  %v2712_v38 = vmul.f32 %v2704_v8, %v4874_v30  ;;  %2718 = vst.msk [vmem:[#allocation2 + $0x41] sm:$0xff] %vm440_vm0, %v2710_v11 }
 0x9c1   : > { %v2713_v35 = vmul.f32 %v2705_v37, %v4876_v55  ;;  %2719 = vst.msk [vmem:[#allocation2 + $0x51] sm:$0xff] %vm440_vm0, %v2711_v13 }
 0x9c2   : > { %v2714_v2 = vmul.f32 %v2706_v20, %v4878_v56  ;;  %2720 = vst.msk [vmem:[#allocation2 + $0x61] sm:$0xff] %vm440_vm0, %v2712_v38 }
 0x9c3   : > { %2721 = vst.msk [vmem:[#allocation2 + $0x71] sm:$0xff] %vm440_vm0, %v2713_v35 }
 0x9c4   : > { %2722 = vst.msk [vmem:[#allocation2 + $0x81] sm:$0xff] %vm440_vm0, %v2714_v2  ;;  %v2740_v41 = vld [vmem:[#allocation2 + $0x11] sm:$0xff] }
 0x9c5   : > { %v2837_v39 = vld [vmem:[#allocation2 + $0x10] sm:$0xff]  ;;  %v2741_v14 = vld [vmem:[#allocation2 + $0x21] sm:$0xff]  ;;  %2757 = vrot.lane.b32.xlu1 %v2740_v41, %s3730_s17 }
 0x9c6   : > { %v2838_v30 = vld [vmem:[#allocation2 + $0x20] sm:$0xff]  ;;  %2732 = vst.msk [vmem:[#allocation3 + $0x8] sm:$0xff] %vm440_vm0, %v2837_v39  ;;  %2759 = vrot.lane.b32.xlu0 %v2741_v14, %s3730_s17  ;;  %v2839_v55 = vld [vmem:[#allocation2 + $0x30] sm:$0xff] }
 0x9c7   : > { %2733 = vst.msk [vmem:[#allocation3 + $0x10] sm:$0xff] %vm440_vm0, %v2838_v30  ;;  %v2840_v56 = vld [vmem:[#allocation2 + $0x40] sm:$0xff]  ;;  %2734 = vst.msk [vmem:[#allocation3 + $0x18] sm:$0xff] %vm440_vm0, %v2839_v55  ;;  %v2742_v3 = vld [vmem:[#allocation2 + $0x31] sm:$0xff] }
 0x9c8   : > { %v4935_v21 = vld [vmem:[#allocation2 + $0x50] sm:$0xff]  ;;  %2735 = vst.msk [vmem:[#allocation3 + $0x20] sm:$0xff] %vm440_vm0, %v2840_v56  ;;  %v2790_v22 = vld [vmem:[#allocation2 + $0x22] sm:$0xff] }
 0x9c9   : > { %2761 = vrot.lane.b32.xlu1 %v2742_v3, %s3730_s17  ;;  %v4939_v53 = vld [vmem:[#allocation2 + $0x60] sm:$0xff]  ;;  %2736 = vst.msk [vmem:[#allocation3 + $0x28] sm:$0xff] %vm440_vm0, %v4935_v21  ;;  %v2789_v32 = vld [vmem:[#allocation2 + $0x12] sm:$0xff] }
 0x9ca   : > { %2808 = vrot.lane.b32.xlu0 %v2790_v22, %s3732_s19  ;;  %v4944_v23 = vld [vmem:[#allocation2 + $0x70] sm:$0xff]  ;;  %2737 = vst.msk [vmem:[#allocation3 + $0x30] sm:$0xff] %vm440_vm0, %v4939_v53  ;;  %v2889_v4 = vld [vmem:[#allocation2 + $0x41] sm:$0xff] }
 0x9cb   : > { %2738 = vst.msk [vmem:[#allocation3 + $0x38] sm:$0xff] %vm440_vm0, %v4944_v23  ;;  %v2791_v40 = vld [vmem:[#allocation2 + $0x32] sm:$0xff]  ;;  %v2938_v28 = vld [vmem:[#allocation2 + $0x42] sm:$0xff] }
 0x9cc   : > { %v3036_v31 = vld [vmem:[#allocation2 + $0x51] sm:$0xff]  ;;  %v2745_v60 = vld [vmem:[#allocation2 + $0x61] sm:$0xff] }
 0x9cd   : > { %2806 = vrot.lane.b32.xlu1 %v2789_v32, %s3732_s19  ;;  %v3085_v10 = vld [vmem:[#allocation2 + $0x52] sm:$0xff]  ;;  %v2794_v58 = vld [vmem:[#allocation2 + $0x62] sm:$0xff] }
 0x9ce   : > { %2853 = vrot.lane.b32.xlu0 %v2837_v39, %s3734_s21  ;;  %v2746_v61 = vld [vmem:[#allocation2 + $0x71] sm:$0xff]  ;;  %v2844_v17 = vld [vmem:[#allocation2 + $0x80] sm:$0xff] }
 0x9cf   : > { %v2795_v47 = vld [vmem:[#allocation2 + $0x72] sm:$0xff]  ;;  %v2893_v25 = vld [vmem:[#allocation2 + $0x81] sm:$0xff] }
 0x9d0   : > { %v2942_v24 = vld [vmem:[#allocation2 + $0x82] sm:$0xff] }
 0x9d1   : > { %2810 = vrot.lane.b32.xlu1 %v2791_v40, %s3732_s19 }
 0x9d2   : > { %2857 = vrot.lane.b32.xlu0 %v2839_v55, %s3734_s21 }
 0x9d5   : > { %2855 = vrot.lane.b32.xlu1 %v2838_v30, %s3734_s21 }
 0x9d6   : > { %2902 = vrot.lane.b32.xlu0 %v2740_v41, %s3736_s27 }
 0x9d9   : > { %2859 = vrot.lane.b32.xlu1 %v2840_v56, %s3734_s21 }
 0x9da   : > { %2906 = vrot.lane.b32.xlu0 %v2742_v3, %s3736_s27 }
 0x9dd   : > { %2904 = vrot.lane.b32.xlu1 %v2741_v14, %s3736_s27 }
 0x9de   : > { %2951 = vrot.lane.b32.xlu0 %v2789_v32, %s3739_s24 }
 0x9e1   : > { %2908 = vrot.lane.b32.xlu1 %v2889_v4, %s3736_s27 }
 0x9e2   : > { %2955 = vrot.lane.b32.xlu0 %v2791_v40, %s3739_s24 }
 0x9e5   : > { %2953 = vrot.lane.b32.xlu1 %v2790_v22, %s3739_s24 }
 0x9e6   : > { %3000 = vrot.lane.b32.xlu0 %v2838_v30, %s3737_s16 }
 0x9e9   : > { %2957 = vrot.lane.b32.xlu1 %v2938_v28, %s3739_s24 }
 0x9ea   : > { %3004 = vrot.lane.b32.xlu0 %v2840_v56, %s3737_s16 }
 0x9ed   : > { %3002 = vrot.lane.b32.xlu1 %v2839_v55, %s3737_s16 }
 0x9ee   : > { %3049 = vrot.lane.b32.xlu0 %v2741_v14, %s3738_s18 }
 0x9f1   : > { %3006 = vrot.lane.b32.xlu1 %v4935_v21, %s3737_s16 }
 0x9f2   : > { %3053 = vrot.lane.b32.xlu0 %v2889_v4, %s3738_s18 }
 0x9f5   : > { %3051 = vrot.lane.b32.xlu1 %v2742_v3, %s3738_s18 }
 0x9f6   : > { %3098 = vrot.lane.b32.xlu0 %v2790_v22, %s3740_s22 }
 0x9f9   : > { %3055 = vrot.lane.b32.xlu1 %v3036_v31, %s3738_s18 }
 0x9fa   : > { %2763 = vrot.lane.b32.xlu0 %v2889_v4, %s3730_s17 }
 0x9fd   : > { %3100 = vrot.lane.b32.xlu1 %v2791_v40, %s3740_s22 }
 0x9fe   : > { %3102 = vrot.lane.b32.xlu0 %v2938_v28, %s3740_s22 }
 0xa01   : > { %2765 = vrot.lane.b32.xlu1 %v3036_v31, %s3730_s17 }
 0xa02   : > { %2767 = vrot.lane.b32.xlu0 %v2745_v60, %s3730_s17 }
 0xa05   : > { %3104 = vrot.lane.b32.xlu1 %v3085_v10, %s3740_s22 }
 0xa06   : > { %2812 = vrot.lane.b32.xlu0 %v2938_v28, %s3732_s19 }
 0xa09   : > { %2769 = vrot.lane.b32.xlu1 %v2746_v61, %s3730_s17 }
 0xa0a   : > { %2816 = vrot.lane.b32.xlu0 %v2794_v58, %s3732_s19 }
 0xa0d   : > { %2814 = vrot.lane.b32.xlu1 %v3085_v10, %s3732_s19 }
 0xa0e   : > { %2861 = vrot.lane.b32.xlu0 %v4935_v21, %s3734_s21 }
 0xa11   : > { %2818 = vrot.lane.b32.xlu1 %v2795_v47, %s3732_s19 }
 0xa12   : > { %2865 = vrot.lane.b32.xlu0 %v4944_v23, %s3734_s21 }
 0xa15   : > { %2863 = vrot.lane.b32.xlu1 %v4939_v53, %s3734_s21 }
 0xa16   : > { %2910 = vrot.lane.b32.xlu0 %v3036_v31, %s3736_s27 }
 0xa19   : > { %2867 = vrot.lane.b32.xlu1 %v2844_v17, %s3734_s21 }
 0xa1a   : > { %2914 = vrot.lane.b32.xlu0 %v2746_v61, %s3736_s27 }
 0xa1d   : > { %2912 = vrot.lane.b32.xlu1 %v2745_v60, %s3736_s27 }
 0xa1e   : > { %2959 = vrot.lane.b32.xlu0 %v3085_v10, %s3739_s24 }
 0xa21   : > { %2916 = vrot.lane.b32.xlu1 %v2893_v25, %s3736_s27 }
 0xa22   : > { %2963 = vrot.lane.b32.xlu0 %v2795_v47, %s3739_s24 }
 0xa25   : > { %2961 = vrot.lane.b32.xlu1 %v2794_v58, %s3739_s24 }
 0xa26   : > { %3008 = vrot.lane.b32.xlu0 %v4939_v53, %s3737_s16 }
 0xa29   : > { %2965 = vrot.lane.b32.xlu1 %v2942_v24, %s3739_s24 }
 0xa2a   : > { %3012 = vrot.lane.b32.xlu0 %v2844_v17, %s3737_s16 }
 0xa2d   : > { %3010 = vrot.lane.b32.xlu1 %v4944_v23, %s3737_s16 }
 0xa2e   : > { %3057 = vrot.lane.b32.xlu0 %v2745_v60, %s3738_s18 }
 0xa31   : > { %3059 = vrot.lane.b32.xlu1 %v2746_v61, %s3738_s18 }
 0xa32   : > { %3061 = vrot.lane.b32.xlu0 %v2893_v25, %s3738_s18 }
 0xa35   : > { %3108 = vrot.lane.b32.xlu1 %v2795_v47, %s3740_s22 }
 0xa36   : > { %3106 = vrot.lane.b32.xlu0 %v2794_v58, %s3740_s22 }
 0xa37   : > { %v2758_v15 = vpop.permute.xlu1 %2757 }
 0xa38   : > { %2781 = vst.msk [vmem:[#allocation3 + $0x8] sm:$0xff] %vm2779_vm13, %v2758_v15  ;;  %v2760_v63 = vpop.permute.xlu0 %2759 }
 0xa39   : > { %2782 = vst.msk [vmem:[#allocation3 + $0x10] sm:$0xff] %vm2779_vm13, %v2760_v63  ;;  %3112 = vrot.lane.b32.xlu1 %v4713_v7, %s3740_s22 }
 0xa3a   : > { %3110 = vrot.lane.b32.xlu0 %v2942_v24, %s3740_s22 }
 0xa3b   : > { %v2762_v6 = vpop.permute.xlu1 %2761 }
 0xa3c   : > { %2783 = vst.msk [vmem:[#allocation3 + $0x18] sm:$0xff] %vm2779_vm13, %v2762_v6  ;;  %v2809_v16 = vpop.permute.xlu0 %2808 }
 0xa3d   : > { %2831 = vst.msk [vmem:[#allocation3 + $0x10] sm:$0xff] %vm2828_vm14, %v2809_v16 }
 0xa3f   : > { %v2807_v9 = vpop.permute.xlu1 %2806 }
 0xa40   : > { %2830 = vst.msk [vmem:[#allocation3 + $0x8] sm:$0xff] %vm2828_vm14, %v2807_v9  ;;  %v2854_v26 = vpop.permute.xlu0 %2853 }
 0xa41   : > { %2878 = vst.msk [vmem:[#allocation3] sm:$0xff] %vm2877_vm1, %v2854_v26 }
 0xa43   : > { %v2811_v27 = vpop.permute.xlu1 %2810 }
 0xa44   : > { %2832 = vst.msk [vmem:[#allocation3 + $0x18] sm:$0xff] %vm2828_vm14, %v2811_v27  ;;  %v2858_v33 = vpop.permute.xlu0 %2857 }
 0xa45   : > { %2880 = vst.msk [vmem:[#allocation3 + $0x10] sm:$0xff] %vm2877_vm1, %v2858_v33 }
 0xa47   : > { %v2856_v7 = vpop.permute.xlu1 %2855 }
 0xa48   : > { %2879 = vst.msk [vmem:[#allocation3 + $0x8] sm:$0xff] %vm2877_vm1, %v2856_v7  ;;  %v2903_v12 = vpop.permute.xlu0 %2902 }
 0xa49   : > { %2927 = vst.msk [vmem:[#allocation3] sm:$0xff] %vm2926_vm2, %v2903_v12 }
 0xa4b   : > { %v2860_v18 = vpop.permute.xlu1 %2859 }
 0xa4c   : > { %2881 = vst.msk [vmem:[#allocation3 + $0x18] sm:$0xff] %vm2877_vm1, %v2860_v18  ;;  %v2907_v54 = vpop.permute.xlu0 %2906 }
 0xa4d   : > { %2929 = vst.msk [vmem:[#allocation3 + $0x10] sm:$0xff] %vm2926_vm2, %v2907_v54 }
 0xa4f   : > { %v2905_v36 = vpop.permute.xlu1 %2904 }
 0xa50   : > { %2928 = vst.msk [vmem:[#allocation3 + $0x8] sm:$0xff] %vm2926_vm2, %v2905_v36  ;;  %v2952_v57 = vpop.permute.xlu0 %2951 }
 0xa51   : > { %2976 = vst.msk [vmem:[#allocation3] sm:$0xff] %vm2975_vm3, %v2952_v57 }
 0xa53   : > { %v2909_v42 = vpop.permute.xlu1 %2908 }
 0xa54   : > { %2930 = vst.msk [vmem:[#allocation3 + $0x18] sm:$0xff] %vm2926_vm2, %v2909_v42  ;;  %v2956_v44 = vpop.permute.xlu0 %2955 }
 0xa55   : > { %2978 = vst.msk [vmem:[#allocation3 + $0x10] sm:$0xff] %vm2975_vm3, %v2956_v44 }
 0xa57   : > { %v2954_v45 = vpop.permute.xlu1 %2953 }
 0xa58   : > { %2977 = vst.msk [vmem:[#allocation3 + $0x8] sm:$0xff] %vm2975_vm3, %v2954_v45  ;;  %v3001_v43 = vpop.permute.xlu0 %3000 }
 0xa59   : > { %3025 = vst.msk [vmem:[#allocation3] sm:$0xff] %vm3024_vm4, %v3001_v43 }
 0xa5b   : > { %v2958_v49 = vpop.permute.xlu1 %2957 }
 0xa5c   : > { %2979 = vst.msk [vmem:[#allocation3 + $0x18] sm:$0xff] %vm2975_vm3, %v2958_v49  ;;  %v3005_v50 = vpop.permute.xlu0 %3004 }
 0xa5d   : > { %3027 = vst.msk [vmem:[#allocation3 + $0x10] sm:$0xff] %vm3024_vm4, %v3005_v50 }
 0xa5f   : > { %v3003_v51 = vpop.permute.xlu1 %3002 }
 0xa60   : > { %3026 = vst.msk [vmem:[#allocation3 + $0x8] sm:$0xff] %vm3024_vm4, %v3003_v51  ;;  %v3050_v52 = vpop.permute.xlu0 %3049 }
 0xa61   : > { %3074 = vst.msk [vmem:[#allocation3] sm:$0xff] %vm3073_vm5, %v3050_v52 }
 0xa63   : > { %v3007_v0 = vpop.permute.xlu1 %3006 }
 0xa64   : > { %3028 = vst.msk [vmem:[#allocation3 + $0x18] sm:$0xff] %vm3024_vm4, %v3007_v0  ;;  %v3054_v1 = vpop.permute.xlu0 %3053 }
 0xa65   : > { %3076 = vst.msk [vmem:[#allocation3 + $0x10] sm:$0xff] %vm3073_vm5, %v3054_v1 }
 0xa67   : > { %v3052_v8 = vpop.permute.xlu1 %3051 }
 0xa68   : > { %3075 = vst.msk [vmem:[#allocation3 + $0x8] sm:$0xff] %vm3073_vm5, %v3052_v8  ;;  %v3099_v11 = vpop.permute.xlu0 %3098 }
 0xa69   : > { %3123 = vst.msk [vmem:[#allocation3] sm:$0xff] %vm3122_vm6, %v3099_v11 }
 0xa6b   : > { %v3056_v37 = vpop.permute.xlu1 %3055 }
 0xa6c   : > { %3077 = vst.msk [vmem:[#allocation3 + $0x18] sm:$0xff] %vm3073_vm5, %v3056_v37  ;;  %v2764_v13 = vpop.permute.xlu0 %2763 }
 0xa6d   : > { %2784 = vst.msk [vmem:[#allocation3 + $0x20] sm:$0xff] %vm2779_vm13, %v2764_v13 }
 0xa6f   : > { %v3101_v20 = vpop.permute.xlu1 %3100 }
 0xa70   : > { %3124 = vst.msk [vmem:[#allocation3 + $0x8] sm:$0xff] %vm3122_vm6, %v3101_v20  ;;  %v3103_v38 = vpop.permute.xlu0 %3102  ;;  %v3131_v39 = vld [vmem:[#allocation3] sm:$0xff] }
 0xa71   : > { %3125 = vst.msk [vmem:[#allocation3 + $0x10] sm:$0xff] %vm3122_vm6, %v3103_v38 }
 0xa73   : > { %v2766_v35 = vpop.permute.xlu1 %2765 }
 0xa74   : > { %2785 = vst.msk [vmem:[#allocation3 + $0x28] sm:$0xff] %vm2779_vm13, %v2766_v35  ;;  %v2768_v2 = vpop.permute.xlu0 %2767 }
 0xa75   : > { %2786 = vst.msk [vmem:[#allocation3 + $0x30] sm:$0xff] %vm2779_vm13, %v2768_v2 }
 0xa77   : > { %v3105_v41 = vpop.permute.xlu1 %3104  ;;  %v3132_v14 = vld [vmem:[#allocation3 + $0x8] sm:$0xff] }
 0xa78   : > { %3126 = vst.msk [vmem:[#allocation3 + $0x18] sm:$0xff] %vm3122_vm6, %v3105_v41  ;;  %v2813_v30 = vpop.permute.xlu0 %2812  ;;  %v3139_v55 = vpack.c.bf16 %v3132_v14, %v3131_v39  ;;  %v3133_v22 = vld [vmem:[#allocation3 + $0x10] sm:$0xff] }
 0xa79   : > { %2833 = vst.msk [vmem:[#allocation3 + $0x20] sm:$0xff] %vm2828_vm14, %v2813_v30 }
 0xa7a   : > { %3591 = vmatprep.mubr.msk.bf16.mxu1 %vm3179_vm7, %v3139_v55 }
 0xa7b   : > { %v2770_v56 = vpop.permute.xlu1 %2769 }
 0xa7c   : > { %2787 = vst.msk [vmem:[#allocation3 + $0x38] sm:$0xff] %vm2779_vm13, %v2770_v56  ;;  %v2817_v3 = vpop.permute.xlu0 %2816 }
 0xa7d   : > { %2835 = vst.msk [vmem:[#allocation3 + $0x30] sm:$0xff] %vm2828_vm14, %v2817_v3 }
 0xa7f   : > { %v2815_v21 = vpop.permute.xlu1 %2814  ;;  %v3134_v53 = vld [vmem:[#allocation3 + $0x18] sm:$0xff] }
 0xa80   : > { %2834 = vst.msk [vmem:[#allocation3 + $0x28] sm:$0xff] %vm2828_vm14, %v2815_v21  ;;  %v2862_v23 = vpop.permute.xlu0 %2861  ;;  %v3140_v32 = vpack.c.bf16 %v3134_v53, %v3133_v22 }
 0xa81   : > { %2882 = vst.msk [vmem:[#allocation3 + $0x20] sm:$0xff] %vm2877_vm1, %v2862_v23 }
 0xa82   : > { %3592 = vmatmul.mubr.msk.bf16.vlgmr.msra.gmra.mrb[8].mxu1 %vm3179_vm7, %v3140_v32 }
 0xa83   : > { %v2819_v40 = vpop.permute.xlu1 %2818 }
 0xa84   : > { %2836 = vst.msk [vmem:[#allocation3 + $0x38] sm:$0xff] %vm2828_vm14, %v2819_v40  ;;  %v2866_v4 = vpop.permute.xlu0 %2865 }
 0xa85   : > { %2884 = vst.msk [vmem:[#allocation3 + $0x30] sm:$0xff] %vm2877_vm1, %v2866_v4 }
 0xa87   : > { %v2864_v28 = vpop.permute.xlu1 %2863 }
 0xa88   : > { %2883 = vst.msk [vmem:[#allocation3 + $0x28] sm:$0xff] %vm2877_vm1, %v2864_v28  ;;  %v2911_v29 = vpop.permute.xlu0 %2910 }
 0xa89   : > { %2931 = vst.msk [vmem:[#allocation3 + $0x20] sm:$0xff] %vm2926_vm2, %v2911_v29 }
 0xa8b   : > { %v2868_v19 = vpop.permute.xlu1 %2867 }
 0xa8c   : > { %2885 = vst.msk [vmem:[#allocation3 + $0x38] sm:$0xff] %vm2877_vm1, %v2868_v19  ;;  %v2915_v46 = vpop.permute.xlu0 %2914 }
 0xa8d   : > { %2933 = vst.msk [vmem:[#allocation3 + $0x30] sm:$0xff] %vm2926_vm2, %v2915_v46 }
 0xa8f   : > { %v2913_v31 = vpop.permute.xlu1 %2912 }
 0xa90   : > { %2932 = vst.msk [vmem:[#allocation3 + $0x28] sm:$0xff] %vm2926_vm2, %v2913_v31  ;;  %v2960_v34 = vpop.permute.xlu0 %2959 }
 0xa91   : > { %2980 = vst.msk [vmem:[#allocation3 + $0x20] sm:$0xff] %vm2975_vm3, %v2960_v34 }
 0xa93   : > { %v2917_v48 = vpop.permute.xlu1 %2916 }
 0xa94   : > { %2934 = vst.msk [vmem:[#allocation3 + $0x38] sm:$0xff] %vm2926_vm2, %v2917_v48  ;;  %v2964_v59 = vpop.permute.xlu0 %2963 }
 0xa95   : > { %2982 = vst.msk [vmem:[#allocation3 + $0x30] sm:$0xff] %vm2975_vm3, %v2964_v59 }
 0xa97   : > { %v2962_v60 = vpop.permute.xlu1 %2961 }
 0xa98   : > { %2981 = vst.msk [vmem:[#allocation3 + $0x28] sm:$0xff] %vm2975_vm3, %v2962_v60  ;;  %v3009_v10 = vpop.permute.xlu0 %3008 }
 0xa99   : > { %3029 = vst.msk [vmem:[#allocation3 + $0x20] sm:$0xff] %vm3024_vm4, %v3009_v10 }
 0xa9b   : > { %v2966_v61 = vpop.permute.xlu1 %2965 }
 0xa9c   : > { %2983 = vst.msk [vmem:[#allocation3 + $0x38] sm:$0xff] %vm2975_vm3, %v2966_v61  ;;  %v3013_v58 = vpop.permute.xlu0 %3012 }
 0xa9d   : > { %3032 = vst.msk [vmem:[#allocation3 + $0x38] sm:$0xff] %vm3024_vm4, %v5018_v62  ;;  %3031 = vst.msk [vmem:[#allocation3 + $0x30] sm:$0xff] %vm3024_vm4, %v3013_v58 }
 0xa9e   : > { %3081 = vst.msk [vmem:[#allocation3 + $0x38] sm:$0xff] %vm3073_vm5, %v5024_v5 }
 0xa9f   : > { %v3011_v47 = vpop.permute.xlu1 %3010 }
 0xaa0   : > { %3030 = vst.msk [vmem:[#allocation3 + $0x28] sm:$0xff] %vm3024_vm4, %v3011_v47  ;;  %v3058_v17 = vpop.permute.xlu0 %3057 }
 0xaa1   : > { %3078 = vst.msk [vmem:[#allocation3 + $0x20] sm:$0xff] %vm3073_vm5, %v3058_v17 }
 0xaa3   : > { %v3060_v25 = vpop.permute.xlu1 %3059 }
 0xaa4   : > { %3079 = vst.msk [vmem:[#allocation3 + $0x28] sm:$0xff] %vm3073_vm5, %v3060_v25  ;;  %v3062_v24 = vpop.permute.xlu0 %3061 }
 0xaa5   : > { %3080 = vst.msk [vmem:[#allocation3 + $0x30] sm:$0xff] %vm3073_vm5, %v3062_v24 }
 0xaa7   : > { %v3109_v15 = vpop.permute.xlu1 %3108 }
 0xaa8   : > { %3128 = vst.msk [vmem:[#allocation3 + $0x28] sm:$0xff] %vm3122_vm6, %v3109_v15  ;;  %v3107_v62 = vpop.permute.xlu0 %3106 }
 0xaa9   : > { %3127 = vst.msk [vmem:[#allocation3 + $0x20] sm:$0xff] %vm3122_vm6, %v3107_v62 }
 0xaab   : > { %v3113_v63 = vpop.permute.xlu1 %3112 }
 0xaac   : > { %3130 = vst.msk [vmem:[#allocation3 + $0x38] sm:$0xff] %vm3122_vm6, %v3113_v63  ;;  %v3111_v5 = vpop.permute.xlu0 %3110 }
 0xaad   : > { %3129 = vst.msk [vmem:[#allocation3 + $0x30] sm:$0xff] %vm3122_vm6, %v3111_v5 }
 0xaaf   : > { %v3136_v6 = vld [vmem:[#allocation3 + $0x28] sm:$0xff] }
 0xab0   : > { %v3135_v16 = vld [vmem:[#allocation3 + $0x20] sm:$0xff] }
 0xab1   : > { %v3141_v9 = vpack.c.bf16 %v3136_v6, %v3135_v16 }
 0xab3   : > { %3595 = vmatprep.mubr.msk.bf16.mxu1 %vm3179_vm7, %v3141_v9  ;;  %v3138_v26 = vld [vmem:[#allocation3 + $0x38] sm:$0xff] }
 0xab4   : > { %v3137_v27 = vld [vmem:[#allocation3 + $0x30] sm:$0xff] }
 0xab5   : > { %v3142_v33 = vpack.c.bf16 %v3138_v26, %v3137_v27 }
 0xab7   : > { %3596 = vmatmul.mubr.msk.bf16.gmra.mrb[12].mxu1 %vm3179_vm7, %v3142_v33 }
 0xb55   : > { %v5100_v7 = vpop.f32.mrb[8].mxu1 }
 0xb56   : > { %v5102_v12 = vpop.f32.mrb[9].mxu1  ;;  %v3288_v57 = vmul.f32 %v5100_v7, %v5100_v7  ;;  %v3264_v49 = vsel %vm440_vm0, %v5100_v7, 0.0 }
 0xb57   : > { %v3286_v18 = vmul.f32 %v5102_v12, %v5102_v12  ;;  %v5106_v54 = vpop.f32.mrb[10].mxu1  ;;  %v3261_v42 = vsel %vm440_vm0, %v5102_v12, 0.0 }
 0xb58   : > { %v5108_v36 = vpop.f32.mrb[11].mxu1  ;;  %v3289_v51 = vmul.f32 %v5106_v54, %v5106_v54  ;;  %v3297_v8 = vsel %vm440_vm0, %v3288_v57, 0.0  ;;  %v3266_v11 = vsel %vm440_vm0, %v5106_v54, 0.0 }
 0xb59   : > { %v3262_v44 = vsel %vm440_vm0, %v5108_v36, 0.0  ;;  %v3287_v45 = vmul.f32 %v5108_v36, %v5108_v36  ;;  %v3294_v50 = vsel %vm440_vm0, %v3286_v18, 0.0 }
 0xb5a   : > { %v3263_v43 = vadd.f32 %v3262_v44, %v3261_v42  ;;  %v3299_v20 = vsel %vm440_vm0, %v3289_v51, 0.0 }
 0xb5b   : > { %v3295_v52 = vsel %vm440_vm0, %v3287_v45, 0.0 }
 0xb5c   : > { %v3265_v0 = vadd.f32 %v3264_v49, %v3263_v43  ;;  %v3296_v1 = vadd.f32 %v3295_v52, %v3294_v50  ;;  %v3505_v50 = vld [vmem:[%s5189_s12] ss:$0 sm:$0xff] }
 0xb5e   : > { %v3298_v37 = vadd.f32 %v3297_v8, %v3296_v1  ;;  %v3267_v13 = vadd.f32 %v3266_v11, %v3265_v0 }
 0xb60   : > { %v3300_v38 = vadd.f32 %v3299_v20, %v3298_v37 }
 0xb8a   : > { %v5128_v35 = vpop.f32.mrb[12].mxu1 }
 0xb8b   : > { %v5130_v2 = vpop.f32.mrb[13].mxu1  ;;  %v3292_v56 = vmul.f32 %v5128_v35, %v5128_v35  ;;  %v3272_v32 = vsel %vm440_vm0, %v5128_v35, 0.0 }
 0xb8c   : > { %v3268_v41 = vsel %vm440_vm0, %v5130_v2, 0.0  ;;  %v3290_v39 = vmul.f32 %v5130_v2, %v5130_v2  ;;  %v5136_v14 = vpop.f32.mrb[14].mxu1 }
 0xb8d   : > { %v3269_v30 = vadd.f32 %v3268_v41, %v3267_v13  ;;  %v5138_v55 = vpop.f32.mrb[15].mxu1  ;;  %v3293_v40 = vmul.f32 %v5136_v14, %v5136_v14  ;;  %v3305_v19 = vsel %vm440_vm0, %v3292_v56, 0.0  ;;  %v3274_v46 = vsel %vm440_vm0, %v5136_v14, 0.0 }
 0xb8e   : > { %v3301_v3 = vsel %vm440_vm0, %v3290_v39, 0.0  ;;  %v3270_v21 = vsel %vm440_vm0, %v5138_v55, 0.0  ;;  %v3291_v22 = vmul.f32 %v5138_v55, %v5138_v55 }
 0xb8f   : > { %v3302_v53 = vadd.f32 %v3301_v3, %v3300_v38  ;;  %v3271_v23 = vadd.f32 %v3270_v21, %v3269_v30  ;;  %v3307_v48 = vsel %vm440_vm0, %v3293_v40, 0.0 }
 0xb90   : > { %v3303_v4 = vsel %vm440_vm0, %v3291_v22, 0.0  ;;  %vm3405_vm0 = vcmask 523264  }
 0xb91   : > { %v3273_v28 = vadd.f32 %v3272_v32, %v3271_v23  ;;  %v3304_v29 = vadd.f32 %v3303_v4, %v3302_v53 }
 0xb93   : > { %v3275_v31 = vadd.f32 %v3274_v46, %v3273_v28  ;;  %v3306_v34 = vadd.f32 %v3305_v19, %v3304_v29 }
 0xb95   : > { %3276 = vadd.xlane.f32.xlu0 %v3275_v31  ;;  %v3308_v59 = vadd.f32 %v3307_v48, %v3306_v34 }
 0xb97   : > { %3309 = vadd.xlane.f32.xlu1 %v3308_v59 }
 0xc22   : > { %v3277_v60 = vpop.xlane.xlu0 %3276 }
 0xc23   : > { %v3278_v10 = vrot.slane %v3277_v60, 4 }
 0xc24   : > { %v3310_v61 = vpop.xlane.xlu1 %3309 }
 0xc25   : > { %v3279_v58 = vadd.f32 %v3278_v10, %v3277_v60  ;;  %v3311_v47 = vrot.slane %v3310_v61, 4 }
 0xc27   : > { %v3280_v17 = vrot.slane %v3279_v58, 2  ;;  %v3312_v25 = vadd.f32 %v3311_v47, %v3310_v61 }
 0xc29   : > { %v3313_v24 = vrot.slane %v3312_v25, 2  ;;  %v3281_v15 = vadd.f32 %v3280_v17, %v3279_v58 }
 0xc2b   : > { %v3314_v62 = vadd.f32 %v3313_v24, %v3312_v25  ;;  %v3282_v63 = vrot.slane %v3281_v15, 1 }
 0xc2d   : > { %v3283_v5 = vadd.f32 %v3282_v63, %v3281_v15  ;;  %v3315_v6 = vrot.slane %v3314_v62, 1 }
 0xc2f   : > { %3621 = vpush %v3283_v5  ;;  %v3316_v16 = vadd.f32 %v3315_v6, %v3314_v62 }
 0xc31   : > { %3623 = vpush %v3316_v16 }
 0xc60   : > { %s3622_s17 = spop %3621 }
 0xc61   : > { %s3285_s19 = smul.f32 0.001953125, %s3622_s17  ;;  %s438_s17 = scalar_lea.vmem %s5190_s13, %s3467_s28 }
 0xc62   : > { %s3624_s21 = spop %3623 }
 0xc63   : > { %s3319_s27 = smul.f32 %s3285_s19, %s3285_s19  ;;  %v3321_v9 = vstv %s3285_s19 }
 0xc64   : > { %s3318_s16 = smul.f32 0.001953125, %s3624_s21  ;;  %v3322_v26 = vsub.f32 %v5102_v12, %v3321_v9  ;;  %v3323_v27 = vsub.f32 %v5108_v36, %v3321_v9  ;;  %v3324_v33 = vsub.f32 %v5100_v7, %v3321_v9  ;;  %v3325_v18 = vsub.f32 %v5106_v54, %v3321_v9  ;;  %v3504_v7 = vld [vmem:[%s5188_s11] ss:$0 sm:$0xff] }
 0xc65   : > { %v3326_v57 = vsub.f32 %v5130_v2, %v3321_v9  ;;  %v3327_v42 = vsub.f32 %v5138_v55, %v3321_v9  ;;  %v3328_v44 = vsub.f32 %v5128_v35, %v3321_v9  ;;  %v3329_v45 = vsub.f32 %v5136_v14, %v3321_v9 }
 0xc66   : > { %s3320_s18 = ssub.f32 %s3318_s16, %s3319_s27 }
 0xc68   : > { %s3330_s24 = sadd.f32 1e-05, %s3320_s18 }
 0xc6a   : > { %v3331_v43 = vstv %s3330_s24 }
 0xc6b   : > { %3717 = vrsqrt.f32 %v3331_v43 }
 0xc75   : > { %v3718_v49 = vpop.eup %3717 }
 0xc76   : > { %3625 = vpush %v3718_v49 }
 0xca7   : > { %s3626_s14 = spop %3625 }
 0xca8   : > { %v3334_v12 = vstv %s3626_s14 }
 0xca9   : > { %v3335_v54 = vmul.f32 %v3334_v12, %v3322_v26  ;;  %v3336_v36 = vmul.f32 %v3334_v12, %v3323_v27  ;;  %v3337_v1 = vmul.f32 %v3334_v12, %v3324_v33  ;;  %v3338_v37 = vmul.f32 %v3334_v12, %v3325_v18 }
 0xcaa   : > { %v3339_v38 = vmul.f32 %v3334_v12, %v3326_v57  ;;  %v3340_v41 = vmul.f32 %v3334_v12, %v3327_v42  ;;  %v3341_v30 = vmul.f32 %v3334_v12, %v3328_v44  ;;  %v3342_v3 = vmul.f32 %v3334_v12, %v3329_v45 }
 0xcab   : > { %v3350_v51 = vmul.f32 %v3504_v7, %v3335_v54  ;;  %v3351_v0 = vmul.f32 %v3504_v7, %v3336_v36  ;;  %v3352_v11 = vmul.f32 %v3504_v7, %v3337_v1  ;;  %v3353_v20 = vmul.f32 %v3504_v7, %v3338_v37 }
 0xcac   : > { %v3354_v2 = vmul.f32 %v3504_v7, %v3339_v38  ;;  %v3355_v14 = vmul.f32 %v3504_v7, %v3340_v41  ;;  %v3356_v56 = vmul.f32 %v3504_v7, %v3341_v30  ;;  %v3357_v22 = vmul.f32 %v3504_v7, %v3342_v3 }
 0xcad   : > { %v3365_v52 = vadd.f32 %v3505_v50, %v3350_v51  ;;  %v3366_v8 = vadd.f32 %v3505_v50, %v3351_v0  ;;  %v3367_v13 = vadd.f32 %v3505_v50, %v3352_v11  ;;  %v3368_v35 = vadd.f32 %v3505_v50, %v3353_v20 }
 0xcae   : > { %v3369_v39 = vadd.f32 %v3505_v50, %v3354_v2  ;;  %v3370_v55 = vadd.f32 %v3505_v50, %v3355_v14  ;;  %v3371_v21 = vadd.f32 %v3505_v50, %v3356_v56  ;;  %v3372_v53 = vadd.f32 %v3505_v50, %v3357_v22 }
 0xcaf   : > { %3373 = vxpose.xlu0.b32.start [1/8] (short) (narrow) %v3365_v52, 8 }
 0xcb3   : > { %3374 = vxpose.xlu0.b32.cont [2/8] (short) (narrow) %v3366_v8, 8 }
 0xcb7   : > { %3375 = vxpose.xlu0.b32.cont [3/8] (short) (narrow) %v3367_v13, 8 }
 0xcbb   : > { %3376 = vxpose.xlu0.b32.cont [4/8] (short) (narrow) %v3368_v35, 8 }
 0xcbf   : > { %3377 = vxpose.xlu0.b32.cont [5/8] (short) (narrow) %v3369_v39, 8 }
 0xcc3   : > { %3378 = vxpose.xlu0.b32.cont [6/8] (short) (narrow) %v3370_v55, 8 }
 0xcc7   : > { %3379 = vxpose.xlu0.b32.cont [7/8] (short) (narrow) %v3371_v21, 8 }
 0xccb   : > { %3380 = vxpose.xlu0.b32.end [8/8] (short) (narrow) %v3372_v53, 8 }
 0xd2f   : > { %v3389_v23 = vpop.trf.xlu0 }
 0xd30   : > { %3406 = vst.msk [vmem:[%s438_s17] sm:$0xff] %vm3405_vm0, %v3389_v23 }
 0xd31 PF: > { %s23_s25 = sadd.s32 1, %s3725_s25  }
 0xd32   : > { %p20_p4 = scmp.ge.s32.totalorder %s23_s25, 4  }
 0xd34   :  { %22 = sbr.rel (!%p20_p4) target bundleno = 1 (0x1), region = 104 }

</bundles_post_ra>
